<compile_context>
chip_gen: v6e
topology: v6e:2x2x1
jax: 0.10.0
libtpu: 0.0.40
codegen_flags: <defaults>
</compile_context>

<pallas_src>
import functools

import jax
import jax.numpy as jnp
from jax.experimental import pallas as pl
from jax.experimental.pallas import tpu as pltpu

BN_EPS = 1e-5
KSIZE = 3
PAD = 1          # static Python int
LANES = 128
SUBLANES = 8


def _round_up(v, m):
    return ((v + m - 1) // m) * m


def _interior_mask(n, hp, wp, pp):
    """(1, Pp) f32 mask, 1.0 at real output pixels. Built on the VPU (no HBM/DMA).

    The +0.5 nudges keep floor() robust against f32 division rounding exactly
    at image / row boundaries (indices are exact integers in f32 here).
    """
    idx = jax.lax.broadcasted_iota(jnp.int32, (1, pp), 1).astype(jnp.float32)
    ipp = float(hp * wp)
    img = jnp.floor((idx + 0.5) / ipp)
    rem = idx - img * ipp
    row = jnp.floor((rem + 0.5) / float(wp))
    col = rem - row * float(wp)
    ok = ((idx < float(n * hp * wp))
          & (row >= PAD) & (row <= hp - 1 - PAD)
          & (col >= PAD) & (col <= wp - 1 - PAD))
    return ok.astype(jnp.float32)


def _conv3x3_lane_dense(act, w2d, *, wp, pp, per_tap):
    """3x3 'same' conv in the lane-dense (C, Pp) layout.

    act : (Cin, Pp) f32; halo slots (spatial padding + lane tail) must be zero.
    w2d : (Cout, 9*Cin) f32, tap-major / channel-minor.
    Tap shifts ride the XLU via pltpu.roll; MXU operands are bf16, accumulation f32.
    Returns (Cout, Pp) f32, valid at interior pixel slots.
    """
    cin = act.shape[0]
    cout = w2d.shape[0]
    w_b = w2d.astype(jnp.bfloat16)
    offs = [(kh - PAD) * wp + (kw - PAD)
            for kh in range(KSIZE) for kw in range(KSIZE)]

    if per_tap:
        # Large Cout: K = Cout already fills the MXU; avoid the 9*Cout*Pp im2col.
        acc = jnp.zeros((cout, pp), jnp.float32)
        for t, off in enumerate(offs):
            tap = act if off == 0 else pltpu.roll(act, (-off) % pp, axis=1)
            acc = acc + jnp.dot(w_b[:, t * cin:(t + 1) * cin],
                                tap.astype(jnp.bfloat16),
                                preferred_element_type=jnp.float32)
        return acc

    taps = [act if off == 0 else pltpu.roll(act, (-off) % pp, axis=1)
            for off in offs]
    patches = jnp.concatenate(taps, axis=0)          # (9*Cin, Pp), 8-row aligned
    return jnp.dot(w_b, patches.astype(jnp.bfloat16),
                   preferred_element_type=jnp.float32)


def _bn_relu(y, gamma, beta, mask, count, *, rezero):
    """Training-mode BatchNorm (batch stats over interior pixels) + ReLU, f32.

    Stats in one pass (sum / sum-of-squares; fine at these magnitudes — switch
    to two-pass if activations grow).  Apply is folded to one affine:
    y*scale + shift.  `rezero` re-zeroes halo slots (needed before the next
    conv); the last stage skips it because the wrapper crops the halo.
    """
    ym = y * mask
    inv_n = 1.0 / count
    mean = jnp.sum(ym, axis=1, keepdims=True) * inv_n           # (Cout, 1)
    var = jnp.sum(ym * y, axis=1, keepdims=True) * inv_n - mean * mean
    scale = jax.lax.rsqrt(var + BN_EPS) * gamma                 # (Cout, 1)
    shift = beta - mean * scale
    out = jnp.maximum(y * scale + shift, 0.0)
    return out * mask if rezero else out


def double_conv_kernel(x_ref, w1_ref, g1_ref, b1_ref, w2_ref, g2_ref, b2_ref,
                       o_ref, *, n, hp, wp, pp, count, per_tap2):
    mask = _interior_mask(n, hp, wp, pp)                        # (1, Pp)

    y1 = _conv3x3_lane_dense(x_ref[...], w1_ref[...], wp=wp, pp=pp, per_tap=False)
    a1 = _bn_relu(y1, g1_ref[...], b1_ref[...], mask, count, rezero=True)

    y2 = _conv3x3_lane_dense(a1, w2_ref[...], wp=wp, pp=pp, per_tap=per_tap2)
    o_ref[...] = _bn_relu(y2, g2_ref[...], b2_ref[...], mask, count, rezero=False)


def _repack_weight(wt):
    """PyTorch OIHW (Cout, Cin, KH, KW) -> (Cout, KH*KW*Cin), tap-major."""
    co, ci, kh, kw = wt.shape
    return jnp.transpose(wt, (0, 2, 3, 1)).reshape(co, kh * kw * ci)


def pack_params(params):
    """One-time weight repack, kept OUTSIDE the jit hot path."""
    cout, cin = params["w1"].shape[0], params["w1"].shape[1]
    assert cout % SUBLANES == 0, "out_plane must be a multiple of 8"
    cin_pad = _round_up(cin, SUBLANES)
    w1 = jnp.pad(params["w1"], ((0, 0), (0, cin_pad - cin), (0, 0), (0, 0)))
    return dict(
        w1=_repack_weight(w1),                       # (Cout, 9*cin_pad)
        w2=_repack_weight(params["w2"]),             # (Cout, 9*Cout)
        g1=params["g1"].reshape(cout, 1), b1=params["b1"].reshape(cout, 1),
        g2=params["g2"].reshape(cout, 1), b2=params["b2"].reshape(cout, 1),
    )


@jax.jit
def double_conv(x_nchw, packed):
    """double_conv forward.  x_nchw: (N, Cin, H, W) f32 -> (N, Cout, H, W) f32."""
    n, cin, h, w = x_nchw.shape
    cout = packed["w1"].shape[0]
    cin_pad = packed["w1"].shape[1] // (KSIZE * KSIZE)
    hp, wp = h + 2 * PAD, w + 2 * PAD
    p = n * hp * wp
    pp = _round_up(p, LANES)

    # Boundary layout plumbing: NCHW -> (cin_pad, N, Hp, Wp) -> (cin_pad, Pp).
    xc = jnp.transpose(x_nchw, (1, 0, 2, 3))
    xc = jnp.pad(xc, ((0, cin_pad - cin), (0, 0), (PAD, PAD), (PAD, PAD)))
    xc = jnp.pad(xc.reshape(cin_pad, p), ((0, 0), (0, pp - p)))

    kern = functools.partial(double_conv_kernel, n=n, hp=hp, wp=wp, pp=pp,
                             count=float(n * h * w), per_tap2=(cout >= 128))

    flops = 2 * n * h * w * KSIZE * KSIZE * (cin_pad * cout + cout * cout)
    bytes_acc = 4 * (cin_pad * pp + cout * pp
                     + 9 * cin_pad * cout + 9 * cout * cout + 4 * cout)
    vmem_est = (4 * pp * (cin_pad + cout)                # in / out f32
                + 4 * pp * 9 * (cin_pad + cout)          # im2col transients
                + 4 * pp * cout * 6)                     # activations / temps
    vmem_limit = int(min(128 << 20, max(32 << 20, 2 * vmem_est)))

    vmem = pl.BlockSpec(memory_space=pltpu.MemorySpace.VMEM)
    out = pl.pallas_call(
        kern,
        out_shape=jax.ShapeDtypeStruct((cout, pp), jnp.float32),
        in_specs=[vmem] * 7,
        out_specs=vmem,
        compiler_params=pltpu.CompilerParams(vmem_limit_bytes=vmem_limit),
        cost_estimate=pl.CostEstimate(flops=flops, transcendentals=2 * cout,
                                      bytes_accessed=bytes_acc),
    )(xc,
      packed["w1"], packed["g1"], packed["b1"],
      packed["w2"], packed["g2"], packed["b2"])

    # Lane-dense slab -> (Cout, N, Hp, Wp) -> crop halo -> NCHW.
    out = out[:, :p].reshape(cout, n, hp, wp)[:, :, PAD:PAD + h, PAD:PAD + w]
    return jnp.transpose(out, (1, 0, 2, 3))


def init_params(key, in_plane, out_plane):
    """Parameters mirroring nn.Conv2d / nn.BatchNorm2d shapes (conv weight OIHW).
    Conv2d biases are omitted: training-mode BatchNorm cancels them exactly."""
    k1, k2, k3, k4, k5, k6 = jax.random.split(key, 6)
    return dict(
        w1=0.1 * jax.random.normal(k1, (out_plane, in_plane, KSIZE, KSIZE), jnp.float32),
        g1=1.0 + 0.1 * jax.random.normal(k2, (out_plane,), jnp.float32),
        b1=0.05 * jax.random.normal(k3, (out_plane,), jnp.float32),
        w2=0.1 * jax.random.normal(k4, (out_plane, out_plane, KSIZE, KSIZE), jnp.float32),
        g2=1.0 + 0.1 * jax.random.normal(k5, (out_plane,), jnp.float32),
        b2=0.05 * jax.random.normal(k6, (out_plane,), jnp.float32),
    )


def double_conv_ref(x, params):
    """Pure-JAX f32 reference (training-mode BN) for numerical sanity check."""
    def conv(z, wt):
        return jax.lax.conv_general_dilated(
            z, wt, window_strides=(1, 1), padding=((PAD, PAD), (PAD, PAD)),
            dimension_numbers=("NCHW", "OIHW", "NCHW"),
            precision=jax.lax.Precision.HIGHEST)

    def bn_relu(y, g, b):
        mean = jnp.mean(y, axis=(0, 2, 3), keepdims=True)
        var = jnp.mean(jnp.square(y - mean), axis=(0, 2, 3), keepdims=True)
        yn = (y - mean) * jax.lax.rsqrt(var + BN_EPS)
        return jnp.maximum(yn * g.reshape(1, -1, 1, 1) + b.reshape(1, -1, 1, 1), 0.0)

    y = bn_relu(conv(x, params["w1"]), params["g1"], params["b1"])
    return bn_relu(conv(y, params["w2"]), params["g2"], params["b2"])


if __name__ == "__main__":
    key = jax.random.PRNGKey(0)
    key, kx = jax.random.split(key)
    in_plane, out_plane = 4, 32
    x = jax.random.normal(kx, (2, in_plane, 16, 16), jnp.float32)   # NCHW, like PyTorch
    params = init_params(key, in_plane, out_plane)
    packed = pack_params(params)

    out = double_conv(x, packed)
    jax.block_until_ready(out)
    assert out.shape == (2, out_plane, 16, 16)
    assert bool(jnp.all(out >= 0.0))                  # final ReLU

    ref = double_conv_ref(x, params)
    max_err = float(jnp.max(jnp.abs(out - ref)))
    # Kernel uses bf16 MXU operands (f32 accumulation) per the perf review; the
    # residual vs. the f32 reference is bf16 operand rounding, well below 5e-2.
    assert max_err < 5e-2, f"max |err| vs reference = {max_err}"
    print("KERNEL_OK")
</pallas_src>

<mosaic_0001>
module attributes {stable_mosaic.version = 11 : i64} {
  func.func @double_conv_kernel(%arg0: memref<8x768xf32, #tpu.memory_space<vmem>>, %arg1: memref<32x72xf32, #tpu.memory_space<vmem>>, %arg2: memref<32x1xf32, #tpu.memory_space<vmem>>, %arg3: memref<32x1xf32, #tpu.memory_space<vmem>>, %arg4: memref<32x288xf32, #tpu.memory_space<vmem>>, %arg5: memref<32x1xf32, #tpu.memory_space<vmem>>, %arg6: memref<32x1xf32, #tpu.memory_space<vmem>>, %arg7: memref<32x768xf32, #tpu.memory_space<vmem>>) attributes {dimension_semantics = [], scalar_prefetch = 0 : i64, scratch_operands = 0 : i64, tpu.core_type = #tpu.core_type<tc>} {
    %0 = tpu.iota {dimensions = array<i32: 1>} : vector<1x768xi32>
    %1 = arith.sitofp %0 : vector<1x768xi32> to vector<1x768xf32>
    %cst = arith.constant 5.000000e-01 : f32
    %2 = vector.broadcast %cst : f32 to vector<1x768xf32>
    %3 = arith.addf %1, %2 : vector<1x768xf32>
    %cst_0 = arith.constant 3.240000e+02 : f32
    %4 = vector.broadcast %cst_0 : f32 to vector<1x768xf32>
    %5 = arith.divf %3, %4 : vector<1x768xf32>
    %6 = math.floor %5 : vector<1x768xf32>
    %cst_1 = arith.constant 3.240000e+02 : f32
    %7 = vector.broadcast %cst_1 : f32 to vector<1x768xf32>
    %8 = arith.mulf %6, %7 : vector<1x768xf32>
    %9 = arith.subf %1, %8 : vector<1x768xf32>
    %cst_2 = arith.constant 5.000000e-01 : f32
    %10 = vector.broadcast %cst_2 : f32 to vector<1x768xf32>
    %11 = arith.addf %9, %10 : vector<1x768xf32>
    %cst_3 = arith.constant 1.800000e+01 : f32
    %12 = vector.broadcast %cst_3 : f32 to vector<1x768xf32>
    %13 = arith.divf %11, %12 : vector<1x768xf32>
    %14 = math.floor %13 : vector<1x768xf32>
    %cst_4 = arith.constant 1.800000e+01 : f32
    %15 = vector.broadcast %cst_4 : f32 to vector<1x768xf32>
    %16 = arith.mulf %14, %15 : vector<1x768xf32>
    %17 = arith.subf %9, %16 : vector<1x768xf32>
    %cst_5 = arith.constant 6.480000e+02 : f32
    %18 = vector.broadcast %cst_5 : f32 to vector<1x768xf32>
    %19 = arith.cmpf olt, %1, %18 : vector<1x768xf32>
    %cst_6 = arith.constant 1.000000e+00 : f32
    %20 = vector.broadcast %cst_6 : f32 to vector<1x768xf32>
    %21 = arith.cmpf oge, %14, %20 : vector<1x768xf32>
    %22 = arith.andi %19, %21 : vector<1x768xi1>
    %cst_7 = arith.constant 1.600000e+01 : f32
    %23 = vector.broadcast %cst_7 : f32 to vector<1x768xf32>
    %24 = arith.cmpf ole, %14, %23 : vector<1x768xf32>
    %25 = arith.andi %22, %24 : vector<1x768xi1>
    %cst_8 = arith.constant 1.000000e+00 : f32
    %26 = vector.broadcast %cst_8 : f32 to vector<1x768xf32>
    %27 = arith.cmpf oge, %17, %26 : vector<1x768xf32>
    %28 = arith.andi %25, %27 : vector<1x768xi1>
    %cst_9 = arith.constant 1.600000e+01 : f32
    %29 = vector.broadcast %cst_9 : f32 to vector<1x768xf32>
    %30 = arith.cmpf ole, %17, %29 : vector<1x768xf32>
    %31 = arith.andi %28, %30 : vector<1x768xi1>
    %32 = arith.extui %31 : vector<1x768xi1> to vector<1x768xi32>
    %33 = arith.sitofp %32 : vector<1x768xi32> to vector<1x768xf32>
    %c0 = arith.constant 0 : index
    %c0_10 = arith.constant 0 : index
    %34 = vector.load %arg0[%c0, %c0_10] : memref<8x768xf32, #tpu.memory_space<vmem>>, vector<8x768xf32>
    %c0_11 = arith.constant 0 : index
    %c0_12 = arith.constant 0 : index
    %35 = vector.load %arg1[%c0_11, %c0_12] : memref<32x72xf32, #tpu.memory_space<vmem>>, vector<32x72xf32>
    %36 = arith.truncf %35 : vector<32x72xf32> to vector<32x72xbf16>
    %c19_i32 = arith.constant 19 : i32
    %37 = tpu.dynamic_rotate %34 by %c19_i32 dim 1 : vector<8x768xf32>, i32 -> vector<8x768xf32>
    %c18_i32 = arith.constant 18 : i32
    %38 = tpu.dynamic_rotate %34 by %c18_i32 dim 1 : vector<8x768xf32>, i32 -> vector<8x768xf32>
    %c17_i32 = arith.constant 17 : i32
    %39 = tpu.dynamic_rotate %34 by %c17_i32 dim 1 : vector<8x768xf32>, i32 -> vector<8x768xf32>
    %c1_i32 = arith.constant 1 : i32
    %40 = tpu.dynamic_rotate %34 by %c1_i32 dim 1 : vector<8x768xf32>, i32 -> vector<8x768xf32>
    %c767_i32 = arith.constant 767 : i32
    %41 = tpu.dynamic_rotate %34 by %c767_i32 dim 1 : vector<8x768xf32>, i32 -> vector<8x768xf32>
    %c751_i32 = arith.constant 751 : i32
    %42 = tpu.dynamic_rotate %34 by %c751_i32 dim 1 : vector<8x768xf32>, i32 -> vector<8x768xf32>
    %c750_i32 = arith.constant 750 : i32
    %43 = tpu.dynamic_rotate %34 by %c750_i32 dim 1 : vector<8x768xf32>, i32 -> vector<8x768xf32>
    %c749_i32 = arith.constant 749 : i32
    %44 = tpu.dynamic_rotate %34 by %c749_i32 dim 1 : vector<8x768xf32>, i32 -> vector<8x768xf32>
    %45 = tpu.concatenate %37, %38, %39, %40, %34, %41, %42, %43, %44 in 0 : vector<8x768xf32>, vector<8x768xf32>, vector<8x768xf32>, vector<8x768xf32>, vector<8x768xf32>, vector<8x768xf32>, vector<8x768xf32>, vector<8x768xf32>, vector<8x768xf32> -> vector<72x768xf32>
    %46 = arith.truncf %45 : vector<72x768xf32> to vector<72x768xbf16>
    %cst_13 = arith.constant dense<0.000000e+00> : vector<32x768xf32>
    %47 = tpu.matmul %36, %46, %cst_13 {dimension_numbers = #tpu.dot_dimension_numbers<[1], [0], [0], [1], [0, 0, 1, 1], [], []>} : vector<32x72xbf16>, vector<72x768xbf16>, vector<32x768xf32> -> vector<32x768xf32>
    %c0_14 = arith.constant 0 : index
    %c0_15 = arith.constant 0 : index
    %48 = vector.load %arg2[%c0_14, %c0_15] : memref<32x1xf32, #tpu.memory_space<vmem>>, vector<32x1xf32>
    %c0_16 = arith.constant 0 : index
    %c0_17 = arith.constant 0 : index
    %49 = vector.load %arg3[%c0_16, %c0_17] : memref<32x1xf32, #tpu.memory_space<vmem>>, vector<32x1xf32>
    %50 = vector.broadcast %33 : vector<1x768xf32> to vector<32x768xf32>
    %51 = arith.mulf %47, %50 : vector<32x768xf32>
    %cst_18 = arith.constant dense<0.000000e+00> : vector<32xf32>
    %52 = vector.multi_reduction <add>, %51, %cst_18 [1] : vector<32x768xf32> to vector<32xf32>
    %53 = vector.shape_cast %52 : vector<32xf32> to vector<32x1xf32>
    %cst_19 = arith.constant 0.001953125 : f32
    %54 = vector.broadcast %cst_19 : f32 to vector<32x1xf32>
    %55 = arith.mulf %53, %54 : vector<32x1xf32>
    %56 = arith.mulf %51, %47 : vector<32x768xf32>
    %cst_20 = arith.constant dense<0.000000e+00> : vector<32xf32>
    %57 = vector.multi_reduction <add>, %56, %cst_20 [1] : vector<32x768xf32> to vector<32xf32>
    %58 = vector.shape_cast %57 : vector<32xf32> to vector<32x1xf32>
    %cst_21 = arith.constant 0.001953125 : f32
    %59 = vector.broadcast %cst_21 : f32 to vector<32x1xf32>
    %60 = arith.mulf %58, %59 : vector<32x1xf32>
    %61 = arith.mulf %55, %55 : vector<32x1xf32>
    %62 = arith.subf %60, %61 : vector<32x1xf32>
    %cst_22 = arith.constant 9.99999974E-6 : f32
    %63 = vector.broadcast %cst_22 : f32 to vector<32x1xf32>
    %64 = arith.addf %62, %63 : vector<32x1xf32>
    %65 = math.rsqrt %64 : vector<32x1xf32>
    %66 = arith.mulf %65, %48 : vector<32x1xf32>
    %67 = arith.mulf %55, %66 : vector<32x1xf32>
    %68 = arith.subf %49, %67 : vector<32x1xf32>
    %69 = vector.broadcast %66 : vector<32x1xf32> to vector<32x768xf32>
    %70 = arith.mulf %47, %69 : vector<32x768xf32>
    %71 = vector.broadcast %68 : vector<32x1xf32> to vector<32x768xf32>
    %72 = arith.addf %70, %71 : vector<32x768xf32>
    %cst_23 = arith.constant 0.000000e+00 : f32
    %73 = vector.broadcast %cst_23 : f32 to vector<32x768xf32>
    %74 = arith.maximumf %72, %73 : vector<32x768xf32>
    %75 = vector.broadcast %33 : vector<1x768xf32> to vector<32x768xf32>
    %76 = arith.mulf %74, %75 : vector<32x768xf32>
    %c0_24 = arith.constant 0 : index
    %c0_25 = arith.constant 0 : index
    %77 = vector.load %arg4[%c0_24, %c0_25] : memref<32x288xf32, #tpu.memory_space<vmem>>, vector<32x288xf32>
    %78 = arith.truncf %77 : vector<32x288xf32> to vector<32x288xbf16>
    %c19_i32_26 = arith.constant 19 : i32
    %79 = tpu.dynamic_rotate %76 by %c19_i32_26 dim 1 : vector<32x768xf32>, i32 -> vector<32x768xf32>
    %c18_i32_27 = arith.constant 18 : i32
    %80 = tpu.dynamic_rotate %76 by %c18_i32_27 dim 1 : vector<32x768xf32>, i32 -> vector<32x768xf32>
    %c17_i32_28 = arith.constant 17 : i32
    %81 = tpu.dynamic_rotate %76 by %c17_i32_28 dim 1 : vector<32x768xf32>, i32 -> vector<32x768xf32>
    %c1_i32_29 = arith.constant 1 : i32
    %82 = tpu.dynamic_rotate %76 by %c1_i32_29 dim 1 : vector<32x768xf32>, i32 -> vector<32x768xf32>
    %c767_i32_30 = arith.constant 767 : i32
    %83 = tpu.dynamic_rotate %76 by %c767_i32_30 dim 1 : vector<32x768xf32>, i32 -> vector<32x768xf32>
    %c751_i32_31 = arith.constant 751 : i32
    %84 = tpu.dynamic_rotate %76 by %c751_i32_31 dim 1 : vector<32x768xf32>, i32 -> vector<32x768xf32>
    %c750_i32_32 = arith.constant 750 : i32
    %85 = tpu.dynamic_rotate %76 by %c750_i32_32 dim 1 : vector<32x768xf32>, i32 -> vector<32x768xf32>
    %c749_i32_33 = arith.constant 749 : i32
    %86 = tpu.dynamic_rotate %76 by %c749_i32_33 dim 1 : vector<32x768xf32>, i32 -> vector<32x768xf32>
    %87 = tpu.concatenate %79, %80, %81, %82, %76, %83, %84, %85, %86 in 0 : vector<32x768xf32>, vector<32x768xf32>, vector<32x768xf32>, vector<32x768xf32>, vector<32x768xf32>, vector<32x768xf32>, vector<32x768xf32>, vector<32x768xf32>, vector<32x768xf32> -> vector<288x768xf32>
    %88 = arith.truncf %87 : vector<288x768xf32> to vector<288x768xbf16>
    %cst_34 = arith.constant dense<0.000000e+00> : vector<32x768xf32>
    %89 = tpu.matmul %78, %88, %cst_34 {dimension_numbers = #tpu.dot_dimension_numbers<[1], [0], [0], [1], [0, 0, 1, 1], [], []>} : vector<32x288xbf16>, vector<288x768xbf16>, vector<32x768xf32> -> vector<32x768xf32>
    %c0_35 = arith.constant 0 : index
    %c0_36 = arith.constant 0 : index
    %90 = vector.load %arg5[%c0_35, %c0_36] : memref<32x1xf32, #tpu.memory_space<vmem>>, vector<32x1xf32>
    %c0_37 = arith.constant 0 : index
    %c0_38 = arith.constant 0 : index
    %91 = vector.load %arg6[%c0_37, %c0_38] : memref<32x1xf32, #tpu.memory_space<vmem>>, vector<32x1xf32>
    %92 = vector.broadcast %33 : vector<1x768xf32> to vector<32x768xf32>
    %93 = arith.mulf %89, %92 : vector<32x768xf32>
    %cst_39 = arith.constant dense<0.000000e+00> : vector<32xf32>
    %94 = vector.multi_reduction <add>, %93, %cst_39 [1] : vector<32x768xf32> to vector<32xf32>
    %95 = vector.shape_cast %94 : vector<32xf32> to vector<32x1xf32>
    %cst_40 = arith.constant 0.001953125 : f32
    %96 = vector.broadcast %cst_40 : f32 to vector<32x1xf32>
    %97 = arith.mulf %95, %96 : vector<32x1xf32>
    %98 = arith.mulf %93, %89 : vector<32x768xf32>
    %cst_41 = arith.constant dense<0.000000e+00> : vector<32xf32>
    %99 = vector.multi_reduction <add>, %98, %cst_41 [1] : vector<32x768xf32> to vector<32xf32>
    %100 = vector.shape_cast %99 : vector<32xf32> to vector<32x1xf32>
    %cst_42 = arith.constant 0.001953125 : f32
    %101 = vector.broadcast %cst_42 : f32 to vector<32x1xf32>
    %102 = arith.mulf %100, %101 : vector<32x1xf32>
    %103 = arith.mulf %97, %97 : vector<32x1xf32>
    %104 = arith.subf %102, %103 : vector<32x1xf32>
    %cst_43 = arith.constant 9.99999974E-6 : f32
    %105 = vector.broadcast %cst_43 : f32 to vector<32x1xf32>
    %106 = arith.addf %104, %105 : vector<32x1xf32>
    %107 = math.rsqrt %106 : vector<32x1xf32>
    %108 = arith.mulf %107, %90 : vector<32x1xf32>
    %109 = arith.mulf %97, %108 : vector<32x1xf32>
    %110 = arith.subf %91, %109 : vector<32x1xf32>
    %111 = vector.broadcast %108 : vector<32x1xf32> to vector<32x768xf32>
    %112 = arith.mulf %89, %111 : vector<32x768xf32>
    %113 = vector.broadcast %110 : vector<32x1xf32> to vector<32x768xf32>
    %114 = arith.addf %112, %113 : vector<32x768xf32>
    %cst_44 = arith.constant 0.000000e+00 : f32
    %115 = vector.broadcast %cst_44 : f32 to vector<32x768xf32>
    %116 = arith.maximumf %114, %115 : vector<32x768xf32>
    %c0_45 = arith.constant 0 : index
    %c0_46 = arith.constant 0 : index
    %117 = vector.load %arg7[%c0_45, %c0_46] : memref<32x768xf32, #tpu.memory_space<vmem>>, vector<32x768xf32>
    tpu.vector_store %arg7[%c0_45, %c0_46], %116 {strides = array<i32>} : memref<32x768xf32, #tpu.memory_space<vmem>>, vector<32x768xf32>,
    return
  }
}

</mosaic_0001>

<bundles_post_ra>
// kernel: double_conv.1
= control target key start
LH: loop header
LB: loop body
LE: loop exit
PB: predicated region body
PF: predicated region fallthrough
CT: control target
= control target key end

     0   :  { %s2775_s9 = smov 111   ;;  %s2776_s10 = smov 109   ;;  %v5363_v12 = vmov 0   ;;  %v27_v13 = vlaneseq  ;;  %vm369_vm3 = vcmask 1043456   ;;  %vm362_vm9 = vcmask 588800   ;;  %s5347_s0 = inlined_call_operand.vmem [shape: f32[8,768], index: 0, kind: input, shape index: {}]   ;;  %s5348_s1 = inlined_call_operand.vmem [shape: f32[32,72], index: 1, kind: input, shape index: {}]   ;;  %s5349_s2 = inlined_call_operand.vmem [shape: f32[32,1], index: 2, kind: input, shape index: {}]   ;;  %s5350_s3 = inlined_call_operand.vmem [shape: f32[32,1], index: 3, kind: input, shape index: {}]   ;;  %s5351_s4 = inlined_call_operand.vmem [shape: f32[32,288], index: 4, kind: input, shape index: {}]   ;;  %s5352_s5 = inlined_call_operand.vmem [shape: f32[32,1], index: 5, kind: input, shape index: {}]   ;;  %s5353_s6 = inlined_call_operand.vmem [shape: f32[32,1], index: 6, kind: input, shape index: {}]   ;;  %s5354_s7 = inlined_call_operand.vmem [shape: f32[32,768], index: 7, kind: output, shape index: {}]  }
   0x1   :  { %v2828_v0 = vld [vmem:[%s5347_s0 + $0x8] sm:$0xff]  ;;  %v2833_v1 = vld [vmem:[%s5347_s0 + $0x10] sm:$0xff]  ;;  %v2838_v2 = vld [vmem:[%s5347_s0] sm:$0xff]  ;;  %s2777_s11 = smov 110   ;;  %s2778_s12 = smov 127   ;;  %420 = vmatprep.mubr.bf16.mxu0 %v5363_v12  ;;  %473 = vmatprep.mubr.bf16.mxu1 %v5363_v12 }
   0x2   :  { %v2187_v3 = vpack.i.bf16 %v2833_v1, %v2828_v0  ;;  %v2177_v4 = vpack.i.bf16 %v2828_v0, %v2838_v2  ;;  %v2847_v5 = vld [vmem:[%s5347_s0 + $0x18] sm:$0xff]  ;;  %v2864_v8 = vld [vmem:[%s5347_s0 + $0x28] sm:$0xff]  ;;  %s2779_s15 = smov 1   ;;  %s2780_s16 = smov 17   ;;  %v2876_v10 = vld [vmem:[%s5347_s0 + $0x20] sm:$0xff]  ;;  %2278 = vset.pattern.permute.xlu0 %v5363_v12  ;;  %2277 = vset.pattern.permute.xlu1 %v5363_v12  ;;  %v2907_v14 = vand.u32 127, %v27_v13 }
   0x3   :  { %v2182_v6 = vpack.i.bf16 %v2847_v5, %v2833_v1  ;;  %v2202_v7 = vpack.i.bf16 %v2847_v5, %v2838_v2  ;;  %v2227_v9 = vpack.i.bf16 %v2833_v1, %v2864_v8  ;;  %s2781_s19 = smov 18   ;;  %s2782_s20 = smov 19   ;;  %v2242_v11 = vpack.i.bf16 %v2864_v8, %v2876_v10 }
   0x4   :  { %2188 = vrot.lane.b32.xlu1 %v2187_v3, %s2775_s9  ;;  %2178 = vrot.lane.b32.xlu0 %v2177_v4, %s2776_s10  ;;  %vm5355_vm0 = vcmp.lt.s32.totalorder %v2907_v14, 109  ;;  %vm5361_vm1 = vcmp.lt.s32.totalorder %v2907_v14, 110  ;;  %vm5359_vm2 = vcmp.lt.s32.totalorder %v2907_v14, 111  ;;  %vm5357_vm4 = vcmp.lt.s32.totalorder %v2907_v14, 127 }
   0x5   :  { %vm5362_vm5 = vcmp.lt.s32.totalorder %v2907_v14, 1  ;;  %vm5360_vm6 = vcmp.lt.s32.totalorder %v2907_v14, 17  ;;  %vm5356_vm7 = vcmp.lt.s32.totalorder %v2907_v14, 19  ;;  %vm5358_vm8 = vcmp.lt.s32.totalorder %v2907_v14, 18 }
   0x8   :  { %2193 = vrot.lane.b32.xlu1 %v2187_v3, %s2777_s11  ;;  %2183 = vrot.lane.b32.xlu0 %v2182_v6, %s2776_s10 }
   0xc   :  { %2203 = vrot.lane.b32.xlu1 %v2202_v7, %s2777_s11  ;;  %2198 = vrot.lane.b32.xlu0 %v2202_v7, %s2775_s9 }
  0x10   :  { %2213 = vrot.lane.b32.xlu1 %v2202_v7, %s2778_s12  ;;  %2208 = vrot.lane.b32.xlu0 %v2187_v3, %s2778_s12 }
  0x14   :  { %2223 = vrot.lane.b32.xlu1 %v2177_v4, %s2779_s15  ;;  %2218 = vrot.lane.b32.xlu0 %v2177_v4, %s2780_s16 }
  0x18   :  { %247 = vrot.lane.b32.xlu1 %v2864_v8, %s2779_s15  ;;  %2228 = vrot.lane.b32.xlu0 %v2227_v9, %s2780_s16 }
  0x1c   :  { %2238 = vrot.lane.b32.xlu1 %v2177_v4, %s2781_s19  ;;  %2233 = vrot.lane.b32.xlu0 %v2177_v4, %s2782_s20 }
  0x20   :  { %190 = vrot.lane.b32.xlu1 %v2864_v8, %s2782_s20  ;;  %2243 = vrot.lane.b32.xlu0 %v2242_v11, %s2776_s10 }
  0x24   :  { %2248 = vrot.lane.b32.xlu1 %v2242_v11, %s2775_s9  ;;  %209 = vrot.lane.b32.xlu0 %v2864_v8, %s2781_s19 }
  0x28   :  { %2258 = vrot.lane.b32.xlu1 %v2242_v11, %s2778_s12  ;;  %2253 = vrot.lane.b32.xlu0 %v2242_v11, %s2777_s11 }
  0x2c   :  { %2263 = vrot.lane.b32.xlu1 %v2182_v6, %s2779_s15  ;;  %224 = vrot.lane.b32.xlu0 %v2847_v5, %s2780_s16 }
  0x30   :  { %2273 = vrot.lane.b32.xlu1 %v2182_v6, %s2781_s19  ;;  %2268 = vrot.lane.b32.xlu0 %v2182_v6, %s2782_s20 }
  0x34   :  { %245 = vrot.lane.b32.xlu1 %v2876_v10, %s2779_s15  ;;  %226 = vrot.lane.b32.xlu0 %v2876_v10, %s2780_s16 }
  0x38   :  { %207 = vrot.lane.b32.xlu1 %v2876_v10, %s2781_s19  ;;  %188 = vrot.lane.b32.xlu0 %v2876_v10, %s2782_s20 }
  0x76   :  { %v2909_v15 = vpop.permute.xlu1 %2188  ;;  %v2911_v16 = vpop.permute.xlu0 %2178 }
  0x77   :  { %v2181_v17 = vunpack.i.h.bf16 %v2911_v16  ;;  %v2180_v18 = vunpack.i.l.bf16 %v2911_v16  ;;  %v2191_v20 = vunpack.i.h.bf16 %v2909_v15  ;;  %v2190_v23 = vunpack.i.l.bf16 %v2909_v15 }
  0x79   :  { %v330_v19 = vsel %vm5355_vm0, %v2180_v18, %v2181_v17  ;;  %v291_v35 = vsel %vm5359_vm2, %v2190_v23, %v2191_v20 }
  0x7a   :  { %v2921_v21 = vpop.permute.xlu1 %2193  ;;  %v2923_v22 = vpop.permute.xlu0 %2183  ;;  %v356_v27 = vpack.c.bf16 %v330_v19, %v330_v19 }
  0x7b   :  { %v2196_v24 = vunpack.i.h.bf16 %v2921_v21  ;;  %v2195_v25 = vunpack.i.l.bf16 %v2921_v21  ;;  %v2185_v26 = vunpack.i.l.bf16 %v2923_v22  ;;  %v2186_v62 = vunpack.i.h.bf16 %v2923_v22 }
  0x7c   :  { %v371_v36 = vsel %vm369_vm3, %v356_v27, 0 }
  0x7d   :  { %v329_v28 = vsel %vm5355_vm0, %v2181_v17, %v2185_v26  ;;  %v310_v29 = vsel %vm5361_vm1, %v2195_v25, %v2196_v24  ;;  %v328_v19 = vsel %vm5355_vm0, %v2185_v26, %v2186_v62 }
  0x7e   :  { %v2939_v30 = vpop.permute.xlu1 %2203  ;;  %v2941_v31 = vpop.permute.xlu0 %2198  ;;  %v357_v32 = vpack.c.bf16 %v329_v28, %v329_v28  ;;  %v351_v37 = vpack.c.bf16 %v310_v29, %v291_v35 }
  0x7f   :  { %v2205_v33 = vunpack.i.l.bf16 %v2939_v30  ;;  %v2200_v34 = vunpack.i.l.bf16 %v2941_v31  ;;  %v2201_v22 = vunpack.i.h.bf16 %v2941_v31  ;;  %v176_v31 = vld [vmem:[%s5348_s1 + $0x10] sm:$0xff] }
  0x80   :  { %2152 = vmatprep.subr.msk.bf16.mxu0 %vm369_vm3, %v357_v32  ;;  %v358_v32 = vpack.c.bf16 %v328_v19, %v328_v19 }
  0x81   :  { %395 = vmatpush1.bf16.msra.mxu0 %v371_v36  ;;  %v292_v38 = vsel %vm5359_vm2, %v2200_v34, %v2190_v23  ;;  %v311_v39 = vsel %vm5361_vm1, %v2205_v33, %v2195_v25 }
  0x82   :  { %v2959_v40 = vpop.permute.xlu1 %2213  ;;  %v2961_v41 = vpop.permute.xlu0 %2208  ;;  %396 = vmatprep.subr.bf16.mxu0 %v351_v37  ;;  %v350_v42 = vpack.c.bf16 %v311_v39, %v292_v38  ;;  %v2206_v37 = vunpack.i.h.bf16 %v2939_v30  ;;  %v177_v30 = vld [vmem:[%s5348_s1 + $0x18] sm:$0xff] }
  0x83   :  { %v2215_v43 = vunpack.i.l.bf16 %v2959_v40  ;;  %v2211_v44 = vunpack.i.h.bf16 %v2961_v41  ;;  %v2210_v45 = vunpack.i.l.bf16 %v2961_v41 }
  0x85   :  { %397 = vmatpush1.bf16.msra.mxu0 %v350_v42  ;;  %v272_v46 = vsel %vm5357_vm4, %v2210_v45, %v2211_v44  ;;  %v273_v47 = vsel %vm5357_vm4, %v2215_v43, %v2210_v45  ;;  %v174_v45 = vld [vmem:[%s5348_s1] sm:$0xff] }
  0x86   :  { %v2975_v48 = vpop.permute.xlu1 %2223  ;;  %v2977_v49 = vpop.permute.xlu0 %2218  ;;  %v345_v50 = vpack.c.bf16 %v272_v46, %v2828_v0  ;;  %v344_v51 = vpack.c.bf16 %v273_v47, %v2838_v2  ;;  %v175_v46 = vld [vmem:[%s5348_s1 + $0x8] sm:$0xff] }
  0x87   :  { %v2226_v52 = vunpack.i.h.bf16 %v2975_v48  ;;  %v2225_v53 = vunpack.i.l.bf16 %v2975_v48  ;;  %v2221_v54 = vunpack.i.h.bf16 %v2977_v49  ;;  %v2220_v55 = vunpack.i.l.bf16 %v2977_v49 }
  0x88   :  { %398 = vmatprep.subr.bf16.mxu0 %v345_v50 }
  0x89   :  { %399 = vmatpush1.bf16.msra.mxu0 %v344_v51  ;;  %v235_v56 = vsel %vm5360_vm6, %v2220_v55, %v2221_v54  ;;  %v254_v57 = vsel %vm5362_vm5, %v2225_v53, %v2226_v52 }
  0x8a   :  { %v2995_v58 = vpop.permute.xlu1 %247  ;;  %v2997_v59 = vpop.permute.xlu0 %2228  ;;  %v339_v60 = vpack.c.bf16 %v254_v57, %v235_v56  ;;  %v3058_v57 = vpack.c.bf16 %v175_v46, %v174_v45 }
  0x8b   :  { %v2230_v61 = vunpack.i.l.bf16 %v2997_v59  ;;  %v255_v63 = vsel %vm5362_vm5, %v2995_v58, %v2225_v53 }
  0x8c   :  { %400 = vmatprep.subr.bf16.mxu0 %v339_v60 }
  0x8d   :  { %v236_v0 = vsel %vm5360_vm6, %v2230_v61, %v2220_v55 }
  0x8e   :  { %v3008_v2 = vpop.permute.xlu1 %2238  ;;  %v3010_v3 = vpop.permute.xlu0 %2233  ;;  %v338_v4 = vpack.c.bf16 %v255_v63, %v236_v0  ;;  %v290_v63 = vsel %vm5359_vm2, %v2191_v20, %v2201_v22  ;;  %v309_v0 = vsel %vm5361_vm1, %v2196_v24, %v2206_v37 }
  0x8f   :  { %v2241_v6 = vunpack.i.h.bf16 %v3008_v2  ;;  %v2240_v7 = vunpack.i.l.bf16 %v3008_v2  ;;  %v2236_v9 = vunpack.i.h.bf16 %v3010_v3  ;;  %v2235_v11 = vunpack.i.l.bf16 %v3010_v3 }
  0x90   :  { %401 = vmatpush1.bf16.msra.mxu0 %v338_v4  ;;  %v2216_v4 = vunpack.i.h.bf16 %v2959_v40 }
  0x91   :  { %v197_v13 = vsel %vm5356_vm7, %v2235_v11, %v2236_v9  ;;  %v216_v17 = vsel %vm5358_vm8, %v2240_v7, %v2241_v6 }
  0x92   :  { %v3030_v23 = vpop.permute.xlu1 %190  ;;  %v2244_v25 = vpop.permute.xlu0 %2243  ;;  %v333_v27 = vpack.c.bf16 %v216_v17, %v197_v13 }
  0x93   :  { %v2246_v28 = vunpack.i.h.bf16 %v2244_v25  ;;  %v2245_v29 = vunpack.i.l.bf16 %v2244_v25  ;;  %v198_v47 = vsel %vm5356_vm7, %v3030_v23, %v2235_v11 }
  0x94   :  { %402 = vmatprep.subr.bf16.mxu0 %v333_v27 }
  0x95   :  { %v327_v35 = vsel %vm5355_vm0, %v2186_v62, %v2245_v29  ;;  %v326_v36 = vsel %vm5355_vm0, %v2245_v29, %v2246_v28  ;;  %v331_v42 = vsel %vm5355_vm0, %v2246_v28, %v2180_v18  ;;  %v377_v18 = vsel %vm369_vm3, %v358_v32, 0 }
  0x96   :  { %v2249_v38 = vpop.permute.xlu1 %2248  ;;  %v3038_v26 = vpop.permute.xlu0 %209  ;;  %v359_v39 = vpack.c.bf16 %v327_v35, %v327_v35  ;;  %v360_v53 = vpack.c.bf16 %v326_v36, %v326_v36  ;;  %v361_v56 = vpack.c.bf16 %v331_v42, %v331_v42  ;;  %v352_v35 = vpack.c.bf16 %v309_v0, %v290_v63 }
  0x97   :  { %v217_v50 = vsel %vm5358_vm8, %v3038_v26, %v2240_v7  ;;  %v2250_v16 = vunpack.i.l.bf16 %v2249_v38  ;;  %v2251_v55 = vunpack.i.h.bf16 %v2249_v38  ;;  %v2231_v38 = vunpack.i.h.bf16 %v2997_v59 }
  0x98   :  { %2155 = vmatprep.subr.msk.bf16.mxu1 %vm369_vm3, %v359_v39  ;;  %v332_v51 = vpack.c.bf16 %v217_v50, %v198_v47  ;;  %v383_v19 = vsel %vm369_vm3, %v360_v53, 0  ;;  %v179_v47 = vpack.c.bf16 %v177_v30, %v176_v31  ;;  %v33_v31 = vadd.s32 640, %v2907_v14 }
  0x99   :  { %448 = vmatpush1.bf16.msra.mxu1 %v377_v18  ;;  %v289_v15 = vsel %vm5359_vm2, %v2201_v22, %v2250_v16  ;;  %v293_v24 = vsel %vm5359_vm2, %v2251_v55, %v2200_v34  ;;  %v271_v22 = vsel %vm5357_vm4, %v2211_v44, %v2216_v4 }
  0x9a   :  { %v2259_v60 = vpop.permute.xlu1 %2258  ;;  %v2254_v62 = vpop.permute.xlu0 %2253  ;;  %403 = vmatpush1.bf16.msra.mxu0 %v332_v51  ;;  %v346_v40 = vpack.c.bf16 %v271_v22, %v2833_v1 }
  0x9b   :  { %v2260_v7 = vunpack.i.l.bf16 %v2259_v60  ;;  %v2256_v11 = vunpack.i.h.bf16 %v2254_v62  ;;  %v2255_v13 = vunpack.i.l.bf16 %v2254_v62  ;;  %2158 = vmatprep.subr.msk.bf16.mxu0 %vm369_vm3, %v361_v56  ;;  %v2261_v17 = vunpack.i.h.bf16 %v2259_v60 }
  0x9c   :  { %v234_v60 = vsel %vm5360_vm6, %v2221_v54, %v2231_v38 }
  0x9d   :  { %v307_v20 = vsel %vm5361_vm1, %v2255_v13, %v2256_v11  ;;  %2153 = vmatmul.mubr.msk.bf16.vlgmr.msra.gmra.mxu0 %vm362_vm9, %v3058_v57  ;;  %v308_v21 = vsel %vm5361_vm1, %v2206_v37, %v2255_v13  ;;  %v312_v25 = vsel %vm5361_vm1, %v2256_v11, %v2205_v33  ;;  %v270_v36 = vsel %vm5357_vm4, %v2216_v4, %v2260_v7 }
  0x9e   :  { %v2264_v27 = vpop.permute.xlu1 %2263  ;;  %v225_v28 = vpop.permute.xlu0 %224  ;;  %501 = vmatpush1.bf16.msra.mxu0 %v383_v19  ;;  %v353_v29 = vpack.c.bf16 %v308_v21, %v289_v15  ;;  %v355_v32 = vpack.c.bf16 %v312_v25, %v293_v24  ;;  %v288_v33 = vsel %vm5359_vm2, %v2250_v16, %v2251_v55  ;;  %430 = vmatprep.mubr.bf16.mxu0 %v5363_v12 }
  0x9f   :  { %v2266_v34 = vunpack.i.h.bf16 %v2264_v27  ;;  %v2265_v37 = vunpack.i.l.bf16 %v2264_v27  ;;  %v347_v39 = vpack.c.bf16 %v270_v36, %v2847_v5  ;;  %v354_v42 = vpack.c.bf16 %v307_v20, %v288_v33 }
  0xa0   :  { %449 = vmatprep.subr.bf16.mxu1 %v353_v29  ;;  %502 = vmatprep.subr.bf16.mxu0 %v355_v32  ;;  %v274_v45 = vsel %vm5357_vm4, %v2261_v17, %v2215_v43  ;;  %v269_v46 = vsel %vm5357_vm4, %v2260_v7, %v2261_v17  ;;  %v233_v50 = vsel %vm5360_vm6, %v2231_v38, %v225_v28  ;;  %v34_v20 = vcvt.s32.f32 %v2907_v14 }
  0xa1   :  { %450 = vmatpush1.bf16.msra.mxu1 %v352_v35  ;;  %v349_v41 = vpack.c.bf16 %v274_v45, %v2864_v8  ;;  %v252_v44 = vsel %vm5362_vm5, %v2265_v37, %v2266_v34  ;;  %v253_v43 = vsel %vm5362_vm5, %v2226_v52, %v2265_v37  ;;  %v348_v56 = vpack.c.bf16 %v269_v46, %v2876_v10 }
  0xa2   :  { %v2274_v5 = vpop.permute.xlu1 %2273  ;;  %v2269_v16 = vpop.permute.xlu0 %2268  ;;  %451 = vmatprep.subr.bf16.mxu1 %v347_v39  ;;  %503 = vmatpush1.bf16.msra.mxu0 %v354_v42  ;;  %v341_v55 = vpack.c.bf16 %v252_v44, %v233_v50  ;;  %v340_v1 = vpack.c.bf16 %v253_v43, %v234_v60  ;;  %v40_v25 = vadd.f32 0.5, %v34_v20  ;;  %v31_v29 = vadd.s32 384, %v2907_v14 }
  0xa3   :  { %v2276_v18 = vunpack.i.h.bf16 %v2274_v5  ;;  %v2275_v8 = vunpack.i.l.bf16 %v2274_v5  ;;  %v2271_v51 = vunpack.i.h.bf16 %v2269_v16  ;;  %v2270_v53 = vunpack.i.l.bf16 %v2269_v16  ;;  %504 = vmatprep.subr.bf16.mxu0 %v349_v41 }
  0xa4   :  { %v32_v35 = vadd.s32 512, %v2907_v14  ;;  %v3181_v33 = vcvt.s32.f32 %v31_v29  ;;  %v3185_v38 = vcvt.s32.f32 %v33_v31  ;;  %vm102_vm10 = vcmp.lt.f32.partialorder %v34_v20, 648.0 }
  0xa5   :  { %2154 = vmatmul.mubr.msk.bf16.gmra.mxu0 %vm362_vm9, %v179_v47  ;;  %452 = vmatpush1.bf16.msra.mxu1 %v346_v40  ;;  %v195_v48 = vsel %vm5356_vm7, %v2270_v53, %v2271_v51  ;;  %v214_v52 = vsel %vm5358_vm8, %v2275_v8, %v2276_v18  ;;  %v196_v49 = vsel %vm5356_vm7, %v2236_v9, %v2270_v53 }
  0xa6   :  { %v246_v62 = vpop.permute.xlu1 %245  ;;  %v227_v63 = vpop.permute.xlu0 %226  ;;  %453 = vmatprep.subr.bf16.mxu1 %v341_v55  ;;  %505 = vmatpush1.bf16.msra.mxu0 %v348_v56  ;;  %v335_v10 = vpack.c.bf16 %v214_v52, %v195_v48  ;;  %v215_v54 = vsel %vm5358_vm8, %v2241_v6, %v2275_v8  ;;  %v3183_v37 = vcvt.s32.f32 %v32_v35  ;;  %v43_v42 = vadd.f32 0.5, %v3181_v33 }
  0xa7   :  { %v250_v0 = vsel %vm5362_vm5, %v246_v62, %v2995_v58  ;;  %v251_v4 = vsel %vm5362_vm5, %v2266_v34, %v246_v62  ;;  %v231_v3 = vsel %vm5360_vm6, %v227_v63, %v2230_v61  ;;  %v232_v9 = vsel %vm5360_vm6, %v225_v28, %v227_v63  ;;  %526 = vmatprep.mubr.bf16.mxu0 %v5363_v12 }
  0xa8   :  { %v342_v2 = vpack.c.bf16 %v251_v4, %v232_v9  ;;  %v343_v7 = vpack.c.bf16 %v250_v0, %v231_v3  ;;  %v334_v58 = vpack.c.bf16 %v215_v54, %v196_v49  ;;  %v47_v28 = vmul.f32 0.0030864198, %v40_v25 }
  0xa9   :  { %454 = vmatpush1.bf16.msra.mxu1 %v340_v1  ;;  %v44_v46 = vadd.f32 0.5, %v3183_v37  ;;  %v50_v50 = vmul.f32 0.0030864198, %v43_v42 }
  0xaa   :  { %v208_v6 = vpop.permute.xlu1 %207  ;;  %v189_v11 = vpop.permute.xlu0 %188  ;;  %455 = vmatprep.subr.bf16.mxu1 %v335_v10  ;;  %506 = vmatprep.subr.bf16.mxu0 %v343_v7  ;;  %v53_v30 = vfloor.f32 %v47_v28 }
  0xab   :  { %v212_v59 = vsel %vm5358_vm8, %v208_v6, %v3038_v26  ;;  %v213_v61 = vsel %vm5358_vm8, %v2276_v18, %v208_v6  ;;  %v193_v13 = vsel %vm5356_vm7, %v189_v11, %v3030_v23  ;;  %v194_v17 = vsel %vm5356_vm7, %v2271_v51, %v189_v11  ;;  %507 = vmatpush1.bf16.msra.mxu0 %v342_v2 }
  0xac   :  { %v336_v19 = vpack.c.bf16 %v213_v61, %v194_v17  ;;  %v337_v15 = vpack.c.bf16 %v212_v59, %v193_v13  ;;  %v29_v23 = vadd.s32 128, %v2907_v14  ;;  %v30_v26 = vadd.s32 256, %v2907_v14 }
  0xad   :  { %456 = vmatpush1.bf16.msra.mxu1 %v334_v58  ;;  %v59_v39 = vmul.f32 324.0, %v53_v30  ;;  %v51_v16 = vmul.f32 0.0030864198, %v44_v46  ;;  %v56_v8 = vfloor.f32 %v50_v50  ;;  %v5506_v30 = vmov 0 }
  0xae   :  { %508 = vmatprep.subr.bf16.mxu0 %v337_v15  ;;  %v3172_v21 = vcvt.s32.f32 %v29_v23  ;;  %v3174_v24 = vcvt.s32.f32 %v30_v26 }
  0xaf   :  { %509 = vmatpush1.bf16.msra.mxu0 %v336_v19  ;;  %v65_v44 = vsub.f32 %v34_v20, %v59_v39  ;;  %v57_v53 = vfloor.f32 %v51_v16  ;;  %v62_v1 = vmul.f32 324.0, %v56_v8  ;;  %v2784_v39 = vmov 0.0  }
  0xb0   :  { %2156 = vmatmul.mubr.msk.bf16.vlgmr.msra.gmra.mxu1 %vm362_vm9, %v3058_v57  ;;  %v42_v27 = vadd.f32 0.5, %v3174_v24  ;;  %vm103_vm12 = vcmp.lt.f32.partialorder %v3172_v21, 648.0  ;;  %vm104_vm14 = vcmp.lt.f32.partialorder %v3174_v24, 648.0 }
  0xb1   :  { %483 = vmatprep.mubr.bf16.mxu1 %v5363_v12  ;;  %v71_v18 = vadd.f32 0.5, %v65_v44  ;;  %v63_v52 = vmul.f32 324.0, %v57_v53  ;;  %v68_v49 = vsub.f32 %v3181_v33, %v62_v1 }
  0xb2   :  { %2159 = vmatmul.mubr.msk.bf16.vlgmr.msra.gmra.mxu0 %vm362_vm9, %v3058_v57  ;;  %v41_v57 = vadd.f32 0.5, %v3172_v21  ;;  %v49_v36 = vmul.f32 0.0030864198, %v42_v27 }
  0xb3   :  { %536 = vmatprep.mubr.bf16.mxu0 %v5363_v12  ;;  %v78_v60 = vmul.f32 0.055555556, %v71_v18  ;;  %v3194_v0 = vsub.f32 %v3183_v37, %v63_v52  ;;  %v74_v2 = vadd.f32 0.5, %v68_v49 }
  0xb4   :  { %v48_v32 = vmul.f32 0.0030864198, %v41_v57  ;;  %v55_v22 = vfloor.f32 %v49_v36  ;;  %v5504_v36 = vmov 0 }
  0xb5   :  { %v84_v10 = vfloor.f32 %v78_v60  ;;  %v75_v6 = vadd.f32 0.5, %v3194_v0  ;;  %v81_v61 = vmul.f32 0.055555556, %v74_v2 }
  0xb6   :  { %v54_v34 = vfloor.f32 %v48_v32  ;;  %v61_v41 = vmul.f32 324.0, %v55_v22 }
  0xb7   :  { %v90_v9 = vmul.f32 18.0, %v84_v10  ;;  %vm108_vm11 = vcmp.ge.f32.partialorder %v84_v10, 1.0  ;;  %v82_v19 = vmul.f32 0.055555556, %v75_v6  ;;  %v87_v20 = vfloor.f32 %v81_v61 }
  0xb8   :  { %2157 = vmatmul.mubr.msk.bf16.gmra.mxu1 %vm362_vm9, %v179_v47  ;;  %v60_v45 = vmul.f32 324.0, %v54_v34  ;;  %v67_v40 = vsub.f32 %v3174_v24, %v61_v41  ;;  %vm114_vm3 = vmand %vm102_vm10, %vm108_vm11 }
  0xb9   :  { %v96_v59 = vsub.f32 %v65_v44, %v90_v9  ;;  %v88_v24 = vfloor.f32 %v82_v19  ;;  %v93_v27 = vmul.f32 18.0, %v87_v20 }
  0xba   :  { %2160 = vmatmul.mubr.msk.bf16.gmra.mxu0 %vm362_vm9, %v179_v47  ;;  %v45_v47 = vadd.f32 0.5, %v3185_v38  ;;  %v66_v5 = vsub.f32 %v3172_v21, %v60_v45  ;;  %v73_v55 = vadd.f32 0.5, %v67_v40  ;;  %vm120_vm9 = vcmp.le.f32.partialorder %v84_v10, 16.0 }
  0xbb   :  { %1625 = vmatprep.mubr.bf16.mxu0 %v5363_v12  ;;  %vm126_vm2 = vmand %vm114_vm3, %vm120_vm9  ;;  %vm132_vm6 = vcmp.ge.f32.partialorder %v96_v59, 1.0  ;;  %v94_v29 = vmul.f32 18.0, %v88_v24  ;;  %v99_v34 = vsub.f32 %v68_v49, %v93_v27 }
  0xbc   :  { %v52_v43 = vmul.f32 0.0030864198, %v45_v47  ;;  %v72_v51 = vadd.f32 0.5, %v66_v5  ;;  %v80_v62 = vmul.f32 0.055555556, %v73_v55 }
  0xbe   :  { %v58_v56 = vfloor.f32 %v52_v43  ;;  %v79_v48 = vmul.f32 0.055555556, %v72_v51  ;;  %v86_v4 = vfloor.f32 %v80_v62 }
  0xc0   :  { %v64_v63 = vmul.f32 324.0, %v58_v56  ;;  %v85_v54 = vfloor.f32 %v79_v48  ;;  %v92_v11 = vmul.f32 18.0, %v86_v4  ;;  %vm110_vm15 = vcmp.ge.f32.partialorder %v86_v4, 1.0 }
  0xc1   :  { %vm116_vm4 = vmand %vm104_vm14, %vm110_vm15  ;;  %vm122_vm8 = vcmp.le.f32.partialorder %v86_v4, 16.0 }
  0xc2   :  { %v3197_v3 = vsub.f32 %v3185_v38, %v64_v63  ;;  %v91_v7 = vmul.f32 18.0, %v85_v54  ;;  %vm109_vm13 = vcmp.ge.f32.partialorder %v85_v54, 1.0  ;;  %vm121_vm7 = vcmp.le.f32.partialorder %v85_v54, 16.0  ;;  %vm128_vm10 = vmand %vm116_vm4, %vm122_vm8 }
  0xc3   :  { %vm115_vm0 = vmand %vm103_vm12, %vm109_vm13  ;;  %v98_v15 = vsub.f32 %v67_v40, %v92_v11  ;;  %vm144_vm13 = vcmp.le.f32.partialorder %v96_v59, 16.0  ;;  %vm105_vm4 = vcmp.lt.f32.partialorder %v3181_v33, 648.0  ;;  %vm107_vm8 = vcmp.lt.f32.partialorder %v3185_v38, 648.0 }
  0xc4   :  { %v76_v58 = vadd.f32 0.5, %v3197_v3  ;;  %v97_v17 = vsub.f32 %v66_v5, %v91_v7  ;;  %vm127_vm1 = vmand %vm115_vm0, %vm121_vm7  ;;  %vm111_vm7 = vcmp.ge.f32.partialorder %v87_v20, 1.0  ;;  %v100_v33 = vsub.f32 %v3194_v0, %v94_v29 }
  0xc5   :  { %vm134_vm11 = vcmp.ge.f32.partialorder %v98_v15, 1.0  ;;  %vm138_vm12 = vmand %vm126_vm2, %vm132_vm6  ;;  %vm146_vm9 = vcmp.le.f32.partialorder %v98_v15, 16.0 }
  0xc6   :  { %v83_v23 = vmul.f32 0.055555556, %v76_v58  ;;  %vm133_vm5 = vcmp.ge.f32.partialorder %v97_v17, 1.0  ;;  %vm145_vm15 = vcmp.le.f32.partialorder %v97_v17, 16.0  ;;  %vm140_vm3 = vmand %vm128_vm10, %vm134_vm11 }
  0xc7   :  { %vm139_vm14 = vmand %vm127_vm1, %vm133_vm5  ;;  %vm106_vm1 = vcmp.lt.f32.partialorder %v3183_v37, 648.0  ;;  %vm112_vm5 = vcmp.ge.f32.partialorder %v88_v24, 1.0 }
  0xc8   :  { %v89_v25 = vfloor.f32 %v83_v23  ;;  %vm3213_vm0 = vmand %vm138_vm12, %vm144_vm13  ;;  %vm123_vm12 = vcmp.le.f32.partialorder %v87_v20, 16.0 }
  0xc9   :  { %vm3218_vm2 = vmand %vm139_vm14, %vm145_vm15  ;;  %vm124_vm14 = vcmp.le.f32.partialorder %v88_v24, 16.0  ;;  %v3236_v42 = vsel %vm3213_vm0, 1.0, %v2784_v39 }
  0xca   :  { %v95_v35 = vmul.f32 18.0, %v89_v25  ;;  %v5505_v36 = vsel %vm3218_vm2, 4294967295, %v5504_v36  ;;  %vm3225_vm6 = vmand %vm140_vm3, %vm146_vm9  ;;  %vm113_vm10 = vcmp.ge.f32.partialorder %v89_v25, 1.0  ;;  %vm125_vm2 = vcmp.le.f32.partialorder %v89_v25, 16.0  ;;  %5508 = vst [vmem:[#allocation2_spill] sm:$0xff] %v3236_v42 }
  0xcb   :  { %v5507_v30 = vsel %vm3225_vm6, 4294967295, %v5506_v30  ;;  %vm117_vm11 = vmand %vm105_vm4, %vm111_vm7  ;;  %vm135_vm9 = vcmp.ge.f32.partialorder %v99_v34, 1.0  ;;  %vm5509_vm4 = vnez %v5505_v36 }
  0xcc   :  { %vm118_vm13 = vmand %vm106_vm1, %vm112_vm5  ;;  %v101_v22 = vsub.f32 %v3197_v3, %v95_v35  ;;  %v3240_v38 = vsel %vm5509_vm4, 1.0, %v2784_v39  ;;  %vm136_vm1 = vcmp.ge.f32.partialorder %v100_v33, 1.0  ;;  %vm5551_vm4 = vcmp.lt.s32.totalorder %v2907_v14, 110 }
  0xcd   :  { %vm119_vm15 = vmand %vm107_vm8, %vm113_vm10  ;;  %5510 = vst [vmem:[#allocation3_spill] sm:$0xff] %v3240_v38  ;;  %vm147_vm10 = vcmp.le.f32.partialorder %v99_v34, 16.0 }
  0xce   :  { %vm129_vm3 = vmand %vm117_vm11, %vm123_vm12  ;;  %vm137_vm6 = vcmp.ge.f32.partialorder %v101_v22, 1.0  ;;  %vm148_vm11 = vcmp.le.f32.partialorder %v100_v33, 16.0  ;;  %vm149_vm12 = vcmp.le.f32.partialorder %v101_v22, 16.0 }
  0xcf   :  { %vm130_vm7 = vmand %vm118_vm13, %vm124_vm14  ;;  %vm5513_vm14 = vnez %v5507_v30 }
  0xd0   :  { %vm131_vm5 = vmand %vm119_vm15, %vm125_vm2  ;;  %v3264_v43 = vsel %vm5513_vm14, 1.0, %v2784_v39 }
  0xd1   :  { %vm141_vm8 = vmand %vm129_vm3, %vm135_vm9  ;;  %5514 = vst [vmem:[#allocation4_spill] sm:$0xff] %v3264_v43  ;;  %vm5548_vm3 = vcmp.lt.s32.totalorder %v2907_v14, 1 }
  0xd2   :  { %vm142_vm0 = vmand %vm130_vm7, %vm136_vm1 }
  0xd3   :  { %vm143_vm2 = vmand %vm131_vm5, %vm137_vm6 }
  0xd4   :  { %vm3254_vm13 = vmand %vm141_vm8, %vm147_vm10  ;;  %vm5559_vm8 = vcmp.lt.s32.totalorder %v2907_v14, 17 }
  0xd5   :  { %vm3266_vm15 = vmand %vm142_vm0, %vm148_vm11  ;;  %v3294_v54 = vsel %vm3254_vm13, 1.0, %v2784_v39 }
  0xd6   :  { %vm155_vm6 = vmand %vm143_vm2, %vm149_vm12  ;;  %5517 = vst [vmem:[#allocation5_spill] sm:$0xff] %v3294_v54  ;;  %v3298_v0 = vsel %vm3266_vm15, 1.0, %v2784_v39  ;;  %vm5567_vm2 = vcmp.lt.s32.totalorder %v2907_v14, 111  ;;  %vm5574_vm15 = vcmp.lt.s32.totalorder %v2907_v14, 18 }
  0xd7   :  { %5518 = vst [vmem:[#allocation6_spill] sm:$0xff] %v3298_v0  ;;  %v3300_v4 = vsel %vm155_vm6, 1.0, %v2784_v39  ;;  %vm5549_vm9 = vmmov %vm5548_vm3 }
  0xd8   :  { %5519 = vst [vmem:[#allocation7_spill] sm:$0xff] %v3300_v4  ;;  %vm5552_vm7 = vmmov %vm5551_vm4 }
  0xd9   :  { %vm5555_vm1 = vmmov %vm5551_vm4 }
  0xda   :  { %vm5556_vm5 = vmmov %vm5555_vm1 }
  0xdb   :  { %vm5561_vm10 = vmmov %vm5559_vm8 }
  0xdc   :  { %vm5562_vm0 = vmmov %vm5555_vm1 }
  0xdd   :  { %vm5564_vm11 = vmmov %vm5562_vm0 }
  0xde   :  { %vm5569_vm12 = vmmov %vm5567_vm2 }
  0xdf   :  { %vm5572_vm13 = vmmov %vm5567_vm2 }
  0xe0   :  { %vm5573_vm14 = vmmov %vm5567_vm2 }
  0xe1   :  { %vm5575_vm6 = vmmov %vm5574_vm15 }
 0x15d   :  { %v3203_v13 = vpop.f32.mrf.mxu0 }
 0x15e   :  { %v555_v45 = vmul.f32 %v3236_v42, %v3203_v13 }
 0x15f   :  { %v3205_v26 = vpop.f32.mrf.mxu0 }
 0x160   :  { %v556_v46 = vmul.f32 %v3240_v38, %v3205_v26  ;;  %v611_v8 = vmul.f32 %v555_v45, %v3203_v13 }
 0x161   :  { %v3207_v21 = vpop.f32.mrf.mxu0 }
 0x162   :  { %v612_v51 = vmul.f32 %v556_v46, %v3205_v26  ;;  %v561_v53 = vmul.f32 %v3236_v42, %v3207_v21  ;;  %v579_v3 = vadd.f32 %v556_v46, %v555_v45 }
 0x163   :  { %v3209_v57 = vpop.f32.mrf.mxu0 }
 0x164   :  { %v562_v60 = vmul.f32 %v3240_v38, %v3209_v57  ;;  %v635_v9 = vadd.f32 %v612_v51, %v611_v8  ;;  %v617_v2 = vmul.f32 %v561_v53, %v3207_v21 }
 0x165   :  { %v3211_v28 = vpop.f32.mrf.mxu0 }
 0x166   :  { %v567_v44 = vmul.f32 %v3236_v42, %v3211_v28  ;;  %v586_v58 = vadd.f32 %v562_v60, %v561_v53  ;;  %v618_v36 = vmul.f32 %v562_v60, %v3209_v57 }
 0x167   :  { %v3223_v31 = vpop.f32.mrf.mxu0 }
 0x168   :  { %v568_v50 = vmul.f32 %v3240_v38, %v3223_v31  ;;  %v623_v1 = vmul.f32 %v567_v44, %v3211_v28 }
 0x169   :  { %v3232_v37 = vpop.f32.mrf.mxu0 }
 0x16a   :  { %v624_v48 = vmul.f32 %v568_v50, %v3223_v31  ;;  %v573_v52 = vmul.f32 %v3236_v42, %v3232_v37  ;;  %v593_v59 = vadd.f32 %v568_v50, %v567_v44 }
 0x16b   :  { %v3246_v41 = vpop.f32.mrf.mxu0 }
 0x16c   :  { %v574_v62 = vmul.f32 %v3240_v38, %v3246_v41  ;;  %v649_v61 = vadd.f32 %v624_v48, %v623_v1  ;;  %v629_v19 = vmul.f32 %v573_v52, %v3232_v37 }
 0x16e   :  { %v630_v15 = vmul.f32 %v574_v62, %v3246_v41  ;;  %v600_v30 = vadd.f32 %v574_v62, %v573_v52 }
 0x170   :  { %v3248_v47 = vpop.f32.mrf.mxu1  ;;  %v656_v5 = vadd.f32 %v630_v15, %v629_v19 }
 0x171   :  { %v557_v63 = vmul.f32 %v3264_v43, %v3248_v47 }
 0x172   :  { %v3258_v16 = vpop.f32.mrf.mxu1  ;;  %v3260_v40 = vpop.f32.mrf.mxu0 }
 0x173   :  { %v613_v23 = vmul.f32 %v557_v63, %v3248_v47  ;;  %v558_v20 = vmul.f32 %v3294_v54, %v3258_v16  ;;  %v580_v27 = vadd.f32 %v579_v3, %v557_v63 }
 0x174   :  { %v3274_v55 = vpop.f32.mrf.mxu1  ;;  %v3276_v56 = vpop.f32.mrf.mxu0 }
 0x175   :  { %v563_v7 = vmul.f32 %v3264_v43, %v3274_v55  ;;  %v636_v18 = vadd.f32 %v635_v9, %v613_v23  ;;  %v614_v8 = vmul.f32 %v558_v20, %v3258_v16  ;;  %v581_v62 = vadd.f32 %v580_v27, %v558_v20 }
 0x176   :  { %v3288_v10 = vpop.f32.mrf.mxu1  ;;  %v3290_v49 = vpop.f32.mrf.mxu0 }
 0x177   :  { %v587_v34 = vadd.f32 %v586_v58, %v563_v7  ;;  %v564_v45 = vmul.f32 %v3294_v54, %v3288_v10 }
 0x178   :  { %v3305_v6 = vpop.f32.mrf.mxu1  ;;  %v3307_v11 = vpop.f32.mrf.mxu0 }
 0x179   :  { %v569_v17 = vmul.f32 %v3264_v43, %v3305_v6  ;;  %v588_v15 = vadd.f32 %v587_v34, %v564_v45 }
 0x17a   :  { %v3316_v24 = vpop.f32.mrf.mxu1  ;;  %v3318_v25 = vpop.f32.mrf.mxu0 }
 0x17b   :  { %v594_v29 = vadd.f32 %v593_v59, %v569_v17  ;;  %v625_v32 = vmul.f32 %v569_v17, %v3305_v6  ;;  %v570_v35 = vmul.f32 %v3294_v54, %v3316_v24  ;;  %v571_v33 = vmul.f32 %v3298_v0, %v3318_v25 }
 0x17c   :  { %v3326_v22 = vpop.f32.mrf.mxu1  ;;  %v3328_v39 = vpop.f32.mrf.mxu0  ;;  %v619_v59 = vmul.f32 %v563_v7, %v3274_v55 }
 0x17d   :  { %v650_v46 = vadd.f32 %v649_v61, %v625_v32  ;;  %v626_v44 = vmul.f32 %v570_v35, %v3316_v24  ;;  %v575_v50 = vmul.f32 %v3264_v43, %v3326_v22  ;;  %v595_v60 = vadd.f32 %v594_v29, %v570_v35 }
 0x17e   :  { %v3336_v51 = vpop.f32.mrf.mxu1  ;;  %v3338_v53 = vpop.f32.mrf.mxu0  ;;  %v627_v63 = vmul.f32 %v571_v33, %v3318_v25  ;;  %v572_v3 = vmul.f32 %v3300_v4, %v3328_v39  ;;  %v642_v32 = vadd.f32 %v618_v36, %v617_v2  ;;  %v559_v35 = vmul.f32 %v3298_v0, %v3260_v40 }
 0x17f   :  { %v601_v1 = vadd.f32 %v600_v30, %v575_v50  ;;  %v631_v48 = vmul.f32 %v575_v50, %v3326_v22  ;;  %v576_v52 = vmul.f32 %v3294_v54, %v3336_v51  ;;  %v596_v9 = vadd.f32 %v595_v60, %v571_v33 }
 0x180   :  { %v651_v58 = vadd.f32 %v650_v46, %v626_v44  ;;  %v577_v17 = vmul.f32 %v3298_v0, %v3338_v53  ;;  %v3349_v19 = vpop.f32.mrf.mxu0  ;;  %v565_v30 = vmul.f32 %v3298_v0, %v3290_v49  ;;  %v628_v7 = vmul.f32 %v572_v3, %v3328_v39 }
 0x181   :  { %v657_v61 = vadd.f32 %v656_v5, %v631_v48  ;;  %v632_v23 = vmul.f32 %v576_v52, %v3336_v51  ;;  %v597_v29 = vadd.f32 %v596_v9, %v572_v3  ;;  %v602_v27 = vadd.f32 %v601_v1, %v576_v52 }
 0x182   :  { %v652_v20 = vadd.f32 %v651_v58, %v627_v63  ;;  %v578_v33 = vmul.f32 %v3300_v4, %v3349_v19  ;;  %v643_v34 = vadd.f32 %v642_v32, %v619_v59  ;;  %v620_v44 = vmul.f32 %v564_v45, %v3288_v10 }
 0x183   :  { %598 = vadd.xlane.f32.xlu0 %v597_v29  ;;  %v603_v46 = vadd.f32 %v602_v27, %v577_v17  ;;  %v582_v50 = vadd.f32 %v581_v62, %v559_v35  ;;  %v637_v5 = vadd.f32 %v636_v18, %v614_v8  ;;  %v589_v36 = vadd.f32 %v588_v15, %v565_v30 }
 0x184   :  { %v653_v60 = vadd.f32 %v652_v20, %v628_v7  ;;  %v658_v1 = vadd.f32 %v657_v61, %v632_v23  ;;  %v560_v48 = vmul.f32 %v3300_v4, %v3276_v56  ;;  %v615_v52 = vmul.f32 %v559_v35, %v3260_v40 }
 0x185   :  { %v604_v2 = vadd.f32 %v603_v46, %v578_v33  ;;  %v633_v63 = vmul.f32 %v577_v17, %v3338_v53  ;;  %v566_v3 = vmul.f32 %v3300_v4, %v3307_v11  ;;  %v644_v8 = vadd.f32 %v643_v34, %v620_v44 }
 0x186   :  { %v583_v9 = vadd.f32 %v582_v50, %v560_v48  ;;  %v638_v18 = vadd.f32 %v637_v5, %v615_v52  ;;  %v621_v58 = vmul.f32 %v565_v30, %v3290_v49  ;;  %v634_v59 = vmul.f32 %v578_v33, %v3349_v19 }
 0x187   :  { %654 = vadd.xlane.f32.xlu0 %v653_v60  ;;  %605 = vadd.xlane.f32.xlu1 %v604_v2  ;;  %v590_v45 = vadd.f32 %v589_v36, %v566_v3  ;;  %v659_v62 = vadd.f32 %v658_v1, %v633_v63  ;;  %v616_v61 = vmul.f32 %v560_v48, %v3276_v56 }
 0x188   :  { %v645_v23 = vadd.f32 %v644_v8, %v621_v58  ;;  %v622_v29 = vmul.f32 %v566_v3, %v3307_v11 }
 0x189   :  { %v660_v15 = vadd.f32 %v659_v62, %v634_v59  ;;  %v639_v17 = vadd.f32 %v638_v18, %v616_v61 }
 0x18a   :  { %v646_v20 = vadd.f32 %v645_v23, %v622_v29  ;;  %v547_v23 = vld [vmem:[%s5349_s2] sm:$0xff] }
 0x18b   :  { %591 = vadd.xlane.f32.xlu0 %v590_v45  ;;  %584 = vadd.xlane.f32.xlu1 %v583_v9 }
 0x18f   :  { %661 = vadd.xlane.f32.xlu0 %v660_v15  ;;  %640 = vadd.xlane.f32.xlu1 %v639_v17  ;;  %v550_v17 = vld [vmem:[%s5349_s2 + $0x18] sm:$0xff] }
 0x193   :  { %647 = vadd.xlane.f32.xlu0 %v646_v20 }
 0x20c   :  { %v599_v27 = vpop.xlane.xlu0 %598 }
 0x20d   :  { %v609_v52 = vmul.f32 0.001953125, %v599_v27 }
 0x20f   :  { %v669_v58 = vmul.f32 %v609_v52, %v609_v52 }
 0x210   :  { %v655_v32 = vpop.xlane.xlu0 %654  ;;  %v606_v35 = vpop.xlane.xlu1 %605 }
 0x211   :  { %v610_v7 = vmul.f32 0.001953125, %v606_v35  ;;  %v665_v18 = vmul.f32 0.001953125, %v655_v32  ;;  %v548_v35 = vld [vmem:[%s5349_s2 + $0x8] sm:$0xff] }
 0x213   :  { %v670_v44 = vmul.f32 %v610_v7, %v610_v7  ;;  %v673_v61 = vsub.f32 %v665_v18, %v669_v58 }
 0x214   :  { %v592_v30 = vpop.xlane.xlu0 %591  ;;  %v585_v46 = vpop.xlane.xlu1 %584 }
 0x215   :  { %v607_v34 = vmul.f32 0.001953125, %v585_v46  ;;  %v608_v5 = vmul.f32 0.001953125, %v592_v30  ;;  %v677_v15 = vadd.f32 1e-05, %v673_v61 }
 0x217   :  { %v667_v60 = vmul.f32 %v607_v34, %v607_v34  ;;  %v668_v3 = vmul.f32 %v608_v5, %v608_v5 }
 0x218   :  { %v662_v33 = vpop.xlane.xlu0 %661  ;;  %v641_v50 = vpop.xlane.xlu1 %640 }
 0x219   :  { %v666_v2 = vmul.f32 0.001953125, %v662_v33  ;;  %v663_v36 = vmul.f32 0.001953125, %v641_v50  ;;  %v551_v33 = vld [vmem:[%s5350_s3] sm:$0xff] }
 0x21b   :  { %v674_v1 = vsub.f32 %v666_v2, %v670_v44  ;;  %v671_v48 = vsub.f32 %v663_v36, %v667_v60  ;;  %v549_v2 = vld [vmem:[%s5349_s2 + $0x10] sm:$0xff] }
 0x21c   :  { %v648_v63 = vpop.xlane.xlu0 %647 }
 0x21d   :  { %v678_v9 = vadd.f32 1e-05, %v674_v1  ;;  %v675_v45 = vadd.f32 1e-05, %v671_v48  ;;  %v664_v62 = vmul.f32 0.001953125, %v648_v63  ;;  %v552_v48 = vld [vmem:[%s5350_s3 + $0x8] sm:$0xff] }
 0x21f   :  { %2759 = vrsqrt.f32 %v678_v9  ;;  %v672_v8 = vsub.f32 %v664_v62, %v668_v3  ;;  %v553_v3 = vld [vmem:[%s5350_s3 + $0x10] sm:$0xff]  ;;  %v554_v62 = vld [vmem:[%s5350_s3 + $0x18] sm:$0xff] }
 0x220   :  { %2761 = vrsqrt.f32 %v675_v45 }
 0x221   :  { %v676_v59 = vadd.f32 1e-05, %v672_v8 }
 0x223   :  { %2763 = vrsqrt.f32 %v676_v59 }
 0x224   :  { %2765 = vrsqrt.f32 %v677_v15 }
 0x22c   :  { %v2760_v29 = vpop.eup %2759 }
 0x22d   :  { %v2762_v20 = vpop.eup %2761  ;;  %v686_v27 = vmul.f32 %v2760_v29, %v550_v17 }
 0x22e   :  { %v683_v32 = vmul.f32 %v2762_v20, %v547_v23 }
 0x22f   :  { %712 = vperm.xlu0 %2278, %v686_v27   ;;  %v690_v45 = vmul.f32 %v686_v27, %v610_v7 }
 0x230   :  { %v2764_v30 = vpop.eup %2763  ;;  %697 = vperm.xlu1 %2277, %v683_v32   ;;  %v687_v44 = vmul.f32 %v683_v32, %v607_v34 }
 0x231   :  { %v684_v46 = vmul.f32 %v2764_v30, %v548_v35  ;;  %v2766_v60 = vpop.eup %2765 }
 0x232   :  { %v691_v50 = vsub.f32 %v551_v33, %v687_v44  ;;  %v685_v36 = vmul.f32 %v2766_v60, %v549_v2 }
 0x233   :  { %v688_v1 = vmul.f32 %v684_v46, %v608_v5  ;;  %v694_v5 = vsub.f32 %v554_v62, %v690_v45 }
 0x234   :  { %702 = vperm.xlu1 %2277, %v684_v46   ;;  %v689_v63 = vmul.f32 %v685_v36, %v609_v52 }
 0x235   :  { %v692_v34 = vsub.f32 %v552_v48, %v688_v1 }
 0x236   :  { %v693_v9 = vsub.f32 %v553_v3, %v689_v63 }
 0x238   :  { %741 = vperm.xlu1 %2277, %v691_v50  }
 0x23c   :  { %707 = vperm.xlu1 %2277, %v685_v36  }
 0x240   :  { %746 = vperm.xlu1 %2277, %v692_v34  }
 0x244   :  { %751 = vperm.xlu1 %2277, %v693_v9  }
 0x248   :  { %756 = vperm.xlu1 %2277, %v694_v5  }
 0x2aa   :  { %v713_v9 = vpop.permute.xlu0 %712 }
 0x2ab   :  { %v698_v18 = vpop.permute.xlu1 %697 }
 0x2ac   :  { %v715_v59 = vmul.f32 %v698_v18, %v3203_v13  ;;  %v716_v52 = vmul.f32 %v698_v18, %v3205_v26  ;;  %v720_v27 = vmul.f32 %v698_v18, %v3276_v56  ;;  %v717_v48 = vmul.f32 %v698_v18, %v3248_v47 }
 0x2ad   :  { %v718_v34 = vmul.f32 %v698_v18, %v3258_v16  ;;  %v719_v63 = vmul.f32 %v698_v18, %v3260_v40  ;;  %v733_v16 = vmul.f32 %v713_v9, %v3232_v37  ;;  %v735_v37 = vmul.f32 %v713_v9, %v3326_v22 }
 0x2af   :  { %v703_v8 = vpop.permute.xlu1 %702 }
 0x2b0   :  { %v721_v7 = vmul.f32 %v703_v8, %v3207_v21  ;;  %v722_v23 = vmul.f32 %v703_v8, %v3209_v57  ;;  %v726_v29 = vmul.f32 %v703_v8, %v3307_v11  ;;  %v723_v40 = vmul.f32 %v703_v8, %v3274_v55 }
 0x2b1   :  { %v738_v55 = vmul.f32 %v713_v9, %v3349_v19 }
 0x2b3   :  { %v742_v58 = vpop.permute.xlu1 %741 }
 0x2b4   :  { %v759_v15 = vadd.f32 %v742_v58, %v715_v59  ;;  %v760_v17 = vadd.f32 %v742_v58, %v716_v52  ;;  %v764_v44 = vadd.f32 %v742_v58, %v720_v27  ;;  %v761_v45 = vadd.f32 %v742_v58, %v717_v48 }
 0x2b5   :  { %v762_v62 = vadd.f32 %v742_v58, %v718_v34  ;;  %v763_v5 = vadd.f32 %v742_v58, %v719_v63  ;;  %v724_v58 = vmul.f32 %v703_v8, %v3288_v10 }
 0x2b6   :  { %v783_v30 = vmax.f32 %v759_v15, 0.0  ;;  %v784_v46 = vmax.f32 %v760_v17, 0.0  ;;  %v788_v11 = vmax.f32 %v764_v44, 0.0  ;;  %v785_v18 = vmax.f32 %v761_v45, 0.0 }
 0x2b7   :  { %v3396_v61 = vpop.permute.xlu1 %707  ;;  %v786_v59 = vmax.f32 %v762_v62, 0.0  ;;  %v787_v52 = vmax.f32 %v763_v5, 0.0  ;;  %v725_v17 = vmul.f32 %v703_v8, %v3290_v49 }
 0x2b8   :  { %v3409_v57 = vmul.f32 %v3236_v42, %v783_v30  ;;  %v3412_v56 = vmul.f32 %v3240_v38, %v784_v46  ;;  %v3431_v3 = vmul.f32 %v3300_v4, %v788_v11  ;;  %v3457_v10 = vmul.f32 %v3264_v43, %v785_v18 }
 0x2b9   :  { %v3463_v49 = vmul.f32 %v3298_v0, %v787_v52  ;;  %v727_v22 = vmul.f32 %v3396_v61, %v3211_v28  ;;  %v730_v19 = vmul.f32 %v3396_v61, %v3316_v24  ;;  %v731_v8 = vmul.f32 %v3396_v61, %v3318_v25 }
 0x2ba   :  { %5522 = vst [vmem:[#allocation10_spill] sm:$0xff] %v3409_v57  ;;  %5523 = vst [vmem:[#allocation11_spill] sm:$0xff] %v3412_v56 }
 0x2bb   :  { %v747_v20 = vpop.permute.xlu1 %746  ;;  %5525 = vst [vmem:[#allocation13_spill] sm:$0xff] %v3431_v3  ;;  %5526 = vst [vmem:[#allocation14_spill] sm:$0xff] %v3457_v10 }
 0x2bc   :  { %v765_v32 = vadd.f32 %v747_v20, %v721_v7  ;;  %v766_v35 = vadd.f32 %v747_v20, %v722_v23  ;;  %v770_v13 = vadd.f32 %v747_v20, %v726_v29  ;;  %v734_v7 = vmul.f32 %v713_v9, %v3246_v41  ;;  %5528 = vst [vmem:[#allocation16_spill] sm:$0xff] %v3463_v49 }
 0x2bd   :  { %v736_v23 = vmul.f32 %v713_v9, %v3336_v51  ;;  %v737_v29 = vmul.f32 %v713_v9, %v3338_v53  ;;  %v767_v27 = vadd.f32 %v747_v20, %v723_v40  ;;  %v3460_v41 = vmul.f32 %v3294_v54, %v786_v59 }
 0x2be   :  { %v789_v26 = vmax.f32 %v765_v32, 0.0  ;;  %v790_v33 = vmax.f32 %v766_v35, 0.0  ;;  %v794_v50 = vmax.f32 %v770_v13, 0.0  ;;  %v768_v32 = vadd.f32 %v747_v20, %v724_v58 }
 0x2bf   :  { %v752_v15 = vpop.permute.xlu1 %751  ;;  %v769_v35 = vadd.f32 %v747_v20, %v725_v17  ;;  %5527 = vst [vmem:[#allocation15_spill] sm:$0xff] %v3460_v41  ;;  %v728_v51 = vmul.f32 %v3396_v61, %v3223_v31  ;;  %v729_v53 = vmul.f32 %v3396_v61, %v3305_v6  ;;  %v732_v20 = vmul.f32 %v3396_v61, %v3328_v39 }
 0x2c0   :  { %v3403_v60 = vmul.f32 %v3236_v42, %v789_v26  ;;  %v3406_v21 = vmul.f32 %v3240_v38, %v790_v33  ;;  %v3423_v1 = vmul.f32 %v3300_v4, %v794_v50  ;;  %v791_v46 = vmax.f32 %v767_v27, 0.0 }
 0x2c1   :  { %v792_v13 = vmax.f32 %v768_v32, 0.0  ;;  %v793_v44 = vmax.f32 %v769_v35, 0.0  ;;  %v771_v28 = vadd.f32 %v752_v15, %v727_v22  ;;  %v772_v31 = vadd.f32 %v752_v15, %v728_v51 }
 0x2c2   :  { %5520 = vst [vmem:[#allocation8_spill] sm:$0xff] %v3403_v60  ;;  %5521 = vst [vmem:[#allocation9_spill] sm:$0xff] %v3406_v21  ;;  %v3416_v2 = vpack.i.bf16 %v3406_v21, %v3412_v56  ;;  %v3420_v36 = vpack.i.bf16 %v3403_v60, %v3409_v57  ;;  %v3437_v47 = vpack.i.bf16 %v3423_v1, %v3431_v3 }
 0x2c3   :  { %5524 = vst [vmem:[#allocation12_spill] sm:$0xff] %v3423_v1  ;;  %v757_v30 = vpop.permute.xlu1 %756  ;;  %v773_v6 = vadd.f32 %v752_v15, %v729_v53  ;;  %v774_v24 = vadd.f32 %v752_v15, %v730_v19  ;;  %v775_v33 = vadd.f32 %v752_v15, %v731_v8  ;;  %v776_v25 = vadd.f32 %v752_v15, %v732_v20 }
 0x2c4   :  { %2285 = vrot.lane.b32.xlu0 %v3416_v2, %s2779_s15  ;;  %2280 = vrot.lane.b32.xlu1 %v3420_v36, %s2779_s15  ;;  %v782_v26 = vadd.f32 %v757_v30, %v738_v55  ;;  %v777_v50 = vadd.f32 %v757_v30, %v733_v16  ;;  %v778_v11 = vadd.f32 %v757_v30, %v734_v7  ;;  %v795_v61 = vmax.f32 %v771_v28, 0.0 }
 0x2c5   :  { %v3482_v39 = vmul.f32 %v3264_v43, %v791_v46  ;;  %v779_v48 = vadd.f32 %v757_v30, %v735_v37  ;;  %v780_v34 = vadd.f32 %v757_v30, %v736_v23  ;;  %v3489_v63 = vmul.f32 %v3294_v54, %v792_v13 }
 0x2c6   :  { %v796_v9 = vmax.f32 %v772_v31, 0.0  ;;  %v797_v45 = vmax.f32 %v773_v6, 0.0  ;;  %v781_v62 = vadd.f32 %v757_v30, %v737_v29  ;;  %v798_v5 = vmax.f32 %v774_v24, 0.0 }
 0x2c7   :  { %5529 = vst [vmem:[#allocation17_spill] sm:$0xff] %v3482_v39  ;;  %5530 = vst [vmem:[#allocation18_spill] sm:$0xff] %v3489_v63  ;;  %v806_v16 = vmax.f32 %v782_v26, 0.0  ;;  %v799_v40 = vmax.f32 %v775_v33, 0.0  ;;  %v800_v18 = vmax.f32 %v776_v25, 0.0  ;;  %v801_v59 = vmax.f32 %v777_v50, 0.0 }
 0x2c8   :  { %2300 = vrot.lane.b32.xlu0 %v3416_v2, %s2780_s16  ;;  %2290 = vrot.lane.b32.xlu1 %v3437_v47, %s2779_s15  ;;  %v802_v52 = vmax.f32 %v778_v11, 0.0  ;;  %v3492_v15 = vmul.f32 %v3298_v0, %v793_v44  ;;  %v3495_v58 = vmul.f32 %v3236_v42, %v795_v61  ;;  %v803_v17 = vmax.f32 %v779_v48, 0.0  ;;  %v835_v48 = vld [vmem:[%s5351_s4 + $0x20] sm:$0xff] }
 0x2c9   :  { %v804_v7 = vmax.f32 %v780_v34, 0.0  ;;  %v3502_v37 = vmul.f32 %v3240_v38, %v796_v9  ;;  %v3505_v23 = vmul.f32 %v3264_v43, %v797_v45  ;;  %v805_v29 = vmax.f32 %v781_v62, 0.0  ;;  %v832_v34 = vld [vmem:[%s5351_s4 + $0x8] sm:$0xff] }
 0x2ca   :  { %5531 = vst [vmem:[#allocation19_spill] sm:$0xff] %v3492_v15  ;;  %5532 = vst [vmem:[#allocation20_spill] sm:$0xff] %v3495_v58  ;;  %v3509_v27 = vpack.i.bf16 %v3489_v63, %v3460_v41  ;;  %v3512_v32 = vmul.f32 %v3294_v54, %v798_v5  ;;  %v3515_v35 = vmul.f32 %v3300_v4, %v806_v16 }
 0x2cb   :  { %5533 = vst [vmem:[#allocation21_spill] sm:$0xff] %v3502_v37  ;;  %5534 = vst [vmem:[#allocation22_spill] sm:$0xff] %v3505_v23  ;;  %v3518_v55 = vmul.f32 %v3298_v0, %v799_v40  ;;  %v3521_v22 = vmul.f32 %v3300_v4, %v800_v18  ;;  %v3524_v51 = vmul.f32 %v3236_v42, %v801_v59 }
 0x2cc   :  { %2315 = vrot.lane.b32.xlu0 %v3416_v2, %s2781_s19  ;;  %2295 = vrot.lane.b32.xlu1 %v3420_v36, %s2780_s16  ;;  %5535 = vst [vmem:[#allocation23_spill] sm:$0xff] %v3512_v32  ;;  %5536 = vst [vmem:[#allocation24_spill] sm:$0xff] %v3515_v35  ;;  %v3527_v53 = vmul.f32 %v3240_v38, %v802_v52  ;;  %v3530_v19 = vmul.f32 %v3264_v43, %v803_v17 }
 0x2cd   :  { %5537 = vst [vmem:[#allocation25_spill] sm:$0xff] %v3518_v55  ;;  %5538 = vst [vmem:[#allocation26_spill] sm:$0xff] %v3521_v22  ;;  %v3533_v8 = vmul.f32 %v3294_v54, %v804_v7  ;;  %v3541_v20 = vpack.i.bf16 %v3492_v15, %v3463_v49  ;;  %v3544_v30 = vmul.f32 %v3298_v0, %v805_v29 }
 0x2ce   :  { %5539 = vst [vmem:[#allocation27_spill] sm:$0xff] %v3524_v51  ;;  %5540 = vst [vmem:[#allocation28_spill] sm:$0xff] %v3527_v53  ;;  %v2369_v46 = vpack.i.bf16 %v3482_v39, %v3457_v10  ;;  %v3550_v13 = vpack.i.bf16 %v3515_v35, %v3521_v22  ;;  %v2464_v9 = vpack.i.bf16 %v3524_v51, %v3495_v58 }
 0x2cf   :  { %5541 = vst [vmem:[#allocation29_spill] sm:$0xff] %v3530_v19  ;;  %5542 = vst [vmem:[#allocation30_spill] sm:$0xff] %v3533_v8  ;;  %v3556_v44 = vpack.i.bf16 %v3533_v8, %v3512_v32  ;;  %v3680_v29 = vpack.i.bf16 %v3544_v30, %v3518_v55  ;;  %v3708_v61 = vpack.c.bf16 %v835_v48, %v832_v34 }
 0x2d0   :  { %2325 = vrot.lane.b32.xlu0 %v3420_v36, %s2782_s20  ;;  %2305 = vrot.lane.b32.xlu1 %v3437_v47, %s2780_s16  ;;  %5543 = vst [vmem:[#allocation31_spill] sm:$0xff] %v3544_v30 }
 0x2d1   :  { %1572 = vmatprep.mubr.bf16.mxu1 %v3708_v61 }
 0x2d4   :  { %2335 = vrot.lane.b32.xlu0 %v3416_v2, %s2776_s10  ;;  %2310 = vrot.lane.b32.xlu1 %v3420_v36, %s2781_s19 }
 0x2d8   :  { %2345 = vrot.lane.b32.xlu0 %v3437_v47, %s2782_s20  ;;  %2320 = vrot.lane.b32.xlu1 %v3437_v47, %s2781_s19 }
 0x2dc   :  { %2360 = vrot.lane.b32.xlu0 %v3509_v27, %s2779_s15  ;;  %2330 = vrot.lane.b32.xlu1 %v3416_v2, %s2782_s20 }
 0x2e0   :  { %2370 = vrot.lane.b32.xlu0 %v2369_v46, %s2777_s11  ;;  %2340 = vrot.lane.b32.xlu1 %v2369_v46, %s2776_s10 }
 0x2e4   :  { %2385 = vrot.lane.b32.xlu0 %v3509_v27, %s2780_s16  ;;  %2350 = vrot.lane.b32.xlu1 %v3420_v36, %s2776_s10 }
 0x2e8   :  { %2395 = vrot.lane.b32.xlu0 %v2369_v46, %s2775_s9  ;;  %2355 = vrot.lane.b32.xlu1 %v2369_v46, %s2779_s15 }
 0x2ec   :  { %2410 = vrot.lane.b32.xlu0 %v3509_v27, %s2781_s19  ;;  %2365 = vrot.lane.b32.xlu1 %v3416_v2, %s2777_s11 }
 0x2f0   :  { %2420 = vrot.lane.b32.xlu0 %v2369_v46, %s2778_s12  ;;  %2375 = vrot.lane.b32.xlu1 %v3420_v36, %s2777_s11 }
 0x2f4   :  { %2430 = vrot.lane.b32.xlu0 %v2369_v46, %s2782_s20  ;;  %2380 = vrot.lane.b32.xlu1 %v2369_v46, %s2780_s16 }
 0x2f8   :  { %2455 = vrot.lane.b32.xlu0 %v3509_v27, %s2777_s11  ;;  %2390 = vrot.lane.b32.xlu1 %v3416_v2, %s2775_s9 }
 0x2fc   :  { %2400 = vrot.lane.b32.xlu1 %v3420_v36, %s2775_s9  ;;  %2460 = vrot.lane.b32.xlu0 %v3550_v13, %s2779_s15 }
 0x300   :  { %2405 = vrot.lane.b32.xlu1 %v2369_v46, %s2781_s19  ;;  %2465 = vrot.lane.b32.xlu0 %v2464_v9, %s2780_s16 }
 0x304   :  { %2415 = vrot.lane.b32.xlu1 %v3416_v2, %s2778_s12  ;;  %2475 = vrot.lane.b32.xlu0 %v3550_v13, %s2780_s16  ;;  %v2504_v2 = vpack.i.bf16 %v3527_v53, %v3502_v37 }
 0x308   :  { %2425 = vrot.lane.b32.xlu1 %v3420_v36, %s2778_s12  ;;  %2480 = vrot.lane.b32.xlu0 %v2464_v9, %s2781_s19  ;;  %v2524_v36 = vpack.i.bf16 %v3530_v19, %v3505_v23 }
 0x30c   :  { %2435 = vrot.lane.b32.xlu1 %v3509_v27, %s2782_s20  ;;  %2490 = vrot.lane.b32.xlu0 %v3550_v13, %s2781_s19 }
 0x310   :  { %2495 = vrot.lane.b32.xlu0 %v2464_v9, %s2782_s20  ;;  %2440 = vrot.lane.b32.xlu1 %v2464_v9, %s2779_s15 }
 0x314   :  { %2505 = vrot.lane.b32.xlu0 %v2504_v2, %s2776_s10  ;;  %2445 = vrot.lane.b32.xlu1 %v2504_v2, %s2779_s15 }
 0x318   :  { %2515 = vrot.lane.b32.xlu0 %v3550_v13, %s2782_s20  ;;  %2450 = vrot.lane.b32.xlu1 %v3541_v20, %s2779_s15 }
 0x31c   :  { %2525 = vrot.lane.b32.xlu0 %v2524_v36, %s2779_s15  ;;  %2470 = vrot.lane.b32.xlu1 %v2504_v2, %s2780_s16 }
 0x320   :  { %2535 = vrot.lane.b32.xlu0 %v2504_v2, %s2777_s11  ;;  %2485 = vrot.lane.b32.xlu1 %v2504_v2, %s2781_s19 }
 0x324   :  { %2545 = vrot.lane.b32.xlu0 %v2464_v9, %s2777_s11  ;;  %2500 = vrot.lane.b32.xlu1 %v2504_v2, %s2782_s20 }
 0x328   :  { %2550 = vrot.lane.b32.xlu0 %v2524_v36, %s2780_s16  ;;  %2510 = vrot.lane.b32.xlu1 %v2524_v36, %s2776_s10 }
 0x32c   :  { %2560 = vrot.lane.b32.xlu0 %v2504_v2, %s2775_s9  ;;  %2520 = vrot.lane.b32.xlu1 %v2464_v9, %s2776_s10 }
 0x330   :  { %2570 = vrot.lane.b32.xlu0 %v2464_v9, %s2775_s9  ;;  %2530 = vrot.lane.b32.xlu1 %v3556_v44, %s2779_s15 }
 0x334   :  { %2575 = vrot.lane.b32.xlu0 %v2524_v36, %s2781_s19  ;;  %2540 = vrot.lane.b32.xlu1 %v2524_v36, %s2777_s11 }
 0x336   :  { %v3647_v45 = vpop.permute.xlu0 %2285  ;;  %v3649_v62 = vpop.permute.xlu1 %2280 }
 0x338   :  { %2585 = vrot.lane.b32.xlu0 %v2504_v2, %s2778_s12  ;;  %2555 = vrot.lane.b32.xlu1 %v3556_v44, %s2780_s16 }
 0x33a   :  { %v3654_v5 = vpop.permute.xlu0 %2300  ;;  %v3656_v16 = vpop.permute.xlu1 %2290 }
 0x33b   :  { %v2293_v56 = vunpack.i.h.bf16 %v3656_v16  ;;  %v2292_v21 = vunpack.i.l.bf16 %v3656_v16 }
 0x33c   :  { %2600 = vrot.lane.b32.xlu0 %v2464_v9, %s2778_s12  ;;  %2565 = vrot.lane.b32.xlu1 %v2524_v36, %s2775_s9 }
 0x33e   :  { %v3660_v40 = vpop.permute.xlu0 %2315  ;;  %v3662_v18 = vpop.permute.xlu1 %2295 }
 0x33f   :  { %v2297_v60 = vunpack.i.l.bf16 %v3662_v18 }
 0x340   :  { %2605 = vrot.lane.b32.xlu0 %v2524_v36, %s2782_s20  ;;  %2580 = vrot.lane.b32.xlu1 %v3556_v44, %s2781_s19 }
 0x342   :  { %v3667_v59 = vpop.permute.xlu0 %2325  ;;  %v3669_v52 = vpop.permute.xlu1 %2305 }
 0x344   :  { %2620 = vrot.lane.b32.xlu0 %v3509_v27, %s2775_s9  ;;  %2590 = vrot.lane.b32.xlu1 %v2524_v36, %s2778_s12 }
 0x346   :  { %v3674_v17 = vpop.permute.xlu0 %2335  ;;  %v3676_v7 = vpop.permute.xlu1 %2310 }
 0x348   :  { %2625 = vrot.lane.b32.xlu0 %v3680_v29, %s2779_s15  ;;  %2595 = vrot.lane.b32.xlu1 %v3541_v20, %s2777_s11 }
 0x34a   :  { %v3686_v46 = vpop.permute.xlu0 %2345  ;;  %v3688_v9 = vpop.permute.xlu1 %2320 }
 0x34b   :  { %5544 = vst [vmem:[#allocation32_spill] sm:$0xff] %v3686_v46 }
 0x34c   :  { %2640 = vrot.lane.b32.xlu0 %v3680_v29, %s2777_s11  ;;  %2610 = vrot.lane.b32.xlu1 %v3556_v44, %s2782_s20 }
 0x34e   :  { %v3694_v2 = vpop.permute.xlu0 %2360  ;;  %v3696_v36 = vpop.permute.xlu1 %2330 }
 0x34f   :  { %v5378_v26 = vunpack.i.h.bf16 %v3694_v2  ;;  %v5376_v24 = vunpack.i.l.bf16 %v3694_v2 }
 0x350   :  { %2645 = vrot.lane.b32.xlu0 %v3680_v29, %s2780_s16  ;;  %2615 = vrot.lane.b32.xlu1 %v3541_v20, %s2780_s16 }
 0x352   :  { %v3710_v11 = vpop.permute.xlu0 %2370  ;;  %v3712_v50 = vpop.permute.xlu1 %2340 }
 0x353   :  { %5545 = vst [vmem:[#allocation33_spill] sm:$0xff] %v3712_v50  ;;  %v2373_v43 = vunpack.i.h.bf16 %v3710_v11  ;;  %v2372_v42 = vunpack.i.l.bf16 %v3710_v11 }
 0x354   :  { %2660 = vrot.lane.b32.xlu0 %v3680_v29, %s2775_s9  ;;  %2630 = vrot.lane.b32.xlu1 %v3556_v44, %s2777_s11 }
 0x356   :  { %v3719_v25 = vpop.permute.xlu0 %2385  ;;  %v3721_v33 = vpop.permute.xlu1 %2350 }
 0x357   :  { %5546 = vst [vmem:[#allocation34_spill] sm:$0xff] %v3719_v25 }
 0x358   :  { %2665 = vrot.lane.b32.xlu0 %v3680_v29, %s2781_s19  ;;  %2635 = vrot.lane.b32.xlu1 %v3541_v20, %s2775_s9 }
 0x35a   :  { %v3727_v48 = vpop.permute.xlu0 %2395  ;;  %v3729_v34 = vpop.permute.xlu1 %2355 }
 0x35b   :  { %5547 = vst [vmem:[#allocation35_spill] sm:$0xff] %v3727_v48  ;;  %v5377_v6 = vunpack.i.h.bf16 %v3729_v34  ;;  %v5375_v31 = vunpack.i.l.bf16 %v3729_v34 }
 0x35c   :  { %2675 = vrot.lane.b32.xlu0 %v3680_v29, %s2778_s12  ;;  %2650 = vrot.lane.b32.xlu1 %v3556_v44, %s2775_s9 }
 0x35d   :  { %v3745_v28 = vsel %vm5548_vm3, %v5375_v31, %v5376_v24  ;;  %v3753_v12 = vsel %vm5549_vm9, %v5377_v6, %v5378_v26  ;;  %vm5576_vm3 = vcmp.lt.s32.totalorder %v2907_v14, 127 }
 0x35e   :  { %v3755_v4 = vpop.permute.xlu0 %2410  ;;  %v2366_v0 = vpop.permute.xlu1 %2365  ;;  %vm5578_vm9 = vmmov %vm5576_vm3 }
 0x35f   :  { %5550 = vst [vmem:[#allocation36_spill] sm:$0xff] %v3755_v4  ;;  %v2368_v31 = vunpack.i.h.bf16 %v2366_v0  ;;  %v2367_v24 = vunpack.i.l.bf16 %v2366_v0  ;;  %v5415_v32 = vunpack.i.h.bf16 %v3755_v4  ;;  %v5413_v8 = vunpack.i.l.bf16 %v3755_v4 }
 0x360   :  { %2680 = vrot.lane.b32.xlu0 %v3509_v27, %s2778_s12  ;;  %2655 = vrot.lane.b32.xlu1 %v3541_v20, %s2781_s19 }
 0x361   :  { %v3767_v6 = vsel %vm5551_vm4, %v2367_v24, %v2372_v42  ;;  %v3771_v26 = vsel %vm5552_vm7, %v2368_v31, %v2373_v43  ;;  %vm5581_vm4 = vmmov %vm5576_vm3 }
 0x362   :  { %v3773_v54 = vpop.permute.xlu0 %2420  ;;  %v3775_v38 = vpop.permute.xlu1 %2375  ;;  %vm5583_vm7 = vmmov %vm5576_vm3 }
 0x363   :  { %5553 = vst [vmem:[#allocation37_spill] sm:$0xff] %v3773_v54  ;;  %5554 = vst [vmem:[#allocation38_spill] sm:$0xff] %v3775_v38  ;;  %v5389_v11 = vunpack.i.h.bf16 %v3775_v38  ;;  %v5388_v49 = vunpack.i.l.bf16 %v3775_v38 }
 0x364   :  { %2690 = vrot.lane.b32.xlu0 %v3680_v29, %s2782_s20  ;;  %2670 = vrot.lane.b32.xlu1 %v3556_v44, %s2778_s12 }
 0x365   :  { %v3789_v15 = vsel %vm5555_vm1, %v5388_v49, %v2367_v24  ;;  %v3795_v0 = vsel %vm5556_vm5, %v5389_v11, %v2368_v31  ;;  %v5396_v24 = vunpack.i.h.bf16 %v3719_v25  ;;  %v5395_v49 = vunpack.i.l.bf16 %v3719_v25 }
 0x366   :  { %v3799_v1 = vpop.permute.xlu0 %2430  ;;  %v3801_v55 = vpop.permute.xlu1 %2380  ;;  %v5421_v25 = vunpack.i.h.bf16 %v3773_v54  ;;  %vm5586_vm1 = vcmp.lt.s32.totalorder %v2907_v14, 19 }
 0x367   :  { %5557 = vst [vmem:[#allocation39_spill] sm:$0xff] %v3799_v1  ;;  %v5397_v22 = vunpack.i.l.bf16 %v3801_v55  ;;  %v5560_v10 = vunpack.i.h.bf16 %v3801_v55  ;;  %vm5588_vm5 = vmmov %vm5586_vm1 }
 0x368   :  { %2710 = vrot.lane.b32.xlu0 %v3550_v13, %s2777_s11  ;;  %2685 = vrot.lane.b32.xlu1 %v3541_v20, %s2778_s12 }
 0x369   :  { %v3821_v30 = vsel %vm5559_vm8, %v5397_v22, %v5395_v49  ;;  %v3829_v31 = vsel %vm5561_vm10, %v5560_v10, %v5396_v24  ;;  %v5566_v24 = vunpack.i.l.bf16 %v3727_v48  ;;  %v5568_v49 = vunpack.i.h.bf16 %v3727_v48 }
 0x36a   :  { %v3813_v3 = vpop.permute.xlu0 %2455  ;;  %v2391_v35 = vpop.permute.xlu1 %2390  ;;  %vm5591_vm8 = vcmp.lt.s32.totalorder %v2907_v14, 1 }
 0x36b   :  { %5558 = vst [vmem:[#allocation40_spill] sm:$0xff] %v3813_v3  ;;  %v5401_v11 = vunpack.i.h.bf16 %v3813_v3  ;;  %v5399_v39 = vunpack.i.l.bf16 %v3813_v3  ;;  %v2393_v41 = vunpack.i.h.bf16 %v2391_v35  ;;  %v2392_v63 = vunpack.i.l.bf16 %v2391_v35  ;;  %vm5593_vm10 = vmmov %vm5591_vm8 }
 0x36c   :  { %2715 = vrot.lane.b32.xlu0 %v3550_v13, %s2775_s9  ;;  %2695 = vrot.lane.b32.xlu1 %v3541_v20, %s2782_s20 }
 0x36d   :  { %v3843_v10 = vsel %vm5562_vm0, %v2372_v42, %v5399_v39  ;;  %v3849_v35 = vsel %vm5564_vm11, %v2373_v43, %v5401_v11  ;;  %v3855_v22 = vsel %vm5567_vm2, %v2392_v63, %v5566_v24  ;;  %v3861_v23 = vsel %vm5569_vm12, %v2393_v41, %v5568_v49  ;;  %vm5594_vm0 = vmmov %vm5591_vm8 }
 0x36e   :  { %5563 = vst [vmem:[#allocation41_spill] sm:$0xff] %v3843_v10  ;;  %5565 = vst [vmem:[#allocation42_spill] sm:$0xff] %v3849_v35  ;;  %v3865_v39 = vpop.permute.xlu0 %2460  ;;  %v3867_v19 = vpop.permute.xlu1 %2400  ;;  %v5420_v10 = vunpack.i.l.bf16 %v3773_v54 }
 0x36f   :  { %5570 = vst [vmem:[#allocation43_spill] sm:$0xff] %v3865_v39  ;;  %5571 = vst [vmem:[#allocation44_spill] sm:$0xff] %v3867_v19  ;;  %v5407_v11 = vunpack.i.h.bf16 %v3867_v19  ;;  %v5406_v24 = vunpack.i.l.bf16 %v3867_v19  ;;  %v5596_v51 = vunpack.i.h.bf16 %v3865_v39 }
 0x370   :  { %2725 = vrot.lane.b32.xlu0 %v3680_v29, %s2776_s10  ;;  %2700 = vrot.lane.b32.xlu1 %v3437_v47, %s2777_s11  ;;  %vm5595_vm11 = vmmov %vm5594_vm0 }
 0x371   :  { %v3881_v49 = vsel %vm5572_vm13, %v5406_v24, %v2392_v63  ;;  %v3887_v42 = vsel %vm5573_vm14, %v5407_v11, %v2393_v41  ;;  %vm5597_vm2 = vmmov %vm5594_vm0 }
 0x372   :  { %v3891_v38 = vpop.permute.xlu0 %2465  ;;  %v3893_v29 = vpop.permute.xlu1 %2405  ;;  %vm5599_vm12 = vmmov %vm5594_vm0 }
 0x373   :  { %v5416_v63 = vunpack.i.h.bf16 %v3893_v29  ;;  %v5414_v24 = vunpack.i.l.bf16 %v3893_v29  ;;  %vm5600_vm13 = vmmov %vm5594_vm0 }
 0x374   :  { %2730 = vrot.lane.b32.xlu0 %v3509_v27, %s2776_s10  ;;  %2705 = vrot.lane.b32.xlu1 %v3437_v47, %s2775_s9  ;;  %vm5602_vm14 = vmmov %vm5594_vm0 }
 0x375   :  { %v3909_v41 = vsel %vm5574_vm15, %v5414_v24, %v5413_v8  ;;  %v3917_v11 = vsel %vm5575_vm6, %v5416_v63, %v5415_v32  ;;  %vm5605_vm15 = vcmp.lt.s32.totalorder %v2907_v14, 17 }
 0x376   :  { %v3919_v27 = vpop.permute.xlu0 %2475  ;;  %v2416_v43 = vpop.permute.xlu1 %2415  ;;  %vm5607_vm6 = vmmov %vm5605_vm15 }
 0x377   :  { %v2418_v8 = vunpack.i.h.bf16 %v2416_v43  ;;  %v2417_v24 = vunpack.i.l.bf16 %v2416_v43 }
 0x378   :  { %2740 = vrot.lane.b32.xlu0 %v3550_v13, %s2778_s12  ;;  %2720 = vrot.lane.b32.xlu1 %v3556_v44, %s2776_s10 }
 0x379   :  { %v3933_v32 = vsel %vm5576_vm3, %v2417_v24, %v5420_v10  ;;  %v3939_v19 = vsel %vm5578_vm9, %v2418_v8, %v5421_v25  ;;  %vm5609_vm3 = vmmov %vm5594_vm0 }
 0x37a   :  { %5577 = vst [vmem:[#allocation45_spill] sm:$0xff] %v3933_v32  ;;  %5579 = vst [vmem:[#allocation46_spill] sm:$0xff] %v3939_v19  ;;  %v3941_v63 = vpop.permute.xlu0 %2480  ;;  %v3943_v43 = vpop.permute.xlu1 %2425 }
 0x37b   :  { %5580 = vst [vmem:[#allocation47_spill] sm:$0xff] %v3943_v43  ;;  %v5428_v44 = vunpack.i.h.bf16 %v3943_v43  ;;  %v5427_v35 = vunpack.i.l.bf16 %v3943_v43  ;;  %vm5612_vm9 = vmmov %vm5594_vm0 }
 0x37c   :  { %2750 = vrot.lane.b32.xlu0 %v3550_v13, %s2776_s10  ;;  %2735 = vrot.lane.b32.xlu1 %v3541_v20, %s2776_s10  ;;  %v2283_v13 = vunpack.i.h.bf16 %v3649_v62  ;;  %v2282_v20 = vunpack.i.l.bf16 %v3649_v62 }
 0x37d   :  { %v3958_v25 = vsel %vm5581_vm4, %v5427_v35, %v2417_v24  ;;  %v3964_v4 = vsel %vm5583_vm7, %v5428_v44, %v2418_v8  ;;  %v5439_v24 = vunpack.i.h.bf16 %v3799_v1  ;;  %v5435_v35 = vunpack.i.l.bf16 %v3799_v1  ;;  %vm5614_vm4 = vmmov %vm5594_vm0 }
 0x37e   :  { %5582 = vst [vmem:[#allocation48_spill] sm:$0xff] %v3958_v25  ;;  %5584 = vst [vmem:[#allocation49_spill] sm:$0xff] %v3964_v4  ;;  %v3971_v48 = vpop.permute.xlu0 %2490  ;;  %v3973_v57 = vpop.permute.xlu1 %2435  ;;  %v5458_v25 = vunpack.i.h.bf16 %v3919_v27 }
 0x37f   :  { %5585 = vst [vmem:[#allocation50_spill] sm:$0xff] %v3973_v57  ;;  %v5438_v8 = vunpack.i.h.bf16 %v3973_v57  ;;  %v5434_v44 = vunpack.i.l.bf16 %v3973_v57  ;;  %v5592_v57 = vunpack.i.h.bf16 %v3647_v45  ;;  %vm5616_vm7 = vmmov %vm5594_vm0 }
 0x380   :  { %2745 = vrot.lane.b32.xlu1 %v3437_v47, %s2778_s12 }
 0x381   :  { %v3987_v62 = vsel %vm5586_vm1, %v5435_v35, %v5434_v44  ;;  %v3995_v10 = vsel %vm5588_vm5, %v5439_v24, %v5438_v8  ;;  %v5590_v44 = vunpack.i.l.bf16 %v3647_v45  ;;  %v1130_v8 = vsel %vm5593_vm10, %v2283_v13, %v5592_v57  ;;  %vm5618_vm1 = vmmov %vm5607_vm6 }
 0x382   :  { %5587 = vst [vmem:[#allocation51_spill] sm:$0xff] %v3987_v62  ;;  %5589 = vst [vmem:[#allocation52_spill] sm:$0xff] %v3995_v10  ;;  %v3997_v54 = vpop.permute.xlu0 %2495  ;;  %v2441_v43 = vpop.permute.xlu1 %2440  ;;  %v1134_v57 = vsel %vm5595_vm11, %v2293_v56, %v2283_v13 }
 0x383   :  { %v1129_v35 = vsel %vm5591_vm8, %v2282_v20, %v5590_v44  ;;  %v2443_v24 = vunpack.i.h.bf16 %v2441_v43  ;;  %v2442_v58 = vunpack.i.l.bf16 %v2441_v43  ;;  %v1133_v44 = vsel %vm5594_vm0, %v2292_v21, %v2282_v20  ;;  %vm5619_vm5 = vmmov %vm5618_vm1 }
 0x384   :  { %2755 = vrot.lane.b32.xlu1 %v3437_v47, %s2776_s10  ;;  %v1462_v62 = vpack.c.bf16 %v1130_v8, %v1129_v35  ;;  %v2298_v47 = vunpack.i.h.bf16 %v3662_v18  ;;  %v5598_v35 = vunpack.i.l.bf16 %v3865_v39  ;;  %v1461_v1 = vpack.c.bf16 %v1134_v57, %v1133_v44  ;;  %vm5620_vm8 = vmmov %vm5618_vm1 }
 0x385   :  { %v1136_v37 = vsel %vm5597_vm2, %v5596_v51, %v2443_v24  ;;  %v5457_v8 = vunpack.i.l.bf16 %v3919_v27  ;;  %v5606_v51 = vunpack.i.h.bf16 %v3654_v5  ;;  %v2468_v44 = vunpack.i.h.bf16 %v3891_v38  ;;  %vm5621_vm10 = vmmov %vm5618_vm1 }
 0x386   :  { %v4015_v16 = vpop.permute.xlu0 %2505  ;;  %v4017_v3 = vpop.permute.xlu1 %2445  ;;  %v1135_v20 = vsel %vm5599_vm12, %v5598_v35, %v2442_v58  ;;  %v5608_v57 = vunpack.i.h.bf16 %v3694_v2  ;;  %vm5622_vm0 = vmmov %vm5618_vm1  ;;  %vm5625_vm2 = vcmp.lt.s32.totalorder %v2907_v14, 18 }
 0x387   :  { %v5456_v10 = vunpack.i.l.bf16 %v4017_v3  ;;  %v5601_v18 = vunpack.i.h.bf16 %v4017_v3  ;;  %v1467_v32 = vpack.c.bf16 %v1136_v37, %v1135_v20  ;;  %v2467_v37 = vunpack.i.l.bf16 %v3891_v38  ;;  %vm5623_vm11 = vmmov %vm5622_vm0 }
 0x388   :  { %v5611_v20 = vunpack.i.l.bf16 %v3694_v2  ;;  %vm5627_vm12 = vmmov %vm5625_vm2 }
 0x389   :  { %v1131_v43 = vsel %vm5600_vm13, %v2442_v58, %v5456_v10  ;;  %v1132_v53 = vsel %vm5602_vm14, %v2443_v24, %v5601_v18  ;;  %v5460_v58 = vunpack.i.h.bf16 %v3669_v52  ;;  %v5459_v10 = vunpack.i.l.bf16 %v3669_v52  ;;  %vm5628_vm13 = vmmov %vm5625_vm2 }
 0x38a   :  { %v4047_v4 = vpop.permute.xlu0 %2515  ;;  %v2451_v35 = vpop.permute.xlu1 %2450  ;;  %v1468_v13 = vpack.c.bf16 %v1132_v53, %v1131_v43  ;;  %v5604_v24 = vunpack.i.l.bf16 %v3654_v5  ;;  %v1058_v53 = vsel %vm5607_vm6, %v2298_v47, %v5606_v51  ;;  %vm5629_vm14 = vmmov %vm5625_vm2 }
 0x38b   :  { %5603 = vst [vmem:[#allocation53_spill] sm:$0xff] %v4047_v4  ;;  %v2453_v19 = vunpack.i.h.bf16 %v2451_v35  ;;  %v2452_v39 = vunpack.i.l.bf16 %v2451_v35  ;;  %vm5632_vm6 = vmmov %vm5625_vm2 }
 0x38c   :  { %1540 = vmatprep.subr.bf16.mxu1 %v1468_v13  ;;  %v1057_v18 = vsel %vm5605_vm15, %v2297_v60, %v5604_v24  ;;  %vm5630_vm15 = vmmov %vm5625_vm2 }
 0x38d   :  { %v4066_v43 = vsel %vm5609_vm3, %v5608_v57, %v2453_v19  ;;  %v4072_v13 = vsel %vm5612_vm9, %v5611_v20, %v2452_v39  ;;  %1541 = vmatpush1.bf16.msra.mxu1 %v1467_v32  ;;  %v4083_v57 = vsel %vm5614_vm4, %v2452_v39, %v2292_v21  ;;  %v4087_v2 = vsel %vm5616_vm7, %v2453_v19, %v2293_v56  ;;  %vm5634_vm3 = vmmov %vm5625_vm2 }
 0x38e   :  { %5610 = vst [vmem:[#allocation54_spill] sm:$0xff] %v4066_v43  ;;  %5613 = vst [vmem:[#allocation55_spill] sm:$0xff] %v4072_v13  ;;  %v4077_v24 = vpop.permute.xlu0 %2525  ;;  %v4079_v38 = vpop.permute.xlu1 %2470  ;;  %1542 = vmatprep.subr.bf16.mxu1 %v1462_v62  ;;  %v1063_v32 = vsel %vm5618_vm1, %v5457_v8, %v2467_v37  ;;  %v1064_v20 = vsel %vm5619_vm5, %v5458_v25, %v2468_v44  ;;  %v2313_v21 = vunpack.i.h.bf16 %v3676_v7  ;;  %v2312_v39 = vunpack.i.l.bf16 %v3676_v7 }
 0x38f   :  { %5615 = vst [vmem:[#allocation56_spill] sm:$0xff] %v4083_v57  ;;  %5617 = vst [vmem:[#allocation57_spill] sm:$0xff] %v4087_v2  ;;  %v5462_v62 = vunpack.i.h.bf16 %v4079_v38  ;;  %v5461_v51 = vunpack.i.l.bf16 %v4079_v38  ;;  %v1450_v56 = vpack.c.bf16 %v1058_v53, %v1057_v18  ;;  %v1061_v8 = vsel %vm5620_vm8, %v5459_v10, %v2297_v60 }
 0x390   :  { %v1062_v25 = vsel %vm5621_vm10, %v5460_v58, %v2298_v47  ;;  %v1455_v53 = vpack.c.bf16 %v1064_v20, %v1063_v32  ;;  %v5469_v60 = vunpack.i.l.bf16 %v3971_v48  ;;  %v2483_v47 = vunpack.i.h.bf16 %v3941_v63  ;;  %vm5636_vm9 = vmmov %vm5625_vm2 }
 0x391   :  { %1543 = vmatpush1.bf16.msra.mxu1 %v1461_v1  ;;  %v1059_v7 = vsel %vm5622_vm0, %v2467_v37, %v5461_v51  ;;  %v1060_v18 = vsel %vm5623_vm11, %v2468_v44, %v5462_v62  ;;  %v2482_v58 = vunpack.i.l.bf16 %v3941_v63  ;;  %v5624_v20 = vunpack.i.l.bf16 %v3660_v40 }
 0x392   :  { %v4121_v10 = vpop.permute.xlu0 %2535  ;;  %v4123_v35 = vpop.permute.xlu1 %2485  ;;  %v1456_v1 = vpack.c.bf16 %v1060_v18, %v1059_v7  ;;  %v5626_v7 = vunpack.i.h.bf16 %v3660_v40  ;;  %v2327_v19 = vunpack.i.l.bf16 %v3667_v59  ;;  %v2338_v44 = vunpack.i.h.bf16 %v3674_v17 }
 0x393   :  { %v5465_v37 = vunpack.i.h.bf16 %v4123_v35  ;;  %v5463_v51 = vunpack.i.l.bf16 %v4123_v35  ;;  %v985_v62 = vsel %vm5625_vm2, %v2312_v39, %v5624_v20  ;;  %v5631_v63 = vunpack.i.h.bf16 %v3971_v48 }
 0x394   :  { %1544 = vmatprep.subr.bf16.mxu1 %v1456_v1  ;;  %v986_v18 = vsel %vm5627_vm12, %v2313_v21, %v5626_v7  ;;  %v991_v7 = vsel %vm5630_vm15, %v5469_v60, %v2482_v58  ;;  %v1449_v13 = vpack.c.bf16 %v1062_v25, %v1061_v8  ;;  %v2507_v57 = vunpack.i.l.bf16 %v4015_v16 }
 0x395   :  { %1545 = vmatpush1.bf16.msra.mxu1 %v1455_v53  ;;  %v987_v1 = vsel %vm5628_vm13, %v2482_v58, %v5463_v51  ;;  %v988_v20 = vsel %vm5629_vm14, %v2483_v47, %v5465_v37  ;;  %v992_v53 = vsel %vm5632_vm6, %v5631_v63, %v2483_v47  ;;  %v2337_v37 = vunpack.i.l.bf16 %v3674_v17 }
 0x396   :  { %v4158_v32 = vpop.permute.xlu0 %2545  ;;  %v4160_v51 = vpop.permute.xlu1 %2500  ;;  %1546 = vmatprep.subr.bf16.mxu1 %v1450_v56  ;;  %v1438_v2 = vpack.c.bf16 %v986_v18, %v985_v62  ;;  %v5633_v58 = vunpack.i.l.bf16 %v3688_v9  ;;  %v5635_v47 = vunpack.i.h.bf16 %v3688_v9  ;;  %v5470_v56 = vunpack.i.l.bf16 %v3712_v50 }
 0x397   :  { %v1444_v25 = vpack.c.bf16 %v988_v20, %v987_v1  ;;  %v1443_v8 = vpack.c.bf16 %v992_v53, %v991_v7  ;;  %v5474_v43 = vunpack.i.h.bf16 %v4160_v51  ;;  %v5473_v62 = vunpack.i.l.bf16 %v4160_v51 }
 0x398   :  { %v989_v60 = vsel %vm5634_vm3, %v5633_v58, %v2312_v39  ;;  %v990_v63 = vsel %vm5636_vm9, %v5635_v47, %v2313_v21  ;;  %v2498_v18 = vunpack.i.h.bf16 %v3997_v54  ;;  %v2497_v39 = vunpack.i.l.bf16 %v3997_v54 }
 0x399   :  { %1547 = vmatpush1.bf16.msra.mxu1 %v1449_v13  ;;  %v2508_v58 = vunpack.i.h.bf16 %v4015_v16  ;;  %v5479_v20 = vunpack.i.l.bf16 %v4047_v4  ;;  %v1437_v17 = vpack.c.bf16 %v990_v63, %v989_v60  ;;  %vm5638_vm4 = vcmp.lt.s32.totalorder %v2907_v14, 109 }
 0x39a   :  { %v4181_v21 = vpop.permute.xlu0 %2550  ;;  %v4183_v47 = vpop.permute.xlu1 %2510  ;;  %1548 = vmatprep.subr.bf16.mxu1 %v1444_v25  ;;  %v1413_v16 = vsel %vm5638_vm4, %v2337_v37, %v5470_v56  ;;  %vm5639_vm7 = vmmov %vm5638_vm4  ;;  %vm5641_vm5 = vcmp.lt.s32.totalorder %v2907_v14, 19  ;;  %v5643_v54 = vunpack.i.h.bf16 %v3712_v50  ;;  %v5651_v50 = vunpack.i.h.bf16 %v3686_v46 }
 0x39b   :  { %5637 = vst [vmem:[#allocation58_spill] sm:$0xff] %v4183_v47  ;;  %v5472_v7 = vunpack.i.h.bf16 %v4183_v47  ;;  %v5471_v13 = vunpack.i.l.bf16 %v4183_v47  ;;  %vm5640_vm1 = vmmov %vm5638_vm4  ;;  %v915_v60 = vsel %vm5641_vm5, %v2497_v39, %v5473_v62  ;;  %vm5665_vm4 = vcmp.lt.s32.totalorder %v2907_v14, 1 }
 0x39c   :  { %vm5642_vm8 = vmmov %vm5641_vm5 }
 0x39d   :  { %1549 = vmatpush1.bf16.msra.mxu1 %v1443_v8  ;;  %v1415_v25 = vsel %vm5639_vm7, %v2507_v57, %v5471_v13  ;;  %v1416_v1 = vsel %vm5640_vm1, %v2508_v58, %v5472_v7  ;;  %v916_v63 = vsel %vm5642_vm8, %v2498_v18, %v5474_v43  ;;  %vm5644_vm10 = vmmov %vm5640_vm1  ;;  %v5646_v8 = vunpack.i.h.bf16 %v4047_v4 }
 0x39e   :  { %v4213_v13 = vpop.permute.xlu0 %2560  ;;  %v4215_v53 = vpop.permute.xlu1 %2520  ;;  %1550 = vmatprep.subr.bf16.mxu1 %v1438_v2  ;;  %v1528_v7 = vpack.c.bf16 %v1416_v1, %v1415_v25  ;;  %v1414_v62 = vsel %vm5644_vm10, %v2338_v44, %v5643_v54  ;;  %vm5645_vm0 = vmmov %vm5641_vm5  ;;  %v5648_v1 = vunpack.i.l.bf16 %v3686_v46  ;;  %v5650_v54 = vunpack.i.h.bf16 %v3667_v59  ;;  %v833_v59 = vld [vmem:[%s5351_s4 + $0x10] sm:$0xff] }
 0x39f   :  { %v919_v43 = vsel %vm5645_vm0, %v5479_v20, %v2497_v39  ;;  %vm5647_vm11 = vmmov %vm5645_vm0  ;;  %v5484_v47 = vunpack.i.h.bf16 %v4215_v53  ;;  %v1432_v20 = vpack.c.bf16 %v916_v63, %v915_v60  ;;  %v1522_v4 = vpack.c.bf16 %v1414_v62, %v1413_v16 }
 0x3a0   :  { %v920_v56 = vsel %vm5647_vm11, %v5646_v8, %v2498_v18  ;;  %vm5649_vm2 = vmmov %vm5645_vm0  ;;  %1605 = vmatprep.subr.bf16.mxu0 %v1528_v7  ;;  %v5653_v18 = vunpack.i.l.bf16 %v3696_v36  ;;  %v5659_v7 = vmov %v5650_v54  ;;  %vm1533_vm7 = vcmask 261120  }
 0x3a1   :  { %v917_v25 = vsel %vm5649_vm2, %v5648_v1, %v2327_v19  ;;  %vm5652_vm12 = vmmov %vm5645_vm0  ;;  %v5656_v1 = vunpack.i.l.bf16 %v4215_v53  ;;  %1551 = vmatpush1.bf16.msra.mxu1 %v1437_v17 }
 0x3a2   :  { %v918_v39 = vsel %vm5652_vm12, %v5651_v50, %v5650_v54  ;;  %vm5654_vm13 = vmmov %vm5645_vm0  ;;  %v5658_v50 = vunpack.i.h.bf16 %v3696_v36  ;;  %v4267_v62 = vpop.permute.xlu0 %2570  ;;  %v4269_v16 = vpop.permute.xlu1 %2530  ;;  %1552 = vmatprep.subr.bf16.mxu1 %v1432_v20 }
 0x3a3   :  { %v913_v8 = vsel %vm5654_vm13, %v2327_v19, %v5653_v18  ;;  %vm5655_vm14 = vmmov %vm5640_vm1  ;;  %v5661_v19 = vunpack.i.h.bf16 %v3721_v33  ;;  %v2528_v18 = vunpack.i.h.bf16 %v4077_v24 }
 0x3a4   :  { %v1420_v2 = vsel %vm5655_vm14, %v5484_v47, %v2508_v58  ;;  %vm5657_vm15 = vmmov %vm5640_vm1  ;;  %v5663_v58 = vunpack.i.l.bf16 %v3721_v33  ;;  %vm5682_vm14 = vcmp.lt.s32.totalorder %v2907_v14, 17 }
 0x3a5   :  { %v1419_v46 = vsel %vm5657_vm15, %v5656_v1, %v2507_v57  ;;  %vm5660_vm6 = vmmov %vm5645_vm0  ;;  %v1431_v57 = vpack.c.bf16 %v920_v56, %v919_v43  ;;  %v2527_v1 = vunpack.i.l.bf16 %v4077_v24  ;;  %v2533_v43 = vunpack.i.h.bf16 %v4269_v16 }
 0x3a6   :  { %v914_v60 = vsel %vm5660_vm6, %v5659_v7, %v5658_v50  ;;  %vm5662_vm3 = vmmov %vm5640_vm1  ;;  %v1527_v17 = vpack.c.bf16 %v1420_v2, %v1419_v46  ;;  %v2532_v46 = vunpack.i.l.bf16 %v4269_v16  ;;  %v5492_v56 = vunpack.i.l.bf16 %v4158_v32  ;;  %v4291_v47 = vpop.permute.xlu0 %2575 }
 0x3a7   :  { %v1418_v63 = vsel %vm5662_vm3, %v5661_v19, %v2338_v44  ;;  %vm5664_vm9 = vmmov %vm5640_vm1  ;;  %v836_v44 = vld [vmem:[%s5351_s4 + $0x28] sm:$0xff]  ;;  %v1426_v20 = vpack.c.bf16 %v914_v60, %v913_v8  ;;  %1553 = vmatpush1.bf16.msra.mxu1 %v1431_v57  ;;  %v1425_v2 = vpack.c.bf16 %v918_v39, %v917_v25  ;;  %v2538_v19 = vunpack.i.h.bf16 %v4121_v10 }
 0x3a8   :  { %v1417_v54 = vsel %vm5664_vm9, %v5663_v58, %v2337_v37  ;;  %v5485_v37 = vunpack.i.h.bf16 %v4158_v32  ;;  %1606 = vmatpush1.bf16.msra.mxu0 %v1527_v17  ;;  %v1123_v50 = vsel %vm5665_vm4, %v2527_v1, %v2532_v46  ;;  %v4287_v7 = vpack.c.bf16 %v836_v44, %v833_v59  ;;  %v4293_v17 = vpop.permute.xlu1 %2540  ;;  %vm5666_vm1 = vmmov %vm5665_vm4 }
 0x3a9   :  { %1607 = vmatprep.subr.bf16.mxu0 %v1522_v4  ;;  %v1521_v24 = vpack.c.bf16 %v1418_v63, %v1417_v54  ;;  %v2537_v58 = vunpack.i.l.bf16 %v4121_v10  ;;  %1554 = vmatprep.subr.bf16.mxu1 %v1426_v20  ;;  %v1124_v4 = vsel %vm5666_vm1, %v2528_v18, %v2533_v43  ;;  %v5667_v25 = vunpack.i.l.bf16 %v4017_v3  ;;  %vm5668_vm5 = vmmov %vm5666_vm1 }
 0x3aa   :  { %v5669_v8 = vunpack.i.h.bf16 %v4017_v3  ;;  %vm5670_vm8 = vmmov %vm5666_vm1  ;;  %v2543_v60 = vunpack.i.h.bf16 %v4293_v17  ;;  %v2542_v63 = vunpack.i.l.bf16 %v4293_v17  ;;  %v5671_v54 = vunpack.i.h.bf16 %v3729_v34 }
 0x3ab   :  { %v1127_v39 = vsel %vm5668_vm5, %v5667_v25, %v2527_v1  ;;  %v5672_v57 = vunpack.i.h.bf16 %v3647_v45  ;;  %vm5673_vm10 = vmmov %vm5666_vm1  ;;  %vm5674_vm0 = vcmp.lt.s32.totalorder %v2907_v14, 110  ;;  %v5676_v1 = vunpack.i.l.bf16 %v3729_v34  ;;  %1555 = vmatpush1.bf16.msra.mxu1 %v1425_v2 }
 0x3ac   :  { %v1128_v10 = vsel %vm5670_vm8, %v5669_v8, %v2528_v18  ;;  %v1347_v44 = vsel %vm5674_vm0, %v5492_v56, %v2537_v58  ;;  %vm5675_vm11 = vmmov %vm5674_vm0  ;;  %1608 = vmatpush1.bf16.msra.mxu0 %v1521_v24  ;;  %v1470_v18 = vpack.c.bf16 %v1124_v4, %v1123_v50  ;;  %v5677_v20 = vunpack.i.l.bf16 %v3647_v45  ;;  %v4339_v45 = vpop.permute.xlu0 %2585  ;;  %v4341_v4 = vpop.permute.xlu1 %2555 }
 0x3ad   :  { %v1126_v59 = vsel %vm5673_vm10, %v5672_v57, %v5671_v54  ;;  %v1348_v3 = vsel %vm5675_vm11, %v5485_v37, %v2538_v19  ;;  %vm5678_vm2 = vmmov %vm5666_vm1  ;;  %v2552_v8 = vunpack.i.l.bf16 %v4181_v21  ;;  %v1469_v24 = vpack.c.bf16 %v1128_v10, %v1127_v39 }
 0x3ae   :  { %v1125_v25 = vsel %vm5678_vm2, %v5677_v20, %v5676_v1  ;;  %vm5679_vm12 = vmmov %vm5674_vm0  ;;  %v2553_v34 = vunpack.i.h.bf16 %v4181_v21  ;;  %1646 = vmatprep.subr.bf16.mxu0 %v1470_v18  ;;  %v1515_v2 = vpack.c.bf16 %v1348_v3, %v1347_v44  ;;  %v5498_v1 = vunpack.i.h.bf16 %v4341_v4  ;;  %v839_v21 = vld [vmem:[%s5351_s4 + $0x40] sm:$0xff] }
 0x3af   :  { %v1343_v54 = vsel %vm5679_vm12, %v2537_v58, %v2542_v63  ;;  %vm5680_vm13 = vmmov %vm5674_vm0  ;;  %v2557_v20 = vunpack.i.l.bf16 %v4341_v4  ;;  %2161 = vmatmul.mubr.msk.bf16.vlgmr.msra.gmra.mxu0 %vm1533_vm7, %v4287_v7  ;;  %v1463_v58 = vpack.c.bf16 %v1126_v59, %v1125_v25  ;;  %v5681_v39 = vunpack.i.l.bf16 %v4079_v38 }
 0x3b0   :  { %v1344_v50 = vsel %vm5680_vm13, %v2538_v19, %v2543_v60  ;;  %1647 = vmatpush1.bf16.msra.mxu0 %v1469_v24  ;;  %v842_v19 = vld [vmem:[%s5351_s4 + $0x58] sm:$0xff]  ;;  %v5683_v44 = vpack.c.bf16 %v3753_v12, %v3745_v28  ;;  %vm5684_vm15 = vmmov %vm5682_vm14  ;;  %v5686_v18 = vunpack.i.h.bf16 %v4079_v38  ;;  %v5489_v12 = vunpack.i.l.bf16 %v4267_v62  ;;  %v4374_v28 = vpop.permute.xlu0 %2600 }
 0x3b1   :  { %v1516_v57 = vpack.c.bf16 %v1344_v50, %v1343_v54  ;;  %v1055_v10 = vsel %vm5682_vm14, %v5681_v39, %v2552_v8  ;;  %v1051_v59 = vsel %vm5684_vm15, %v2552_v8, %v2557_v20  ;;  %vm5685_vm6 = vmmov %vm5682_vm14  ;;  %v5488_v54 = vunpack.i.h.bf16 %v4267_v62  ;;  %v4376_v50 = vpop.permute.xlu1 %2565 }
 0x3b2   :  { %1648 = vmatprep.subr.bf16.mxu0 %v5683_v44  ;;  %v1052_v3 = vsel %vm5685_vm6, %v2553_v34, %v5498_v1  ;;  %vm5687_vm3 = vmmov %vm5685_vm6  ;;  %v5688_v8 = vpack.c.bf16 %v3771_v26, %v3767_v6  ;;  %v2562_v38 = vunpack.i.l.bf16 %v4213_v13  ;;  %v4385_v39 = vpack.c.bf16 %v842_v19, %v839_v21 }
 0x3b3   :  { %1556 = vmatprep.subr.bf16.mxu1 %v1516_v57  ;;  %v1056_v25 = vsel %vm5687_vm3, %v5686_v18, %v2553_v34  ;;  %v1458_v24 = vpack.c.bf16 %v1052_v3, %v1051_v59  ;;  %v5689_v57 = vmov 0   ;;  %v2567_v34 = vunpack.i.l.bf16 %v4376_v50  ;;  %vm5692_vm9 = vmmov %vm5687_vm3 }
 0x3b4   :  { %1557 = vmatpush2.bf16.msra.mxu1 %v1515_v2  ;;  %1635 = vmatprep.mubr.bf16.mxu0 %v5689_v57  ;;  %v2568_v2 = vunpack.i.h.bf16 %v4376_v50  ;;  %v5690_v44 = vunpack.i.h.bf16 %v3801_v55  ;;  %v5691_v18 = vunpack.i.h.bf16 %v3654_v5  ;;  %v2563_v6 = vunpack.i.h.bf16 %v4213_v13  ;;  %vm5695_vm4 = vmmov %vm5687_vm3  ;;  %v837_v50 = vld [vmem:[%s5351_s4 + $0x30] sm:$0xff] }
 0x3b5   :  { %1558 = vmatprep.subr.bf16.mxu1 %v5688_v8  ;;  %1649 = vmatpush1.bf16.msra.mxu0 %v1463_v58  ;;  %v5693_v26 = vunpack.i.l.bf16 %v3801_v55  ;;  %v5694_v59 = vunpack.i.l.bf16 %v3654_v5  ;;  %v1457_v8 = vpack.c.bf16 %v1056_v25, %v1055_v10  ;;  %v2577_v21 = vunpack.i.l.bf16 %v4291_v47 }
 0x3b6   :  { %v1054_v37 = vsel %vm5692_vm9, %v5691_v18, %v5690_v44  ;;  %v5696_v19 = vpack.c.bf16 %v3795_v0, %v3789_v15  ;;  %1650 = vmatprep.subr.bf16.mxu0 %v1458_v24  ;;  %vm5697_vm1 = vcmp.lt.s32.totalorder %v2907_v14, 111  ;;  %v2578_v58 = vunpack.i.h.bf16 %v4291_v47  ;;  %v4417_v15 = vpop.permute.xlu0 %2605  ;;  %v4419_v0 = vpop.permute.xlu1 %2580 }
 0x3b7   :  { %v1053_v3 = vsel %vm5695_vm4, %v5694_v59, %v5693_v26  ;;  %v1271_v13 = vsel %vm5697_vm1, %v2562_v38, %v2567_v34  ;;  %vm5698_vm5 = vmmov %vm5697_vm1  ;;  %v5495_v25 = vunpack.i.h.bf16 %v4419_v0  ;;  %v5497_v24 = vunpack.i.l.bf16 %v4419_v0  ;;  %2162 = vmatmul.mubr.msk.bf16.gmra.mxu0 %vm1533_vm7, %v4385_v39 }
 0x3b8   :  { %1559 = vmatpush2.bf16.msra.mxu1 %v5696_v19  ;;  %v1275_v55 = vsel %vm5698_vm5, %v5489_v12, %v2562_v38  ;;  %vm5699_vm8 = vmmov %vm5697_vm1  ;;  %v1451_v38 = vpack.c.bf16 %v1054_v37, %v1053_v3  ;;  %1678 = vmatprep.mubr.bf16.mxu0 %v3708_v61  ;;  %v5701_v18 = vunpack.i.l.bf16 %v4123_v35  ;;  %vm5702_vm0 = vcmp.lt.s32.totalorder %v2907_v14, 18 }
 0x3b9   :  { %v1276_v5 = vsel %vm5699_vm8, %v5488_v54, %v2563_v6  ;;  %vm5700_vm10 = vmmov %vm5697_vm1  ;;  %1651 = vmatpush1.bf16.msra.mxu0 %v1457_v8  ;;  %v5706_v3 = vunpack.i.h.bf16 %v4123_v35  ;;  %v5486_v19 = vunpack.i.h.bf16 %v4374_v28  ;;  %vm5709_vm13 = vcmp.lt.s32.totalorder %v2907_v14, 127 }
 0x3ba   :  { %v1272_v10 = vsel %vm5700_vm10, %v2563_v6, %v2568_v2  ;;  %v1503_v47 = vpack.c.bf16 %v1276_v5, %v1275_v55  ;;  %v983_v26 = vsel %vm5702_vm0, %v5701_v18, %v2577_v21  ;;  %v5703_v6 = vpack.c.bf16 %v3829_v31, %v3821_v30  ;;  %vm5704_vm11 = vmmov %vm5702_vm0  ;;  %v4451_v31 = vpop.permute.xlu0 %2620 }
 0x3bb   :  { %v1504_v44 = vpack.c.bf16 %v1272_v10, %v1271_v13  ;;  %v979_v59 = vsel %vm5704_vm11, %v2577_v21, %v5497_v24  ;;  %vm5705_vm2 = vmmov %vm5702_vm0  ;;  %v5487_v30 = vunpack.i.l.bf16 %v4374_v28  ;;  %v4453_v13 = vpop.permute.xlu1 %2590  ;;  %v2588_v55 = vunpack.i.h.bf16 %v4339_v45 }
 0x3bc   :  { %1652 = vmatprep.subr.bf16.mxu0 %v5703_v6  ;;  %v980_v37 = vsel %vm5705_vm2, %v2578_v58, %v5495_v25  ;;  %vm5707_vm12 = vmmov %vm5702_vm0  ;;  %v2587_v5 = vunpack.i.l.bf16 %v4339_v45  ;;  %v5493_v35 = vunpack.i.h.bf16 %v4453_v13  ;;  %v5494_v10 = vunpack.i.l.bf16 %v4453_v13  ;;  %v5749_v25 = vld [vmem:[#allocation52_spill] sm:$0xff] }
 0x3bd   :  { %v984_v8 = vsel %vm5707_vm12, %v5706_v3, %v2578_v58  ;;  %1560 = vmatprep.subr.bf16.mxu1 %v1504_v44  ;;  %v1446_v21 = vpack.c.bf16 %v980_v37, %v979_v59  ;;  %v5708_v58 = vpack.c.bf16 %v3861_v23, %v3855_v22  ;;  %1653 = vmatpush1.bf16.msra.mxu0 %v1451_v38  ;;  %vm5710_vm14 = vmmov %vm5709_vm13  ;;  %v5713_v59 = vunpack.i.h.bf16 %v3893_v29 }
 0x3be   :  { %1561 = vmatpush2.bf16.msra.mxu1 %v1503_v47  ;;  %v1199_v44 = vsel %vm5709_vm13, %v2587_v5, %v5494_v10  ;;  %v1200_v45 = vsel %vm5710_vm14, %v2588_v55, %v5493_v35  ;;  %v1445_v47 = vpack.c.bf16 %v984_v8, %v983_v26  ;;  %vm5711_vm15 = vmmov %vm5709_vm13  ;;  %v4478_v22 = vpop.permute.xlu0 %2625  ;;  %v5714_v37 = vunpack.i.h.bf16 %v3660_v40 }
 0x3bf   :  { %1562 = vmatprep.subr.bf16.mxu1 %v5708_v58  ;;  %1654 = vmatprep.subr.bf16.mxu0 %v1446_v21  ;;  %v1203_v18 = vsel %vm5711_vm15, %v5487_v30, %v2587_v5  ;;  %vm5712_vm6 = vmmov %vm5709_vm13  ;;  %v4480_v38 = vpop.permute.xlu1 %2595  ;;  %v1492_v6 = vpack.c.bf16 %v1200_v45, %v1199_v44  ;;  %v5716_v3 = vunpack.i.l.bf16 %v3893_v29  ;;  %v5717_v8 = vunpack.i.l.bf16 %v3660_v40  ;;  %v831_v30 = vld [vmem:[%s5351_s4] sm:$0xff] }
 0x3c0   :  { %v1204_v23 = vsel %vm5712_vm6, %v5486_v19, %v2588_v55  ;;  %vm5715_vm3 = vmmov %vm5702_vm0  ;;  %v5719_v55 = vpack.c.bf16 %v3887_v42, %v3881_v49  ;;  %v2628_v5 = vunpack.i.h.bf16 %v4478_v22  ;;  %v2627_v58 = vunpack.i.l.bf16 %v4478_v22 }
 0x3c1   :  { %v982_v26 = vsel %vm5715_vm3, %v5714_v37, %v5713_v59  ;;  %vm5718_vm9 = vmmov %vm5702_vm0  ;;  %v2608_v44 = vunpack.i.h.bf16 %v4417_v15  ;;  %v2607_v45 = vunpack.i.l.bf16 %v4417_v15  ;;  %1655 = vmatpush1.bf16.msra.mxu0 %v1445_v47  ;;  %v1491_v29 = vpack.c.bf16 %v1204_v23, %v1203_v18  ;;  %v5721_v59 = vld [vmem:[#allocation43_spill] sm:$0xff] }
 0x3c2   :  { %v981_v21 = vsel %vm5718_vm9, %v5717_v8, %v5716_v3  ;;  %1563 = vmatpush2.bf16.msra.mxu1 %v5719_v55  ;;  %v5720_v40 = vpack.c.bf16 %v3917_v11, %v3909_v41  ;;  %v5722_v37 = vunpack.i.l.bf16 %v5721_v59  ;;  %vm5723_vm4 = vcmp.lt.s32.totalorder %v2907_v14, 1  ;;  %v4518_v18 = vpop.permute.xlu0 %2640 }
 0x3c3   :  { %1564 = vmatprep.subr.bf16.mxu1 %v1492_v6  ;;  %v5724_v49 = vunpack.i.h.bf16 %v5721_v59  ;;  %vm5725_vm1 = vmmov %vm5723_vm4  ;;  %v1439_v47 = vpack.c.bf16 %v982_v26, %v981_v21  ;;  %v4520_v23 = vpop.permute.xlu1 %2610  ;;  %v5726_v3 = vunpack.i.l.bf16 %v4160_v51  ;;  %vm5727_vm5 = vcmp.lt.s32.totalorder %v2907_v14, 19  ;;  %v5730_v21 = vld [vmem:[#allocation46_spill] sm:$0xff] }
 0x3c4   :  { %1656 = vmatprep.subr.bf16.mxu0 %v5720_v40  ;;  %v4508_v42 = vsel %vm5723_vm4, %v2627_v58, %v5722_v37  ;;  %v5490_v41 = vunpack.i.h.bf16 %v4520_v23  ;;  %v5491_v6 = vunpack.i.l.bf16 %v4520_v23  ;;  %v5728_v55 = vunpack.i.h.bf16 %v4160_v51  ;;  %vm5729_vm8 = vmmov %vm5727_vm5  ;;  %v5731_v40 = vld [vmem:[#allocation45_spill] sm:$0xff] }
 0x3c5   :  { %v4516_v15 = vsel %vm5725_vm1, %v2628_v5, %v5724_v49  ;;  %v911_v8 = vsel %vm5727_vm5, %v5726_v3, %v2607_v45  ;;  %v5732_v59 = vpack.c.bf16 %v5730_v21, %v5731_v40  ;;  %1657 = vmatpush1.bf16.msra.mxu0 %v1439_v47  ;;  %vm5733_vm10 = vmmov %vm5727_vm5  ;;  %v5735_v49 = vld [vmem:[#allocation39_spill] sm:$0xff]  ;;  %v5737_v3 = vunpack.i.l.bf16 %v3696_v36 }
 0x3c6   :  { %v1472_v11 = vpack.c.bf16 %v4516_v15, %v4508_v42  ;;  %1565 = vmatpush2.bf16.msra.mxu1 %v1491_v29  ;;  %v912_v26 = vsel %vm5729_vm8, %v5728_v55, %v2608_v44  ;;  %v907_v29 = vsel %vm5733_vm10, %v2607_v45, %v5491_v6  ;;  %vm5734_vm0 = vmmov %vm5727_vm5  ;;  %v5736_v51 = vunpack.i.l.bf16 %v5735_v49  ;;  %v5746_v6 = vld [vmem:[#allocation21_spill] sm:$0xff] }
 0x3c7   :  { %1566 = vmatprep.subr.bf16.mxu1 %v5732_v59  ;;  %v908_v37 = vsel %vm5734_vm0, %v2608_v44, %v5490_v41  ;;  %vm5738_vm11 = vmmov %vm5734_vm0  ;;  %v5739_v21 = vunpack.i.h.bf16 %v5735_v49  ;;  %v5740_v47 = vunpack.i.h.bf16 %v3696_v36  ;;  %v5496_v45 = vunpack.i.l.bf16 %v4480_v38  ;;  %v4558_v59 = vpop.permute.xlu0 %2645  ;;  %v4560_v19 = vpop.permute.xlu1 %2615  ;;  %v834_v49 = vld [vmem:[%s5351_s4 + $0x18] sm:$0xff]  ;;  %v5745_v41 = vld [vmem:[#allocation28_spill] sm:$0xff] }
 0x3c8   :  { %v909_v55 = vsel %vm5738_vm11, %v5737_v3, %v5736_v51  ;;  %vm5741_vm2 = vmmov %vm5734_vm0  ;;  %v1434_v44 = vpack.c.bf16 %v908_v37, %v907_v29  ;;  %v1433_v51 = vpack.c.bf16 %v912_v26, %v911_v8  ;;  %v5742_v36 = vld [vmem:[#allocation49_spill] sm:$0xff]  ;;  %v5743_v3 = vld [vmem:[#allocation48_spill] sm:$0xff]  ;;  %v2598_v12 = vunpack.i.h.bf16 %v4480_v38 }
 0x3c9   :  { %v910_v40 = vsel %vm5741_vm2, %v5740_v47, %v5739_v21  ;;  %v5744_v54 = vpack.c.bf16 %v5742_v36, %v5743_v3  ;;  %v5499_v21 = vunpack.i.h.bf16 %v4558_v59  ;;  %v2647_v47 = vunpack.i.l.bf16 %v4558_v59  ;;  %vm5748_vm12 = vmmov %vm5725_vm1 }
 0x3ca   :  { %v2618_v29 = vunpack.i.h.bf16 %v4560_v19  ;;  %v2617_v37 = vunpack.i.l.bf16 %v4560_v19  ;;  %v5747_v56 = vpack.c.bf16 %v5745_v41, %v5746_v6  ;;  %1658 = vmatprep.subr.bf16.mxu0 %v1434_v44  ;;  %v1427_v8 = vpack.c.bf16 %v910_v40, %v909_v55  ;;  %v5750_v41 = vld [vmem:[#allocation51_spill] sm:$0xff]  ;;  %v5752_v6 = vld [vmem:[#allocation40_spill] sm:$0xff]  ;;  %vm5775_vm10 = vmmov %vm5748_vm12 }
 0x3cb   :  { %1567 = vmatpush2.bf16.msra.mxu1 %v5744_v54  ;;  %v2623_v26 = vunpack.i.h.bf16 %v4451_v31  ;;  %v2622_v54 = vunpack.i.l.bf16 %v4451_v31  ;;  %1659 = vmatpush1.bf16.msra.mxu0 %v1433_v51  ;;  %v4581_v36 = vpack.c.bf16 %v834_v49, %v831_v30  ;;  %v1119_v3 = vsel %vm5748_vm12, %v2532_v46, %v2627_v58  ;;  %v4587_v35 = vpop.permute.xlu0 %2660  ;;  %v2631_v10 = vpop.permute.xlu1 %2630  ;;  %v5759_v49 = vld [vmem:[#allocation27_spill] sm:$0xff]  ;;  %v5760_v51 = vld [vmem:[#allocation20_spill] sm:$0xff] }
 0x3cc   :  { %1568 = vmatprep.subr.bf16.mxu1 %v5747_v56  ;;  %v5751_v56 = vpack.c.bf16 %v5749_v25, %v5750_v41  ;;  %v5753_v55 = vunpack.i.l.bf16 %v5752_v6  ;;  %vm5754_vm13 = vcmp.lt.s32.totalorder %v2907_v14, 110  ;;  %v5755_v31 = vunpack.i.l.bf16 %v3919_v27 }
 0x3cd   :  { %vm5756_vm14 = vcmp.lt.s32.totalorder %v2907_v14, 17  ;;  %v5757_v58 = vunpack.i.h.bf16 %v3919_v27  ;;  %v2643_v40 = vunpack.i.h.bf16 %v4518_v18  ;;  %v2642_v44 = vunpack.i.l.bf16 %v4518_v18  ;;  %vm5766_vm6 = vmmov %vm5754_vm13 }
 0x3ce   :  { %1660 = vmatprep.subr.bf16.mxu0 %v5751_v56  ;;  %v1333_v30 = vsel %vm5754_vm13, %v5753_v55, %v5496_v45  ;;  %v4604_v46 = vsel %vm5756_vm14, %v2647_v47, %v5755_v31  ;;  %vm5758_vm15 = vmmov %vm5756_vm14  ;;  %v5761_v41 = vpack.c.bf16 %v5759_v49, %v5760_v51  ;;  %v2633_v56 = vunpack.i.h.bf16 %v2631_v10  ;;  %v5762_v31 = vld [vmem:[#allocation9_spill] sm:$0xff]  ;;  %v5763_v45 = vld [vmem:[#allocation11_spill] sm:$0xff] }
 0x3cf   :  { %v4612_v25 = vsel %vm5758_vm15, %v5499_v21, %v5757_v58  ;;  %v2632_v55 = vunpack.i.l.bf16 %v2631_v10  ;;  %v5764_v24 = vpack.c.bf16 %v5762_v31, %v5763_v45  ;;  %v5765_v27 = vunpack.i.h.bf16 %v5752_v6  ;;  %vm5768_vm3 = vmmov %vm5756_vm14  ;;  %v838_v6 = vld [vmem:[%s5351_s4 + $0x38] sm:$0xff]  ;;  %1661 = vmatpush1.bf16.msra.mxu0 %v1427_v8  ;;  %v4674_v8 = vpop.permute.xlu1 %2635  ;;  %v5777_v31 = vld [vmem:[#allocation10_spill] sm:$0xff] }
 0x3d0   :  { %1569 = vmatpush2.bf16.msra.mxu1 %v5761_v41  ;;  %v1460_v1 = vpack.c.bf16 %v4612_v25, %v4604_v46  ;;  %v5767_v21 = vunpack.i.l.bf16 %v3669_v52  ;;  %vm5770_vm9 = vmmov %vm5768_vm3  ;;  %v841_v46 = vld [vmem:[%s5351_s4 + $0x50] sm:$0xff]  ;;  %v1120_v17 = vsel %vm5775_vm10, %v2533_v43, %v2628_v5  ;;  %v5500_v16 = vunpack.i.h.bf16 %v4674_v8 }
 0x3d1   :  { %1570 = vmatprep.subr.bf16.mxu1 %v5764_v24  ;;  %v1334_v58 = vsel %vm5766_vm6, %v5765_v27, %v2598_v12  ;;  %v5769_v24 = vunpack.i.h.bf16 %v3669_v52  ;;  %vm5771_vm4 = vmmov %vm5766_vm6  ;;  %v5501_v43 = vunpack.i.l.bf16 %v4674_v8  ;;  %vm5781_vm0 = vcmp.lt.s32.totalorder %v2907_v14, 111 }
 0x3d2   :  { %v4636_v10 = vsel %vm5768_vm3, %v2617_v37, %v5767_v21  ;;  %v1339_v21 = vsel %vm5771_vm4, %v2542_v63, %v2632_v55  ;;  %vm5772_vm1 = vmmov %vm5771_vm4  ;;  %v1512_v5 = vpack.c.bf16 %v1334_v58, %v1333_v30  ;;  %v5784_v58 = vunpack.i.l.bf16 %v3971_v48 }
 0x3d3   :  { %v4644_v45 = vsel %vm5770_vm9, %v2618_v29, %v5769_v24  ;;  %v1340_v52 = vsel %vm5772_vm1, %v2543_v60, %v2633_v56  ;;  %vm5773_vm5 = vmmov %vm5772_vm1  ;;  %v2666_v60 = vpop.permute.xlu0 %2665  ;;  %v4681_v24 = vpack.c.bf16 %v841_v46, %v838_v6  ;;  %v2651_v15 = vpop.permute.xlu1 %2650  ;;  %vm5785_vm2 = vcmp.lt.s32.totalorder %v2907_v14, 18 }
 0x3d4   :  { %v1335_v25 = vsel %vm5773_vm5, %v2632_v55, %v2642_v44  ;;  %vm5774_vm8 = vmmov %vm5772_vm1  ;;  %v1517_v63 = vpack.c.bf16 %v1340_v52, %v1339_v21  ;;  %v1454_v41 = vpack.c.bf16 %v4644_v45, %v4636_v10  ;;  %v5776_v55 = vld [vmem:[#allocation8_spill] sm:$0xff]  ;;  %v2668_v22 = vunpack.i.h.bf16 %v2666_v60  ;;  %v5779_v52 = vld [vmem:[#allocation35_spill] sm:$0xff] }
 0x3d5   :  { %v1336_v49 = vsel %vm5774_vm8, %v2633_v56, %v2643_v40  ;;  %v5778_v27 = vpack.c.bf16 %v5776_v55, %v5777_v31  ;;  %v2667_v56 = vunpack.i.l.bf16 %v2666_v60  ;;  %v1471_v21 = vpack.c.bf16 %v1120_v17, %v1119_v3  ;;  %vm5783_vm11 = vmmov %vm5781_vm0  ;;  %v5788_v55 = vld [vmem:[#allocation56_spill] sm:$0xff] }
 0x3d6   :  { %v1518_v51 = vpack.c.bf16 %v1336_v49, %v1335_v25  ;;  %v5780_v25 = vunpack.i.h.bf16 %v5779_v52  ;;  %v5782_v6 = vunpack.i.l.bf16 %v5779_v52  ;;  %v2663_v60 = vunpack.i.h.bf16 %v4587_v35  ;;  %vm5786_vm12 = vmmov %vm5768_vm3 }
 0x3d7   :  { %1571 = vmatpush2.bf16.msra.mxu1 %v5778_v27  ;;  %v4702_v42 = vpop.permute.xlu0 %2675  ;;  %v2653_v3 = vunpack.i.h.bf16 %v2651_v15  ;;  %v2652_v30 = vunpack.i.l.bf16 %v2651_v15  ;;  %v4709_v17 = vsel %vm5785_vm2, %v2667_v56, %v5784_v58  ;;  %vm5790_vm13 = vmmov %vm5781_vm0  ;;  %v5802_v15 = vunpack.i.h.bf16 %v4341_v4 }
 0x3d8   :  { %1752 = vmatprep.subr.bf16.mxu1 %v1472_v11  ;;  %1662 = vmatprep.subr.bf16.mxu0 %v1518_v51  ;;  %v4692_v49 = vsel %vm5781_vm0, %v5780_v25, %v2623_v26  ;;  %v4698_v46 = vsel %vm5783_vm11, %v5782_v6, %v2622_v54  ;;  %v2662_v11 = vunpack.i.l.bf16 %v4587_v35  ;;  %v5787_v51 = vld [vmem:[#allocation57_spill] sm:$0xff]  ;;  %v1261_v27 = vsel %vm5790_vm13, %v2622_v54, %v5501_v43  ;;  %vm5791_vm14 = vmmov %vm5781_vm0  ;;  %v5796_v54 = vld [vmem:[#allocation42_spill] sm:$0xff] }
 0x3d9   :  { %1663 = vmatpush2.bf16.msra.mxu0 %v1517_v63  ;;  %v1047_v63 = vsel %vm5786_vm12, %v2557_v20, %v2647_v47  ;;  %v5789_v31 = vpack.c.bf16 %v5787_v51, %v5788_v55  ;;  %vm5793_vm15 = vmmov %vm5785_vm2  ;;  %v5797_v25 = vld [vmem:[#allocation41_spill] sm:$0xff]  ;;  %v2656_v55 = vpop.permute.xlu1 %2655 }
 0x3da   :  { %1573 = vmatmul.mubr.bf16.vlgmr.msra.gmra.mxu1 %v4581_v36  ;;  %1664 = vmatprep.subr.bf16.mxu0 %v1512_v5  ;;  %v1262_v5 = vsel %vm5791_vm14, %v2623_v26, %v5500_v16  ;;  %vm5794_vm6 = vmmov %vm5781_vm0  ;;  %v5798_v6 = vpack.c.bf16 %v5796_v54, %v5797_v25  ;;  %v5805_v54 = vld [vmem:[#allocation55_spill] sm:$0xff]  ;;  %v2657_v16 = vunpack.i.l.bf16 %v2656_v55 }
 0x3db   :  { %1753 = vmatpush1.bf16.msra.mxu1 %v1471_v21  ;;  %1582 = vmatprep.mubr.bf16.mxu1 %v4681_v24  ;;  %v5792_v21 = vunpack.i.h.bf16 %v3971_v48  ;;  %v1267_v20 = vsel %vm5794_vm6, %v2567_v34, %v2652_v30  ;;  %vm5795_vm3 = vmmov %vm5781_vm0  ;;  %v5801_v34 = vunpack.i.h.bf16 %v4558_v59  ;;  %v2681_v51 = vpop.permute.xlu0 %2680  ;;  %v1499_v59 = vpack.c.bf16 %v4692_v49, %v4698_v46 }
 0x3dc   :  { %1754 = vmatprep.subr.bf16.mxu1 %v5789_v31  ;;  %v1268_v47 = vsel %vm5795_vm3, %v2568_v2, %v2653_v3  ;;  %vm5799_vm9 = vmmov %vm5781_vm0  ;;  %v840_v2 = vld [vmem:[%s5351_s4 + $0x48] sm:$0xff]  ;;  %v1500_v4 = vpack.c.bf16 %v1262_v5, %v1261_v27 }
 0x3dd   :  { %v972_v52 = vsel %vm5793_vm15, %v2668_v22, %v5792_v21  ;;  %1665 = vmatpush2.bf16.msra.mxu0 %v5798_v6  ;;  %v1263_v48 = vsel %vm5799_vm9, %v2652_v30, %v2662_v11  ;;  %vm5800_vm4 = vmmov %vm5781_vm0  ;;  %v1505_v58 = vpack.c.bf16 %v1268_v47, %v1267_v20  ;;  %v5804_v21 = vld [vmem:[#allocation54_spill] sm:$0xff]  ;;  %v2658_v6 = vunpack.i.h.bf16 %v2656_v55  ;;  %v2671_v19 = vpop.permute.xlu1 %2670 }
 0x3de   :  { %v1264_v26 = vsel %vm5800_vm4, %v2653_v3, %v2663_v60  ;;  %vm5803_vm1 = vmmov %vm5786_vm12  ;;  %v1448_v3 = vpack.c.bf16 %v972_v52, %v4709_v17  ;;  %v5806_v25 = vpack.c.bf16 %v5804_v21, %v5805_v54  ;;  %v4770_v43 = vpack.c.bf16 %v840_v2, %v837_v50  ;;  %v5807_v47 = vld [vmem:[#allocation34_spill] sm:$0xff] }
 0x3df   :  { %v1048_v30 = vsel %vm5803_vm1, %v5802_v15, %v5801_v34  ;;  %v1506_v31 = vpack.c.bf16 %v1264_v26, %v1263_v48  ;;  %v5808_v48 = vunpack.i.h.bf16 %v5807_v47  ;;  %vm5809_vm5 = vmmov %vm5803_vm1  ;;  %v5810_v52 = vunpack.i.l.bf16 %v5807_v47  ;;  %v2691_v5 = vpop.permute.xlu0 %2690 }
 0x3e0   :  { %1755 = vmatpush1.bf16.msra.mxu1 %v5806_v25  ;;  %v1459_v20 = vpack.c.bf16 %v1048_v30, %v1047_v63  ;;  %vm5811_vm8 = vmmov %vm5803_vm1  ;;  %v5814_v63 = vunpack.i.h.bf16 %v4419_v0  ;;  %v5816_v26 = vunpack.i.l.bf16 %v3688_v9  ;;  %v5818_v50 = vunpack.i.h.bf16 %v3688_v9 }
 0x3e1   :  { %1756 = vmatprep.subr.bf16.mxu1 %v1460_v1  ;;  %1666 = vmatprep.subr.bf16.mxu0 %v1506_v31  ;;  %v1046_v17 = vsel %vm5809_vm5, %v5808_v48, %v2618_v29  ;;  %v1045_v49 = vsel %vm5811_vm8, %v5810_v52, %v2617_v37  ;;  %v5812_v1 = vunpack.i.l.bf16 %v4419_v0  ;;  %vm5813_vm10 = vmmov %vm5785_vm2  ;;  %v2678_v29 = vunpack.i.h.bf16 %v4702_v42 }
 0x3e2   :  { %1667 = vmatpush2.bf16.msra.mxu0 %v1505_v58  ;;  %vm5815_vm0 = vmmov %vm5785_vm2  ;;  %v2677_v0 = vunpack.i.l.bf16 %v4702_v42  ;;  %v2683_v2 = vunpack.i.h.bf16 %v2681_v51  ;;  %v2672_v34 = vunpack.i.l.bf16 %v2671_v19  ;;  %v2682_v15 = vunpack.i.l.bf16 %v2681_v51  ;;  %1583 = vmatmul.mubr.bf16.gmra.mxu1 %v4770_v43 }
 0x3e3   :  { %v975_v46 = vsel %vm5813_vm10, %v5812_v1, %v2667_v56  ;;  %v976_v27 = vsel %vm5815_vm0, %v5814_v63, %v2668_v22  ;;  %1668 = vmatprep.subr.bf16.mxu0 %v1500_v4  ;;  %vm5817_vm11 = vmmov %vm5815_vm0  ;;  %v2673_v22 = vunpack.i.h.bf16 %v2671_v19  ;;  %v2693_v30 = vunpack.i.h.bf16 %v2691_v5  ;;  %v2711_v4 = vpop.permute.xlu0 %2710  ;;  %1784 = vmatprep.mubr.bf16.mxu1 %v3708_v61 }
 0x3e4   :  { %v969_v37 = vsel %vm5817_vm11, %v2657_v16, %v5816_v26  ;;  %vm5819_vm2 = vmmov %vm5815_vm0  ;;  %1757 = vmatpush1.bf16.msra.mxu1 %v1459_v20  ;;  %v2692_v58 = vunpack.i.l.bf16 %v2691_v5  ;;  %v1453_v9 = vpack.c.bf16 %v1046_v17, %v1045_v49  ;;  %v5820_v31 = vunpack.i.l.bf16 %v4453_v13  ;;  %v4814_v20 = vpop.permute.xlu1 %2685 }
 0x3e5   :  { %v970_v56 = vsel %vm5819_vm2, %v2658_v6, %v5818_v50  ;;  %1758 = vmatprep.subr.bf16.mxu1 %v1454_v41  ;;  %vm5821_vm12 = vcmp.lt.s32.totalorder %v2907_v14, 127  ;;  %v5822_v54 = vunpack.i.h.bf16 %v4453_v13  ;;  %v1447_v25 = vpack.c.bf16 %v976_v27, %v975_v46  ;;  %v5826_v13 = vld [vmem:[#allocation37_spill] sm:$0xff]  ;;  %v5838_v50 = vld [vmem:[#allocation36_spill] sm:$0xff]  ;;  %vm5840_vm8 = vmmov %vm5815_vm0 }
 0x3e6   :  { %v1442_v55 = vpack.c.bf16 %v970_v56, %v969_v37  ;;  %v1195_v21 = vsel %vm5821_vm12, %v5820_v31, %v2672_v34  ;;  %vm5823_vm13 = vmmov %vm5821_vm12  ;;  %1669 = vmatpush2.bf16.msra.mxu0 %v1499_v59  ;;  %v5827_v41 = vunpack.i.h.bf16 %v5826_v13  ;;  %v2688_v48 = vunpack.i.h.bf16 %v4814_v20  ;;  %v5831_v46 = vld [vmem:[#allocation53_spill] sm:$0xff] }
 0x3e7   :  { %v1196_v51 = vsel %vm5823_vm13, %v5822_v54, %v2673_v22  ;;  %vm5824_vm14 = vmmov %vm5821_vm12  ;;  %v2687_v17 = vunpack.i.l.bf16 %v4814_v20  ;;  %v5829_v52 = vunpack.i.l.bf16 %v5826_v13  ;;  %v5832_v61 = vunpack.i.l.bf16 %v5831_v46  ;;  %v4859_v31 = vpop.permute.xlu0 %2715 }
 0x3e8   :  { %v1191_v10 = vsel %vm5824_vm14, %v2672_v34, %v2677_v0  ;;  %vm5825_vm15 = vmmov %vm5821_vm12  ;;  %v1493_v47 = vpack.c.bf16 %v1196_v51, %v1195_v21  ;;  %1759 = vmatpush1.bf16.msra.mxu1 %v1453_v9  ;;  %vm5833_vm9 = vcmp.lt.s32.totalorder %v2907_v14, 19  ;;  %v5834_v27 = vunpack.i.h.bf16 %v5831_v46  ;;  %v2696_v21 = vpop.permute.xlu1 %2695 }
 0x3e9   :  { %v1192_v45 = vsel %vm5825_vm15, %v2673_v22, %v2678_v29  ;;  %vm5828_vm6 = vmmov %vm5821_vm12  ;;  %1760 = vmatprep.subr.bf16.mxu1 %v1448_v3  ;;  %v899_v63 = vsel %vm5833_vm9, %v2692_v58, %v5832_v61  ;;  %v2713_v19 = vunpack.i.h.bf16 %v2711_v4  ;;  %v2712_v26 = vunpack.i.l.bf16 %v2711_v4 }
 0x3ea   :  { %v1194_v59 = vsel %vm5828_vm6, %v5827_v41, %v2683_v2  ;;  %vm5830_vm3 = vmmov %vm5828_vm6  ;;  %v1494_v1 = vpack.c.bf16 %v1192_v45, %v1191_v10  ;;  %v5839_v56 = vunpack.i.h.bf16 %v5838_v50  ;;  %v5841_v34 = vunpack.i.l.bf16 %v5838_v50  ;;  %v5859_v50 = vld [vmem:[#allocation38_spill] sm:$0xff] }
 0x3eb   :  { %v1193_v49 = vsel %vm5830_vm3, %v5829_v52, %v2682_v15  ;;  %vm5835_vm4 = vmmov %vm5833_vm9  ;;  %v2698_v51 = vunpack.i.h.bf16 %v2696_v21  ;;  %v5847_v41 = vunpack.i.l.bf16 %v4520_v23 }
 0x3ec   :  { %v900_v5 = vsel %vm5835_vm4, %v2693_v30, %v5834_v27  ;;  %vm5836_vm1 = vmmov %vm5830_vm3  ;;  %v974_v22 = vsel %vm5840_vm8, %v5839_v56, %v2658_v6  ;;  %1670 = vmatprep.subr.bf16.mxu0 %v1494_v1  ;;  %1761 = vmatpush1.bf16.msra.mxu1 %v1447_v25  ;;  %v1487_v4 = vpack.c.bf16 %v1194_v59, %v1193_v49  ;;  %v5843_v6 = vunpack.i.l.bf16 %v4158_v32  ;;  %v2701_v52 = vpop.permute.xlu1 %2700  ;;  %v5851_v49 = vld [vmem:[#allocation32_spill] sm:$0xff]  ;;  %v5857_v27 = vld [vmem:[#allocation23_spill] sm:$0xff] }
 0x3ed   :  { %v1189_v37 = vsel %vm5836_vm1, %v2682_v15, %v2687_v17  ;;  %vm5837_vm5 = vmmov %vm5836_vm1  ;;  %v1436_v54 = vpack.c.bf16 %v900_v5, %v899_v63  ;;  %1671 = vmatpush2.bf16.msra.mxu0 %v1493_v47  ;;  %1762 = vmatprep.subr.bf16.mxu1 %v1442_v55  ;;  %v5849_v55 = vunpack.i.h.bf16 %v4520_v23  ;;  %v4877_v47 = vpop.permute.xlu0 %2725  ;;  %v5852_v1 = vunpack.i.l.bf16 %v5851_v49  ;;  %v5856_v63 = vld [vmem:[#allocation30_spill] sm:$0xff] }
 0x3ee   :  { %v1190_v3 = vsel %vm5837_vm5, %v2683_v2, %v2688_v48  ;;  %vm5842_vm10 = vmmov %vm5815_vm0  ;;  %v2697_v2 = vunpack.i.l.bf16 %v2696_v21  ;;  %vm5844_vm0 = vcmp.lt.s32.totalorder %v2907_v14, 110  ;;  %v5854_v46 = vunpack.i.h.bf16 %v5851_v49  ;;  %v5875_v49 = vld [vmem:[#allocation15_spill] sm:$0xff] }
 0x3ef   :  { %v973_v9 = vsel %vm5842_vm10, %v5841_v34, %v2657_v16  ;;  %v1488_v15 = vpack.c.bf16 %v1190_v3, %v1189_v37  ;;  %v1351_v45 = vsel %vm5844_vm0, %v2712_v26, %v5843_v6  ;;  %v5845_v16 = vunpack.i.h.bf16 %v4158_v32  ;;  %vm5846_vm11 = vmmov %vm5844_vm0 }
 0x3f0   :  { %v1441_v10 = vpack.c.bf16 %v974_v22, %v973_v9  ;;  %vm5848_vm2 = vmmov %vm5835_vm4  ;;  %v2702_v23 = vunpack.i.l.bf16 %v2701_v52  ;;  %v5860_v56 = vunpack.i.l.bf16 %v5859_v50  ;;  %v5862_v34 = vunpack.i.h.bf16 %v5859_v50 }
 0x3f1   :  { %1672 = vmatprep.subr.bf16.mxu0 %v1488_v15  ;;  %v1352_v13 = vsel %vm5846_vm11, %v2713_v19, %v5845_v16  ;;  %v903_v25 = vsel %vm5848_vm2, %v5847_v41, %v2692_v58  ;;  %vm5850_vm12 = vmmov %vm5848_vm2  ;;  %v2703_v58 = vunpack.i.h.bf16 %v2701_v52  ;;  %v2717_v21 = vunpack.i.l.bf16 %v4859_v31  ;;  %v5864_v15 = vld [vmem:[#allocation50_spill] sm:$0xff]  ;;  %v4907_v16 = vpop.permute.xlu1 %2705 }
 0x3f2   :  { %v904_v59 = vsel %vm5850_vm12, %v5849_v55, %v2693_v30  ;;  %vm5853_vm13 = vmmov %vm5848_vm2  ;;  %1673 = vmatpush2.bf16.msra.mxu0 %v1487_v4  ;;  %1763 = vmatpush1.bf16.msra.mxu1 %v1441_v10  ;;  %v5858_v30 = vpack.c.bf16 %v5856_v63, %v5857_v27  ;;  %v1520_v37 = vpack.c.bf16 %v1352_v13, %v1351_v45  ;;  %v5865_v4 = vunpack.i.l.bf16 %v5864_v15  ;;  %v2731_v45 = vpop.permute.xlu0 %2730  ;;  %v5872_v55 = vld [vmem:[#allocation22_spill] sm:$0xff] }
 0x3f3   :  { %v897_v32 = vsel %vm5853_vm13, %v2697_v2, %v5852_v1  ;;  %vm5855_vm14 = vmmov %vm5848_vm2  ;;  %1764 = vmatprep.subr.bf16.mxu1 %v1436_v54  ;;  %v1435_v3 = vpack.c.bf16 %v904_v59, %v903_v25  ;;  %v5867_v10 = vunpack.i.h.bf16 %v5864_v15  ;;  %v5874_v52 = vld [vmem:[#allocation18_spill] sm:$0xff]  ;;  %vm5877_vm5 = vcmp.lt.s32.totalorder %v2907_v14, 111 }
 0x3f4   :  { %v898_v61 = vsel %vm5855_vm14, %v2698_v51, %v5854_v46  ;;  %1674 = vmatprep.subr.bf16.mxu0 %v5858_v30  ;;  %vm5861_vm15 = vmmov %vm5844_vm0  ;;  %v5876_v1 = vpack.c.bf16 %v5874_v52, %v5875_v49  ;;  %v4928_v18 = vsel %vm5877_vm5, %v2662_v11, %v2717_v21  ;;  %v2732_v15 = vunpack.i.l.bf16 %v2731_v45 }
 0x3f5   :  { %v1430_v5 = vpack.c.bf16 %v898_v61, %v897_v32  ;;  %v1349_v22 = vsel %vm5861_vm15, %v2702_v23, %v5860_v56  ;;  %vm5863_vm6 = vmmov %vm5844_vm0  ;;  %v5879_v61 = vld [vmem:[#allocation14_spill] sm:$0xff]  ;;  %v1330_v56 = vsel %vm5844_vm0, %v2598_v12, %v2703_v58 }
 0x3f6   :  { %v1350_v9 = vsel %vm5863_vm6, %v2703_v58, %v5862_v34  ;;  %vm5866_vm3 = vmmov %vm5848_vm2  ;;  %1765 = vmatpush1.bf16.msra.mxu1 %v1435_v3  ;;  %v5883_v3 = vunpack.i.l.bf16 %v4480_v38  ;;  %v5885_v34 = vunpack.i.h.bf16 %v4267_v62  ;;  %v2707_v58 = vunpack.i.l.bf16 %v4907_v16 }
 0x3f7   :  { %v901_v54 = vsel %vm5866_vm3, %v5865_v4, %v2697_v2  ;;  %vm5868_vm9 = vmmov %vm5848_vm2  ;;  %v1514_v13 = vpack.c.bf16 %v1350_v9, %v1349_v22  ;;  %v5871_v2 = vld [vmem:[#allocation29_spill] sm:$0xff]  ;;  %1766 = vmatprep.subr.bf16.mxu1 %v1430_v5  ;;  %v5881_v5 = vunpack.i.l.bf16 %v4267_v62  ;;  %v2733_v22 = vunpack.i.h.bf16 %v2731_v45  ;;  %v5887_v4 = vld [vmem:[#allocation58_spill] sm:$0xff] }
 0x3f8   :  { %v902_v6 = vsel %vm5868_vm9, %v5867_v10, %v2698_v51  ;;  %vm5869_vm4 = vmmov %vm5844_vm0  ;;  %v5873_v59 = vpack.c.bf16 %v5871_v2, %v5872_v55  ;;  %v2718_v51 = vunpack.i.h.bf16 %v4859_v31  ;;  %v5878_v31 = vld [vmem:[#allocation17_spill] sm:$0xff]  ;;  %vm5889_vm2 = vcmp.lt.s32.totalorder %v2907_v14, 109 }
 0x3f9   :  { %v1331_v41 = vsel %vm5869_vm4, %v2642_v44, %v2712_v26  ;;  %vm5870_vm1 = vmmov %vm5844_vm0  ;;  %v1429_v32 = vpack.c.bf16 %v902_v6, %v901_v54  ;;  %v4931_v44 = vpop.permute.xlu0 %2740  ;;  %v2727_v26 = vunpack.i.l.bf16 %v4877_v47  ;;  %v5880_v63 = vpack.c.bf16 %v5878_v31, %v5879_v61 }
 0x3fa   :  { %v1332_v25 = vsel %vm5870_vm1, %v2643_v40, %v2713_v19  ;;  %1675 = vmatpush2.bf16.msra.mxu0 %v5873_v59  ;;  %v2728_v40 = vunpack.i.h.bf16 %v4877_v47  ;;  %v2721_v19 = vpop.permute.xlu1 %2720  ;;  %vm5882_vm8 = vmmov %vm5877_vm5  ;;  %v5888_v54 = vunpack.i.l.bf16 %v5887_v4  ;;  %v5890_v38 = vunpack.i.h.bf16 %v5887_v4 }
 0x3fb   :  { %1676 = vmatprep.subr.bf16.mxu0 %v5876_v1  ;;  %v1519_v46 = vpack.c.bf16 %v1332_v25, %v1331_v41  ;;  %1767 = vmatpush1.bf16.msra.mxu1 %v1429_v32  ;;  %v2723_v27 = vunpack.i.h.bf16 %v2721_v19  ;;  %v2722_v30 = vunpack.i.l.bf16 %v2721_v19  ;;  %v1279_v11 = vsel %vm5882_vm8, %v2717_v21, %v5881_v5  ;;  %vm5884_vm10 = vmmov %vm5844_vm0  ;;  %v5895_v1 = vld [vmem:[#allocation33_spill] sm:$0xff] }
 0x3fc   :  { %v1329_v50 = vsel %vm5884_vm10, %v5883_v3, %v2702_v23  ;;  %1768 = vmatprep.subr.bf16.mxu1 %v1520_v37  ;;  %vm5886_vm11 = vmmov %vm5877_vm5  ;;  %v2708_v21 = vunpack.i.h.bf16 %v4907_v16  ;;  %v5896_v32 = vunpack.i.l.bf16 %v5895_v1  ;;  %v5898_v19 = vunpack.i.h.bf16 %v5895_v1 }
 0x3fd   :  { %v1280_v9 = vsel %vm5886_vm11, %v2718_v51, %v5885_v34  ;;  %v1411_v23 = vsel %vm5889_vm2, %v5888_v54, %v2722_v30  ;;  %vm5891_vm12 = vmmov %vm5889_vm2  ;;  %v2751_v62 = vpop.permute.xlu0 %2750  ;;  %v1513_v59 = vpack.c.bf16 %v1330_v56, %v1329_v50  ;;  %v5907_v50 = vunpack.i.l.bf16 %v4215_v53 }
 0x3fe   :  { %1677 = vmatpush2.bf16.msra.mxu0 %v5880_v63  ;;  %v1412_v12 = vsel %vm5891_vm12, %v5890_v38, %v2723_v27  ;;  %v4964_v10 = vpop.permute.xlu1 %2735  ;;  %vm5892_vm13 = vmmov %vm5889_vm2  ;;  %v2753_v41 = vunpack.i.h.bf16 %v2751_v62  ;;  %v2752_v25 = vunpack.i.l.bf16 %v2751_v62  ;;  %v1508_v49 = vpack.c.bf16 %v1280_v9, %v1279_v11 }
 0x3ff   :  { %v1529_v37 = vpack.c.bf16 %v1412_v12, %v1411_v23  ;;  %v1407_v6 = vsel %vm5892_vm13, %v2722_v30, %v2727_v26  ;;  %vm5893_vm14 = vmmov %vm5889_vm2  ;;  %1769 = vmatpush2.bf16.msra.mxu1 %v1519_v46  ;;  %v2738_v16 = vunpack.i.h.bf16 %v4964_v10  ;;  %v2737_v2 = vunpack.i.l.bf16 %v4964_v10 }
 0x400   :  { %v1408_v45 = vsel %vm5893_vm14, %v2723_v27, %v2728_v40  ;;  %vm5894_vm15 = vmmov %vm5877_vm5  ;;  %1770 = vmatprep.subr.bf16.mxu1 %v1514_v13  ;;  %v2743_v13 = vunpack.i.h.bf16 %v4931_v44  ;;  %v5902_v27 = vld [vmem:[#allocation44_spill] sm:$0xff]  ;;  %v5909_v56 = vunpack.i.h.bf16 %v4215_v53  ;;  %v5913_v54 = vunpack.i.h.bf16 %v4674_v8 }
 0x401   :  { %1679 = vmatmul.mubr.bf16.vlgmr.msra.gmra.mxu0 %v4581_v36  ;;  %v1260_v55 = vsel %vm5894_vm15, %v2663_v60, %v2718_v51  ;;  %v1530_v52 = vpack.c.bf16 %v1408_v45, %v1407_v6  ;;  %vm5897_vm6 = vmmov %vm5889_vm2  ;;  %v2742_v51 = vunpack.i.l.bf16 %v4931_v44  ;;  %v5903_v30 = vunpack.i.l.bf16 %v5902_v27 }
 0x402   :  { %1688 = vmatprep.mubr.bf16.mxu0 %v4681_v24  ;;  %v1409_v46 = vsel %vm5897_vm6, %v5896_v32, %v2732_v15  ;;  %vm5899_vm3 = vmmov %vm5889_vm2  ;;  %v2746_v61 = vpop.permute.xlu1 %2745  ;;  %v5905_v11 = vunpack.i.h.bf16 %v5902_v27  ;;  %v1507_v34 = vpack.c.bf16 %v1260_v55, %v4928_v18  ;;  %v5917_v62 = vunpack.i.h.bf16 %v4374_v28  ;;  %v5942_v27 = vld [vmem:[#allocation13_spill] sm:$0xff] }
 0x403   :  { %v1410_v31 = vsel %vm5899_vm3, %v5898_v19, %v2733_v22  ;;  %vm5900_vm9 = vmmov %vm5889_vm2  ;;  %1711 = vmatprep.subr.bf16.mxu0 %v1530_v52  ;;  %1771 = vmatpush2.bf16.msra.mxu1 %v1513_v59  ;;  %v2748_v6 = vunpack.i.h.bf16 %v2746_v61 }
 0x404   :  { %v1405_v35 = vsel %vm5900_vm9, %v2732_v15, %v2737_v2  ;;  %vm5901_vm4 = vmmov %vm5889_vm2  ;;  %1712 = vmatpush1.bf16.msra.mxu0 %v1529_v37  ;;  %1772 = vmatprep.subr.bf16.mxu1 %v1508_v49  ;;  %v1523_v9 = vpack.c.bf16 %v1410_v31, %v1409_v46  ;;  %v5911_v15 = vunpack.i.l.bf16 %v4674_v8  ;;  %v5915_v37 = vunpack.i.l.bf16 %v4374_v28 }
 0x405   :  { %v1406_v60 = vsel %vm5901_vm4, %v2733_v22, %v2738_v16  ;;  %vm5904_vm1 = vmmov %vm5877_vm5  ;;  %v2747_v8 = vunpack.i.l.bf16 %v2746_v61  ;;  %v5920_v28 = vunpack.i.l.bf16 %v3721_v33  ;;  %v5922_v49 = vunpack.i.h.bf16 %v3721_v33  ;;  %v5926_v33 = vld [vmem:[#allocation47_spill] sm:$0xff] }
 0x406   :  { %v1524_v63 = vpack.c.bf16 %v1406_v60, %v1405_v35  ;;  %v1277_v5 = vsel %vm5904_vm1, %v2707_v58, %v5903_v30  ;;  %vm5906_vm5 = vmmov %vm5904_vm1  ;;  %v2756_v53 = vpop.permute.xlu1 %2755  ;;  %v5927_v31 = vunpack.i.l.bf16 %v5926_v33  ;;  %v5929_v35 = vunpack.i.h.bf16 %v5926_v33 }
 0x407   :  { %v1278_v3 = vsel %vm5906_vm5, %v2708_v21, %v5905_v11  ;;  %vm5908_vm8 = vmmov %vm5889_vm2  ;;  %1773 = vmatpush2.bf16.msra.mxu1 %v1507_v34  ;;  %v2757_v45 = vunpack.i.l.bf16 %v2756_v53  ;;  %v5945_v11 = vld [vmem:[#allocation16_spill] sm:$0xff] }
 0x408   :  { %v1423_v44 = vsel %vm5908_vm8, %v2752_v25, %v5907_v50  ;;  %vm5910_vm10 = vmmov %vm5889_vm2  ;;  %1713 = vmatprep.subr.bf16.mxu0 %v1524_v63  ;;  %v1502_v38 = vpack.c.bf16 %v1278_v3, %v1277_v5  ;;  %vm5916_vm2 = vcmp.lt.s32.totalorder %v2907_v14, 127  ;;  %v5938_v14 = vld [vmem:[#allocation31_spill] sm:$0xff]  ;;  %v5941_v63 = vld [vmem:[#allocation12_spill] sm:$0xff] }
 0x409   :  { %v1424_v22 = vsel %vm5910_vm10, %v2753_v41, %v5909_v56  ;;  %vm5912_vm0 = vmmov %vm5904_vm1  ;;  %1689 = vmatmul.mubr.bf16.gmra.mxu0 %v4770_v43  ;;  %v1207_v18 = vsel %vm5916_vm2, %v2742_v51, %v5915_v37  ;;  %v5943_v30 = vpack.c.bf16 %v5941_v63, %v5942_v27  ;;  %v5944_v5 = vld [vmem:[#allocation19_spill] sm:$0xff] }
 0x40a   :  { %v1257_v4 = vsel %vm5912_vm0, %v5911_v15, %v2707_v58  ;;  %vm5914_vm11 = vmmov %vm5912_vm0  ;;  %v1532_v12 = vpack.c.bf16 %v1424_v22, %v1423_v44  ;;  %1714 = vmatpush1.bf16.msra.mxu0 %v1523_v9  ;;  %1774 = vmatprep.subr.bf16.mxu1 %v1502_v38  ;;  %v5946_v3 = vpack.c.bf16 %v5944_v5, %v5945_v11 }
 0x40b   :  { %v1258_v23 = vsel %vm5914_vm11, %v5913_v54, %v2708_v21  ;;  %vm5918_vm12 = vmmov %vm5916_vm2  ;;  %v2758_v21 = vunpack.i.h.bf16 %v2756_v53  ;;  %1731 = vmatprep.mubr.bf16.mxu0 %v5689_v57 }
 0x40c   :  { %v1208_v58 = vsel %vm5918_vm12, %v2743_v13, %v5917_v62  ;;  %1817 = vmatprep.subr.bf16.mxu0 %v1532_v12  ;;  %v1501_v55 = vpack.c.bf16 %v1258_v23, %v1257_v4  ;;  %vm5919_vm13 = vmmov %vm5916_vm2 }
 0x40d   :  { %v1187_v59 = vsel %vm5919_vm13, %v2677_v0, %v2742_v51  ;;  %vm5921_vm14 = vmmov %vm5899_vm3  ;;  %v1403_v0 = vsel %vm5899_vm3, %v2727_v26, %v2752_v25  ;;  %v1496_v19 = vpack.c.bf16 %v1208_v58, %v1207_v18 }
 0x40e   :  { %v1421_v52 = vsel %vm5921_vm14, %v2757_v45, %v5920_v28  ;;  %vm5923_vm15 = vmmov %vm5899_vm3  ;;  %1775 = vmatpush2.bf16.msra.mxu1 %v1501_v55 }
 0x40f   :  { %v1422_v1 = vsel %vm5923_vm15, %v2758_v21, %v5922_v49  ;;  %vm5924_vm6 = vmmov %vm5916_vm2  ;;  %1776 = vmatprep.subr.bf16.mxu1 %v1496_v19 }
 0x410   :  { %v1188_v32 = vsel %vm5924_vm6, %v2678_v29, %v2743_v13  ;;  %vm5925_vm9 = vmmov %vm5899_vm3  ;;  %v1526_v60 = vpack.c.bf16 %v1422_v1, %v1421_v52  ;;  %v5947_v52 = vld [vmem:[#allocation3_spill] sm:$0xff] }
 0x411   :  { %v1404_v46 = vsel %vm5925_vm9, %v2728_v40, %v2753_v41  ;;  %vm5928_vm4 = vmmov %vm5916_vm2  ;;  %v1495_v26 = vpack.c.bf16 %v1188_v32, %v1187_v59  ;;  %2163 = vmatmul.mubr.msk.bf16.vlgmr.msra.gmra.mxu0 %vm1533_vm7, %v4287_v7 }
 0x412   :  { %v1205_v42 = vsel %vm5928_vm4, %v2747_v8, %v5927_v31  ;;  %vm5930_vm1 = vmmov %vm5916_vm2  ;;  %v1531_v25 = vpack.c.bf16 %v1404_v46, %v1403_v0  ;;  %1741 = vmatprep.mubr.bf16.mxu0 %v5689_v57 }
 0x413   :  { %v1206_v29 = vsel %vm5930_vm1, %v2748_v6, %v5929_v35  ;;  %vm5931_vm5 = vmmov %vm5930_vm1  ;;  %1777 = vmatpush2.bf16.msra.mxu1 %v1495_v26 }
 0x414   :  { %v1185_v47 = vsel %vm5931_vm5, %v2687_v17, %v2747_v8  ;;  %vm5932_vm8 = vmmov %vm5930_vm1  ;;  %v1490_v51 = vpack.c.bf16 %v1206_v29, %v1205_v42  ;;  %1818 = vmatpush1.bf16.msra.mxu0 %v1531_v25  ;;  %v5948_v42 = vld [vmem:[#allocation2_spill] sm:$0xff] }
 0x415   :  { %v1186_v40 = vsel %vm5932_vm8, %v2688_v48, %v2748_v6  ;;  %vm5933_vm10 = vmmov %vm5899_vm3  ;;  %1819 = vmatprep.subr.bf16.mxu0 %v1526_v60  ;;  %v5935_v48 = vld [vmem:[#allocation24_spill] sm:$0xff] }
 0x416   :  { %v1401_v41 = vsel %vm5933_vm10, %v2737_v2, %v2757_v45  ;;  %vm5934_vm0 = vmmov %vm5899_vm3  ;;  %1778 = vmatprep.subr.bf16.mxu1 %v1490_v51  ;;  %v1489_v20 = vpack.c.bf16 %v1186_v40, %v1185_v47  ;;  %v5936_v2 = vld [vmem:[#allocation26_spill] sm:$0xff] }
 0x417   :  { %v1402_v13 = vsel %vm5934_vm0, %v2738_v16, %v2758_v21  ;;  %v5937_v10 = vpack.c.bf16 %v5935_v48, %v5936_v2  ;;  %v5939_v16 = vld [vmem:[#allocation25_spill] sm:$0xff] }
 0x418   :  { %v1525_v17 = vpack.c.bf16 %v1402_v13, %v1401_v41  ;;  %1779 = vmatpush2.bf16.msra.mxu1 %v1489_v20  ;;  %v5940_v61 = vpack.c.bf16 %v5938_v14, %v5939_v16  ;;  %v5949_v20 = vld [vmem:[#allocation4_spill] sm:$0xff] }
 0x419   :  { %1780 = vmatprep.subr.bf16.mxu1 %v5937_v10  ;;  %2164 = vmatmul.mubr.msk.bf16.gmra.mxu0 %vm1533_vm7, %v4385_v39 }
 0x41a   :  { %1820 = vmatpush1.bf16.msra.mxu0 %v1525_v17  ;;  %1837 = vmatprep.mubr.bf16.mxu0 %v5689_v57 }
 0x41c   :  { %1781 = vmatpush2.bf16.msra.mxu1 %v5940_v61 }
 0x41d   :  { %1782 = vmatprep.subr.bf16.mxu1 %v5943_v30 }
 0x420   :  { %1783 = vmatpush2.bf16.msra.mxu1 %v5946_v3 }
 0x421   :  { %2165 = vmatmul.mubr.msk.bf16.vlgmr.msra.gmra.mxu0 %vm1533_vm7, %v4287_v7 }
 0x422   :  { %1847 = vmatprep.mubr.bf16.mxu0 %v5689_v57 }
 0x423   :  { %1785 = vmatmul.mubr.bf16.vlgmr.msra.gmra.mxu1 %v4581_v36 }
 0x424   :  { %1794 = vmatprep.mubr.bf16.mxu1 %v4681_v24 }
 0x429   :  { %2166 = vmatmul.mubr.msk.bf16.gmra.mxu0 %vm1533_vm7, %v4385_v39 }
 0x42b   :  { %1795 = vmatmul.mubr.bf16.gmra.mxu1 %v4770_v43 }
 0x46f   :  { %v1627_v50 = vpop.f32.mrf.mxu0 }
 0x471   :  { %v1629_v44 = vpop.f32.mrf.mxu0 }
 0x473   :  { %v1631_v56 = vpop.f32.mrf.mxu0 }
 0x475   :  { %v1633_v22 = vpop.f32.mrf.mxu0 }
 0x477   :  { %v1637_v34 = vpop.f32.mrf.mxu0 }
 0x479   :  { %v1639_v9 = vpop.f32.mrf.mxu0 }
 0x47b   :  { %v1641_v36 = vpop.f32.mrf.mxu0 }
 0x47d   :  { %v1643_v54 = vpop.f32.mrf.mxu0 }
 0x49a   :  { %v1574_v15 = vpop.f32.mrf.mxu1 }
 0x49b   :  { %v5108_v45 = vadd.f32 %v1627_v50, %v1574_v15 }
 0x49c   :  { %v1576_v4 = vpop.f32.mrf.mxu1 }
 0x49d   :  { %v5106_v8 = vadd.f32 %v1629_v44, %v1576_v4  ;;  %v1866_v35 = vmul.f32 %v5948_v42, %v5108_v45 }
 0x49e   :  { %v1578_v23 = vpop.f32.mrf.mxu1 }
 0x49f   :  { %v1867_v49 = vmul.f32 %v5947_v52, %v5106_v8  ;;  %v5114_v1 = vadd.f32 %v1631_v56, %v1578_v23  ;;  %v1922_v10 = vmul.f32 %v1866_v35, %v5108_v45 }
 0x4a0   :  { %v1580_v57 = vpop.f32.mrf.mxu1 }
 0x4a1   :  { %v5110_v55 = vadd.f32 %v1633_v22, %v1580_v57  ;;  %v1923_v25 = vmul.f32 %v1867_v49, %v5106_v8  ;;  %v1872_v47 = vmul.f32 %v5948_v42, %v5114_v1  ;;  %v1890_v61 = vadd.f32 %v1867_v49, %v1866_v35 }
 0x4a2   :  { %v1584_v43 = vpop.f32.mrf.mxu1 }
 0x4a3   :  { %v5116_v32 = vadd.f32 %v1637_v34, %v1584_v43  ;;  %v1873_v29 = vmul.f32 %v5947_v52, %v5110_v55  ;;  %v1946_v5 = vadd.f32 %v1923_v25, %v1922_v10  ;;  %v1928_v11 = vmul.f32 %v1872_v47, %v5114_v1  ;;  %v5950_v34 = vld [vmem:[#allocation5_spill] sm:$0xff] }
 0x4a4   :  { %v1586_v39 = vpop.f32.mrf.mxu1 }
 0x4a5   :  { %v5118_v0 = vadd.f32 %v1639_v9, %v1586_v39  ;;  %v1878_v40 = vmul.f32 %v5948_v42, %v5116_v32  ;;  %v1929_v14 = vmul.f32 %v1873_v29, %v5110_v55 }
 0x4a6   :  { %v1588_v58 = vpop.f32.mrf.mxu1 }
 0x4a7   :  { %v5120_v46 = vadd.f32 %v1641_v36, %v1588_v58  ;;  %v1879_v41 = vmul.f32 %v5947_v52, %v5118_v0  ;;  %v1934_v3 = vmul.f32 %v1878_v40, %v5116_v32  ;;  %v1897_v36 = vadd.f32 %v1873_v29, %v1872_v47 }
 0x4a8   :  { %v1590_v59 = vpop.f32.mrf.mxu1  ;;  %v1953_v4 = vadd.f32 %v1929_v14, %v1928_v11 }
 0x4a9   :  { %v5122_v19 = vadd.f32 %v1643_v54, %v1590_v59  ;;  %v1884_v13 = vmul.f32 %v5948_v42, %v5120_v46  ;;  %v1935_v50 = vmul.f32 %v1879_v41, %v5118_v0 }
 0x4ab   :  { %v1885_v51 = vmul.f32 %v5947_v52, %v5122_v19  ;;  %v1940_v44 = vmul.f32 %v1884_v13, %v5120_v46  ;;  %v1960_v39 = vadd.f32 %v1935_v50, %v1934_v3 }
 0x4ad   :  { %v1941_v56 = vmul.f32 %v1885_v51, %v5122_v19  ;;  %v1911_v58 = vadd.f32 %v1885_v51, %v1884_v13 }
 0x4c1   :  { %v1680_v7 = vpop.f32.mrf.mxu0 }
 0x4c3   :  { %v1682_v24 = vpop.f32.mrf.mxu0 }
 0x4c5   :  { %v1684_v53 = vpop.f32.mrf.mxu0 }
 0x4c7   :  { %v1686_v38 = vpop.f32.mrf.mxu0 }
 0x4c9   :  { %v1690_v12 = vpop.f32.mrf.mxu0 }
 0x4cb   :  { %v1692_v37 = vpop.f32.mrf.mxu0 }
 0x4cd   :  { %v1694_v18 = vpop.f32.mrf.mxu0 }
 0x4cf   :  { %v5104_v62 = vpop.f32.mrf.mxu0 }
 0x4d1   :  { %v1733_v6 = vpop.f32.mrf.mxu0 }
 0x4d2   :  { %v5124_v33 = vadd.f32 %v1733_v6, %v1680_v7 }
 0x4d3   :  { %v1735_v21 = vpop.f32.mrf.mxu0 }
 0x4d4   :  { %v1868_v17 = vmul.f32 %v5949_v20, %v5124_v33  ;;  %v5145_v48 = vadd.f32 %v1735_v21, %v1682_v24  ;;  %v1967_v21 = vadd.f32 %v1941_v56, %v1940_v44 }
 0x4d5   :  { %v1737_v28 = vpop.f32.mrf.mxu0 }
 0x4d6   :  { %v5130_v60 = vadd.f32 %v1737_v28, %v1684_v53  ;;  %v1924_v22 = vmul.f32 %v1868_v17, %v5124_v33  ;;  %v1869_v9 = vmul.f32 %v5950_v34, %v5145_v48  ;;  %v1891_v54 = vadd.f32 %v1890_v61, %v1868_v17  ;;  %v5952_v17 = vld [vmem:[#allocation7_spill] sm:$0xff] }
 0x4d7   :  { %v1739_v31 = vpop.f32.mrf.mxu0 }
 0x4d8   :  { %v1874_v16 = vmul.f32 %v5949_v20, %v5130_v60  ;;  %v5151_v63 = vadd.f32 %v1739_v31, %v1686_v38  ;;  %v1947_v59 = vadd.f32 %v1946_v5, %v1924_v22  ;;  %v1925_v28 = vmul.f32 %v1869_v9, %v5145_v48 }
 0x4d9   :  { %v1743_v26 = vpop.f32.mrf.mxu0  ;;  %v1892_v42 = vadd.f32 %v1891_v54, %v1869_v9 }
 0x4da   :  { %v5153_v27 = vadd.f32 %v1743_v26, %v1690_v12  ;;  %v1930_v7 = vmul.f32 %v1874_v16, %v5130_v60  ;;  %v1875_v23 = vmul.f32 %v5950_v34, %v5151_v63  ;;  %v1904_v12 = vadd.f32 %v1879_v41, %v1878_v40 }
 0x4db   :  { %v1745_v2 = vpop.f32.mrf.mxu0  ;;  %v1898_v52 = vadd.f32 %v1897_v36, %v1874_v16  ;;  %v1948_v16 = vadd.f32 %v1947_v59, %v1925_v28 }
 0x4dc   :  { %v1880_v24 = vmul.f32 %v5949_v20, %v5153_v27  ;;  %v5168_v53 = vadd.f32 %v1745_v2, %v1692_v37  ;;  %v1954_v35 = vadd.f32 %v1953_v4, %v1930_v7  ;;  %v5951_v37 = vld [vmem:[#allocation6_spill] sm:$0xff]  ;;  %v1931_v26 = vmul.f32 %v1875_v23, %v5151_v63 }
 0x4dd   :  { %v1747_v30 = vpop.f32.mrf.mxu0  ;;  %v1899_v61 = vadd.f32 %v1898_v52, %v1875_v23 }
 0x4de   :  { %v5170_v57 = vadd.f32 %v1747_v30, %v1694_v18  ;;  %v1936_v25 = vmul.f32 %v1880_v24, %v5153_v27  ;;  %v1881_v47 = vmul.f32 %v5950_v34, %v5168_v53  ;;  %v1905_v30 = vadd.f32 %v1904_v12, %v1880_v24 }
 0x4df   :  { %v1749_v15 = vpop.f32.mrf.mxu0 }
 0x4e0   :  { %v1886_v40 = vmul.f32 %v5949_v20, %v5170_v57  ;;  %v5191_v5 = vadd.f32 %v1749_v15, %v5104_v62  ;;  %v1961_v22 = vadd.f32 %v1960_v39, %v1936_v25  ;;  %v1937_v9 = vmul.f32 %v1881_v47, %v5168_v53 }
 0x4e1   :  { %v1839_v43 = vpop.f32.mrf.mxu0  ;;  %v1955_v62 = vadd.f32 %v1954_v35, %v1931_v26  ;;  %v1906_v35 = vadd.f32 %v1905_v30, %v1881_v47 }
 0x4e2   :  { %v1942_v36 = vmul.f32 %v1886_v40, %v5170_v57 }
 0x4e3   :  { %v1786_v38 = vpop.f32.mrf.mxu1  ;;  %v1841_v31 = vpop.f32.mrf.mxu0 }
 0x4e4   :  { %v5172_v6 = vadd.f32 %v1839_v43, %v1786_v38  ;;  %v1912_v38 = vadd.f32 %v1911_v58, %v1886_v40  ;;  %v1887_v43 = vmul.f32 %v5950_v34, %v5191_v5  ;;  %v1968_v26 = vadd.f32 %v1967_v21, %v1942_v36 }
 0x4e5   :  { %v1788_v49 = vpop.f32.mrf.mxu1  ;;  %v1843_v13 = vpop.f32.mrf.mxu0 }
 0x4e6   :  { %v1870_v18 = vmul.f32 %v5951_v37, %v5172_v6  ;;  %v5177_v29 = vadd.f32 %v1841_v31, %v1788_v49 }
 0x4e7   :  { %v1790_v41 = vpop.f32.mrf.mxu1  ;;  %v1845_v3 = vpop.f32.mrf.mxu0 }
 0x4e8   :  { %v1926_v51 = vmul.f32 %v1870_v18, %v5172_v6  ;;  %v1871_v2 = vmul.f32 %v5952_v17, %v5177_v29  ;;  %v5188_v10 = vadd.f32 %v1843_v13, %v1790_v41  ;;  %v1893_v14 = vadd.f32 %v1892_v42, %v1870_v18 }
 0x4e9   :  { %v1792_v11 = vpop.f32.mrf.mxu1  ;;  %v1849_v54 = vpop.f32.mrf.mxu0  ;;  %v1962_v18 = vadd.f32 %v1961_v22, %v1937_v9 }
 0x4ea   :  { %v1927_v20 = vmul.f32 %v1871_v2, %v5177_v29  ;;  %v1876_v50 = vmul.f32 %v5951_v37, %v5188_v10  ;;  %v5196_v44 = vadd.f32 %v1845_v3, %v1792_v11  ;;  %v1894_v56 = vadd.f32 %v1893_v14, %v1871_v2 }
 0x4eb   :  { %v1796_v4 = vpop.f32.mrf.mxu1  ;;  %v1949_v7 = vadd.f32 %v1948_v16, %v1926_v51  ;;  %v1851_v39 = vpop.f32.mrf.mxu0  ;;  %v1913_v51 = vadd.f32 %v1912_v38, %v1887_v43  ;;  %v1943_v2 = vmul.f32 %v1887_v43, %v5191_v5 }
 0x4ec   :  { %v1932_v15 = vmul.f32 %v1876_v50, %v5188_v10  ;;  %v1877_v23 = vmul.f32 %v5952_v17, %v5196_v44  ;;  %v5203_v24 = vadd.f32 %v1849_v54, %v1796_v4  ;;  %1895 = vadd.xlane.f32.xlu0 %v1894_v56  ;;  %v1900_v28 = vadd.f32 %v1899_v61, %v1876_v50 }
 0x4ed   :  { %v1798_v12 = vpop.f32.mrf.mxu1  ;;  %v1950_v59 = vadd.f32 %v1949_v7, %v1927_v20  ;;  %v1853_v25 = vpop.f32.mrf.mxu0  ;;  %v1969_v36 = vadd.f32 %v1968_v26, %v1943_v2 }
 0x4ee   :  { %v1933_v52 = vmul.f32 %v1877_v23, %v5196_v44  ;;  %v1882_v49 = vmul.f32 %v5951_v37, %v5203_v24  ;;  %v5210_v31 = vadd.f32 %v1851_v39, %v1798_v12  ;;  %v1956_v42 = vadd.f32 %v1955_v62, %v1932_v15 }
 0x4ef   :  { %1951 = vadd.xlane.f32.xlu1 %v1950_v59  ;;  %v1800_v58 = vpop.f32.mrf.mxu1  ;;  %v1855_v16 = vpop.f32.mrf.mxu0  ;;  %v1901_v61 = vadd.f32 %v1900_v28, %v1877_v23 }
 0x4f0   :  { %v1938_v34 = vmul.f32 %v1882_v49, %v5203_v24  ;;  %v1883_v40 = vmul.f32 %v5952_v17, %v5210_v31  ;;  %v5215_v41 = vadd.f32 %v1853_v25, %v1800_v58  ;;  %v1957_v13 = vadd.f32 %v1956_v42, %v1933_v52 }
 0x4f1   :  { %v1802_v14 = vpop.f32.mrf.mxu1  ;;  %v1907_v47 = vadd.f32 %v1906_v35, %v1882_v49 }
 0x4f2   :  { %v1939_v21 = vmul.f32 %v1883_v40, %v5210_v31  ;;  %v1888_v30 = vmul.f32 %v5951_v37, %v5215_v41  ;;  %v5221_v11 = vadd.f32 %v1855_v16, %v1802_v14  ;;  %1958 = vadd.xlane.f32.xlu0 %v1957_v13  ;;  %v1963_v3 = vadd.f32 %v1962_v18, %v1938_v34 }
 0x4f3   :  { %1902 = vadd.xlane.f32.xlu1 %v1901_v61  ;;  %v1908_v20 = vadd.f32 %v1907_v47, %v1883_v40 }
 0x4f4   :  { %v1944_v50 = vmul.f32 %v1888_v30, %v5215_v41  ;;  %v1889_v56 = vmul.f32 %v5952_v17, %v5221_v11  ;;  %v1964_v22 = vadd.f32 %v1963_v3, %v1939_v21  ;;  %v1914_v9 = vadd.f32 %v1913_v51, %v1888_v30  ;;  %v1858_v21 = vld [vmem:[%s5352_s5] sm:$0xff] }
 0x4f6   :  { %1909 = vadd.xlane.f32.xlu0 %v1908_v20  ;;  %v1945_v4 = vmul.f32 %v1889_v56, %v5221_v11  ;;  %v1915_v54 = vadd.f32 %v1914_v9, %v1889_v56  ;;  %v1970_v37 = vadd.f32 %v1969_v36, %v1944_v50  ;;  %v1859_v50 = vld [vmem:[%s5352_s5 + $0x8] sm:$0xff]  ;;  %v1860_v9 = vld [vmem:[%s5352_s5 + $0x10] sm:$0xff] }
 0x4f7   :  { %1965 = vadd.xlane.f32.xlu1 %v1964_v22 }
 0x4f8   :  { %v1971_v7 = vadd.f32 %v1970_v37, %v1945_v4  ;;  %v1862_v4 = vld [vmem:[%s5353_s6] sm:$0xff] }
 0x4fa   :  { %1916 = vadd.xlane.f32.xlu0 %v1915_v54 }
 0x4fe   :  { %1972 = vadd.xlane.f32.xlu0 %v1971_v7 }
 0x575   :  { %v1896_v62 = vpop.xlane.xlu0 %1895 }
 0x576   :  { %v1918_v15 = vmul.f32 0.001953125, %v1896_v62  ;;  %v1863_v62 = vld [vmem:[%s5353_s6 + $0x8] sm:$0xff] }
 0x578   :  { %v1978_v23 = vmul.f32 %v1918_v15, %v1918_v15  ;;  %v1952_v38 = vpop.xlane.xlu1 %1951 }
 0x579   :  { %v1974_v43 = vmul.f32 0.001953125, %v1952_v38 }
 0x57b   :  { %v1982_v12 = vsub.f32 %v1974_v43, %v1978_v23  ;;  %v1959_v39 = vpop.xlane.xlu0 %1958  ;;  %v1864_v23 = vld [vmem:[%s5353_s6 + $0x10] sm:$0xff] }
 0x57c   :  { %v1903_v17 = vpop.xlane.xlu1 %1902  ;;  %v1975_v52 = vmul.f32 0.001953125, %v1959_v39 }
 0x57d   :  { %v1986_v59 = vadd.f32 1e-05, %v1982_v12  ;;  %v1919_v28 = vmul.f32 0.001953125, %v1903_v17 }
 0x57f   :  { %2767 = vrsqrt.f32 %v1986_v59  ;;  %v1979_v49 = vmul.f32 %v1919_v28, %v1919_v28  ;;  %v1910_v42 = vpop.xlane.xlu0 %1909 }
 0x580   :  { %v1966_v35 = vpop.xlane.xlu1 %1965  ;;  %v1920_v18 = vmul.f32 0.001953125, %v1910_v42 }
 0x581   :  { %v1983_v26 = vsub.f32 %v1975_v52, %v1979_v49  ;;  %v1976_v58 = vmul.f32 0.001953125, %v1966_v35  ;;  %v1865_v52 = vld [vmem:[%s5353_s6 + $0x18] sm:$0xff] }
 0x582   :  { %v1980_v25 = vmul.f32 %v1920_v18, %v1920_v18 }
 0x583   :  { %v1987_v34 = vadd.f32 1e-05, %v1983_v26  ;;  %v1917_v40 = vpop.xlane.xlu0 %1916 }
 0x584   :  { %v1984_v13 = vsub.f32 %v1976_v58, %v1980_v25  ;;  %v1921_v51 = vmul.f32 0.001953125, %v1917_v40 }
 0x585   :  { %2769 = vrsqrt.f32 %v1987_v34 }
 0x586   :  { %v1988_v2 = vadd.f32 1e-05, %v1984_v13  ;;  %v1981_v16 = vmul.f32 %v1921_v51, %v1921_v51 }
 0x587   :  { %v1973_v14 = vpop.xlane.xlu0 %1972 }
 0x588   :  { %2771 = vrsqrt.f32 %v1988_v2  ;;  %v1977_v61 = vmul.f32 0.001953125, %v1973_v14 }
 0x58a   :  { %v1985_v47 = vsub.f32 %v1977_v61, %v1981_v16 }
 0x58c   :  { %v2768_v30 = vpop.eup %2767  ;;  %v1989_v3 = vadd.f32 1e-05, %v1985_v47 }
 0x58d   :  { %v1994_v20 = vmul.f32 %v2768_v30, %v1858_v21 }
 0x58e   :  { %2773 = vrsqrt.f32 %v1989_v3 }
 0x58f   :  { %2008 = vperm.xlu1 %2277, %v1994_v20   ;;  %v1998_v36 = vmul.f32 %v1994_v20, %v1918_v15  ;;  %v1861_v15 = vld [vmem:[%s5352_s5 + $0x18] sm:$0xff] }
 0x591   :  { %v2002_v38 = vsub.f32 %v1862_v4, %v1998_v36 }
 0x592   :  { %v2770_v56 = vpop.eup %2769 }
 0x593   :  { %v1995_v22 = vmul.f32 %v2770_v56, %v1859_v50 }
 0x595   :  { %v2772_v54 = vpop.eup %2771  ;;  %2013 = vperm.xlu0 %2278, %v1995_v22   ;;  %v1999_v37 = vmul.f32 %v1995_v22, %v1919_v28 }
 0x596   :  { %v1996_v7 = vmul.f32 %v2772_v54, %v1860_v9 }
 0x597   :  { %v2003_v12 = vsub.f32 %v1863_v62, %v1999_v37 }
 0x598   :  { %v2000_v43 = vmul.f32 %v1996_v7, %v1920_v18  ;;  %2018 = vperm.xlu1 %2277, %v1996_v7  }
 0x599   :  { %2052 = vperm.xlu0 %2278, %v2002_v38  }
 0x59a   :  { %v2004_v39 = vsub.f32 %v1864_v23, %v2000_v43 }
 0x59b   :  { %v2774_v17 = vpop.eup %2773 }
 0x59c   :  { %2057 = vperm.xlu1 %2277, %v2003_v12   ;;  %v1997_v59 = vmul.f32 %v2774_v17, %v1861_v15 }
 0x59d   :  { %2062 = vperm.xlu0 %2278, %v2004_v39  }
 0x59e   :  { %v2001_v28 = vmul.f32 %v1997_v59, %v1921_v51 }
 0x5a0   :  { %2023 = vperm.xlu1 %2277, %v1997_v59   ;;  %v2005_v49 = vsub.f32 %v1865_v52, %v2001_v28 }
 0x5a4   :  { %2067 = vperm.xlu1 %2277, %v2005_v49  }
 0x60a   :  { %v2009_v42 = vpop.permute.xlu1 %2008 }
 0x60b   :  { %v2026_v18 = vmul.f32 %v2009_v42, %v5108_v45  ;;  %v2027_v26 = vmul.f32 %v2009_v42, %v5106_v8  ;;  %v2028_v58 = vmul.f32 %v2009_v42, %v5124_v33  ;;  %v2029_v25 = vmul.f32 %v2009_v42, %v5145_v48 }
 0x60c   :  { %v2030_v34 = vmul.f32 %v2009_v42, %v5172_v6  ;;  %v2031_v40 = vmul.f32 %v2009_v42, %v5177_v29 }
 0x610   :  { %v2014_v35 = vpop.permute.xlu0 %2013 }
 0x611   :  { %v2032_v13 = vmul.f32 %v2014_v35, %v5114_v1  ;;  %v2033_v51 = vmul.f32 %v2014_v35, %v5110_v55  ;;  %v2034_v2 = vmul.f32 %v2014_v35, %v5130_v60  ;;  %v2035_v14 = vmul.f32 %v2014_v35, %v5151_v63 }
 0x612   :  { %v2036_v45 = vmul.f32 %v2014_v35, %v5188_v10  ;;  %v2037_v8 = vmul.f32 %v2014_v35, %v5196_v44 }
 0x613   :  { %v2019_v16 = vpop.permute.xlu1 %2018 }
 0x614   :  { %v2053_v33 = vpop.permute.xlu0 %2052  ;;  %v2038_v48 = vmul.f32 %v2019_v16, %v5116_v32  ;;  %v2039_v6 = vmul.f32 %v2019_v16, %v5118_v0  ;;  %v2040_v29 = vmul.f32 %v2019_v16, %v5153_v27  ;;  %v2041_v1 = vmul.f32 %v2019_v16, %v5168_v53 }
 0x615   :  { %v2070_v61 = vadd.f32 %v2053_v33, %v2026_v18  ;;  %v2071_v55 = vadd.f32 %v2053_v33, %v2027_v26  ;;  %v2072_v47 = vadd.f32 %v2053_v33, %v2028_v58  ;;  %v2073_v60 = vadd.f32 %v2053_v33, %v2029_v25 }
 0x616   :  { %v2074_v21 = vadd.f32 %v2053_v33, %v2030_v34  ;;  %v2075_v63 = vadd.f32 %v2053_v33, %v2031_v40  ;;  %v2042_v10 = vmul.f32 %v2019_v16, %v5203_v24  ;;  %v2043_v44 = vmul.f32 %v2019_v16, %v5210_v31 }
 0x617   :  { %v2094_v30 = vmax.f32 %v2070_v61, 0.0  ;;  %v2095_v3 = vmax.f32 %v2071_v55, 0.0  ;;  %v2096_v20 = vmax.f32 %v2072_v47, 0.0  ;;  %v2097_v32 = vmax.f32 %v2073_v60, 0.0  ;;  %v2058_v50 = vpop.permute.xlu1 %2057 }
 0x618   :  { %v2098_v0 = vmax.f32 %v2074_v21, 0.0  ;;  %v2099_v56 = vmax.f32 %v2075_v63, 0.0  ;;  %v2076_v27 = vadd.f32 %v2058_v50, %v2032_v13  ;;  %v2077_v22 = vadd.f32 %v2058_v50, %v2033_v51  ;;  %v2063_v53 = vpop.permute.xlu0 %2062 }
 0x619   :  { %2118 = vst [vmem:[%s5354_s7] sm:$0xff] %v2094_v30  ;;  %2119 = vst [vmem:[%s5354_s7 + $0x8] sm:$0xff] %v2095_v3  ;;  %v2078_v24 = vadd.f32 %v2058_v50, %v2034_v2  ;;  %v2079_v31 = vadd.f32 %v2058_v50, %v2035_v14  ;;  %v2080_v9 = vadd.f32 %v2058_v50, %v2036_v45 }
 0x61a   :  { %2120 = vst [vmem:[%s5354_s7 + $0x10] sm:$0xff] %v2096_v20  ;;  %2121 = vst [vmem:[%s5354_s7 + $0x18] sm:$0xff] %v2097_v32  ;;  %v2081_v36 = vadd.f32 %v2058_v50, %v2037_v8  ;;  %v2100_v4 = vmax.f32 %v2076_v27, 0.0  ;;  %v2101_v54 = vmax.f32 %v2077_v22, 0.0  ;;  %v2082_v37 = vadd.f32 %v2063_v53, %v2038_v48 }
 0x61b   :  { %2122 = vst [vmem:[%s5354_s7 + $0x20] sm:$0xff] %v2098_v0  ;;  %2123 = vst [vmem:[%s5354_s7 + $0x28] sm:$0xff] %v2099_v56  ;;  %v2083_v7 = vadd.f32 %v2063_v53, %v2039_v6  ;;  %v2102_v62 = vmax.f32 %v2078_v24, 0.0  ;;  %v2103_v23 = vmax.f32 %v2079_v31, 0.0  ;;  %v2104_v38 = vmax.f32 %v2080_v9, 0.0  ;;  %v2024_v15 = vpop.permute.xlu1 %2023 }
 0x61c   :  { %v2105_v43 = vmax.f32 %v2081_v36, 0.0  ;;  %2124 = vst [vmem:[%s5354_s7 + $0x30] sm:$0xff] %v2100_v4  ;;  %2125 = vst [vmem:[%s5354_s7 + $0x38] sm:$0xff] %v2101_v54  ;;  %v2084_v12 = vadd.f32 %v2063_v53, %v2040_v29  ;;  %v2085_v39 = vadd.f32 %v2063_v53, %v2041_v1  ;;  %v2086_v17 = vadd.f32 %v2063_v53, %v2042_v10 }
 0x61d   :  { %v2087_v59 = vadd.f32 %v2063_v53, %v2043_v44  ;;  %2126 = vst [vmem:[%s5354_s7 + $0x40] sm:$0xff] %v2102_v62  ;;  %2127 = vst [vmem:[%s5354_s7 + $0x48] sm:$0xff] %v2103_v23  ;;  %v2106_v28 = vmax.f32 %v2082_v37, 0.0  ;;  %v2107_v52 = vmax.f32 %v2083_v7, 0.0  ;;  %v2044_v49 = vmul.f32 %v2024_v15, %v5120_v46 }
 0x61e   :  { %2128 = vst [vmem:[%s5354_s7 + $0x50] sm:$0xff] %v2104_v38  ;;  %2129 = vst [vmem:[%s5354_s7 + $0x58] sm:$0xff] %v2105_v43  ;;  %v2045_v42 = vmul.f32 %v2024_v15, %v5122_v19  ;;  %v2108_v35 = vmax.f32 %v2084_v12, 0.0  ;;  %v2109_v18 = vmax.f32 %v2085_v39, 0.0  ;;  %v2110_v26 = vmax.f32 %v2086_v17, 0.0 }
 0x61f   :  { %v2111_v58 = vmax.f32 %v2087_v59, 0.0  ;;  %2130 = vst [vmem:[%s5354_s7 + $0x60] sm:$0xff] %v2106_v28  ;;  %2131 = vst [vmem:[%s5354_s7 + $0x68] sm:$0xff] %v2107_v52  ;;  %v2046_v25 = vmul.f32 %v2024_v15, %v5170_v57  ;;  %v2047_v34 = vmul.f32 %v2024_v15, %v5191_v5  ;;  %v2048_v46 = vmul.f32 %v2024_v15, %v5215_v41  ;;  %v2068_v40 = vpop.permute.xlu1 %2067 }
 0x620   :  { %v2049_v19 = vmul.f32 %v2024_v15, %v5221_v11  ;;  %2132 = vst [vmem:[%s5354_s7 + $0x70] sm:$0xff] %v2108_v35  ;;  %2133 = vst [vmem:[%s5354_s7 + $0x78] sm:$0xff] %v2109_v18  ;;  %v2088_v57 = vadd.f32 %v2068_v40, %v2044_v49  ;;  %v2089_v5 = vadd.f32 %v2068_v40, %v2045_v42 }
 0x621   :  { %2134 = vst [vmem:[%s5354_s7 + $0x80] sm:$0xff] %v2110_v26  ;;  %2135 = vst [vmem:[%s5354_s7 + $0x88] sm:$0xff] %v2111_v58  ;;  %v2090_v41 = vadd.f32 %v2068_v40, %v2046_v25  ;;  %v2091_v11 = vadd.f32 %v2068_v40, %v2047_v34  ;;  %v2092_v13 = vadd.f32 %v2068_v40, %v2048_v46 }
 0x622   :  { %v2093_v51 = vadd.f32 %v2068_v40, %v2049_v19  ;;  %v2112_v2 = vmax.f32 %v2088_v57, 0.0  ;;  %v2113_v14 = vmax.f32 %v2089_v5, 0.0 }
 0x623   :  { %v2114_v45 = vmax.f32 %v2090_v41, 0.0  ;;  %v2115_v8 = vmax.f32 %v2091_v11, 0.0  ;;  %v2116_v16 = vmax.f32 %v2092_v13, 0.0 }
 0x624   :  { %v2117_v33 = vmax.f32 %v2093_v51, 0.0  ;;  %2136 = vst [vmem:[%s5354_s7 + $0x90] sm:$0xff] %v2112_v2  ;;  %2137 = vst [vmem:[%s5354_s7 + $0x98] sm:$0xff] %v2113_v14 }
 0x625   :  { %2138 = vst [vmem:[%s5354_s7 + $0xa0] sm:$0xff] %v2114_v45  ;;  %2139 = vst [vmem:[%s5354_s7 + $0xa8] sm:$0xff] %v2115_v8 }
 0x626   :  { %2140 = vst [vmem:[%s5354_s7 + $0xb0] sm:$0xff] %v2116_v16  ;;  %2141 = vst [vmem:[%s5354_s7 + $0xb8] sm:$0xff] %v2117_v33 }

</bundles_post_ra>
